<compile_context>
chip_gen: v5e
topology: v5e:2x2
jax: 0.10.0
libtpu: 0.0.40
codegen_flags: <defaults>
</compile_context>

<pallas_src>
import functools

import numpy as np
import jax
import jax.numpy as jnp
from jax.experimental import pallas as pl
from jax.experimental.pallas import tpu as pltpu

# ---- hyper-params (the `opt` dict / img_shape of the PyTorch script) --------
N_CLASSES = 8
LATENT_DIM = 32
IMG_SHAPE = (1, 16, 16)                  # (C, H, W)
IMG_FLAT = int(np.prod(IMG_SHAPE))
BN_EPS = 0.8                             # nn.BatchNorm1d(out_feat, 0.8) -> eps=0.8
LRELU_SLOPE = 0.2

# (in_features, out_features, has_batchnorm)
LAYER_DIMS = [
    (LATENT_DIM + N_CLASSES, 128, False),
    (128, 256, True),
    (256, 512, True),
    (512, 1024, True),
    (1024, IMG_FLAT, False),
]


# ---------------------------- Pallas kernel ----------------------------------
def _generator_kernel(b_actual, b_pad,
                      labels_ref, noise_ref, emb_w0_ref,
                      w0_ref, b0_ref,
                      w1_ref, b1_ref, g1_ref, be1_ref,
                      w2_ref, b2_ref, g2_ref, be2_ref,
                      w3_ref, b3_ref, g3_ref, be3_ref,
                      w4_ref, b4_ref,
                      o_ref):
    f32 = jnp.float32
    bf16 = jnp.bfloat16

    def linear(h, w_ref, b_ref):
        # bf16 MXU matmul with f32 accumulation; bias/elementwise stay f32.
        return jnp.dot(h.astype(bf16), w_ref[...],
                       preferred_element_type=f32) + b_ref[...]

    # Row-validity mask is only materialized when the batch had to be padded.
    if b_pad != b_actual:
        row_valid = (jax.lax.broadcasted_iota(jnp.int32, (b_pad, 1), 0)
                     < b_actual).astype(f32)
    else:
        row_valid = None

    def batchnorm(h, g_ref, be_ref):
        # Train-mode BatchNorm1d: biased batch statistics over the FULL batch.
        if row_valid is None:
            mean = jnp.mean(h, axis=0, keepdims=True)
            var = jnp.mean((h - mean) ** 2, axis=0, keepdims=True)
        else:
            inv_n = 1.0 / float(b_actual)
            mean = jnp.sum(h * row_valid, axis=0, keepdims=True) * inv_n
            var = jnp.sum(((h - mean) * row_valid) ** 2,
                          axis=0, keepdims=True) * inv_n
        # Fold BN into one per-feature scale/shift: 2 vector ops per element.
        scale = jax.lax.rsqrt(var + BN_EPS) * g_ref[...]
        shift = be_ref[...] - mean * scale
        return h * scale + shift

    def lrelu(h):
        return jnp.where(h > 0, h, LRELU_SLOPE * h)

    # ---- layer 0: embedding + concat folded into the first Linear ----
    # one_hot(labels) @ (emb_table @ W0[:n_classes]) + noise @ W0[n_classes:] + b0
    lbl = labels_ref[...]                                            # (B, 1) i32
    onehot = (lbl == jax.lax.broadcasted_iota(
        jnp.int32, (b_pad, N_CLASSES), 1)).astype(f32)               # (B, 8)
    emb_part = jnp.dot(onehot, emb_w0_ref[...], preferred_element_type=f32)
    h = lrelu(emb_part + linear(noise_ref[...], w0_ref, b0_ref))     # block 1 (no BN)

    h = lrelu(batchnorm(linear(h, w1_ref, b1_ref), g1_ref, be1_ref))  # block 2
    h = lrelu(batchnorm(linear(h, w2_ref, b2_ref), g2_ref, be2_ref))  # block 3
    h = lrelu(batchnorm(linear(h, w3_ref, b3_ref), g3_ref, be3_ref))  # block 4
    o_ref[...] = jnp.tanh(linear(h, w4_ref, b4_ref))                  # Linear + Tanh


# ------------------------------ parameters -----------------------------------
def init_params(key):
    """Deterministic synthetic parameters (PyTorch-default-style uniform init),
    pre-packed for the fused kernel (bf16 weights, folded embedding)."""
    raw = []
    for fin, fout, _norm in LAYER_DIMS:
        key, kw, kb = jax.random.split(key, 3)
        bound = 1.0 / np.sqrt(fin)
        # store W as [in, out] so the kernel computes x @ W (== x @ W_pt.T)
        w = jax.random.uniform(kw, (fin, fout), jnp.float32, -bound, bound)
        b = jax.random.uniform(kb, (1, fout), jnp.float32, -bound, bound)
        raw.append((w, b))
    key, ke = jax.random.split(key)
    emb_table = jax.random.normal(ke, (N_CLASSES, N_CLASSES), jnp.float32)

    # Fold nn.Embedding + concat into layer 0 (exact algebraic identity).
    w0, b0 = raw[0]
    emb_w0 = emb_table @ w0[:N_CLASSES]                  # (n_classes, 128), f32
    packed = [emb_w0, w0[N_CLASSES:].astype(jnp.bfloat16), b0]
    for (w, b), (_fin, fout, norm) in zip(raw[1:], LAYER_DIMS[1:]):
        packed += [w.astype(jnp.bfloat16), b]
        if norm:
            packed += [jnp.ones((1, fout), jnp.float32),     # gamma
                       jnp.zeros((1, fout), jnp.float32)]    # beta
    return packed


# ------------------------------ forward ---------------------------------------
@jax.jit
def generator_forward(noise, labels, params):
    B = noise.shape[0]
    B_pad = max(8, ((B + 7) // 8) * 8)        # sublane-align the batch
    noise = noise.astype(jnp.float32)
    labels = labels.astype(jnp.int32)
    if B_pad != B:
        noise = jnp.pad(noise, ((0, B_pad - B), (0, 0)))
        labels = jnp.pad(labels, (0, B_pad - B))
    labels_2d = labels.reshape(B_pad, 1)

    kernel = functools.partial(_generator_kernel, B, B_pad)

    flops = 2 * B_pad * sum(fin * fout for fin, fout, _ in LAYER_DIMS)
    transcendentals = B_pad * IMG_FLAT + sum(f for _, f, n in LAYER_DIMS if n)
    bytes_accessed = (
        sum(int(np.prod(p.shape)) * p.dtype.itemsize for p in params)
        + noise.size * 4 + labels_2d.size * 4 + B_pad * IMG_FLAT * 4)

    vmem_spec = pl.BlockSpec(memory_space=pltpu.MemorySpace.VMEM)
    img_flat = pl.pallas_call(
        kernel,
        out_shape=jax.ShapeDtypeStruct((B_pad, IMG_FLAT), jnp.float32),
        in_specs=[vmem_spec] * (2 + len(params)),
        out_specs=vmem_spec,
        compiler_params=pltpu.CompilerParams(vmem_limit_bytes=16 << 20),
        cost_estimate=pl.CostEstimate(flops=flops,
                                      transcendentals=transcendentals,
                                      bytes_accessed=bytes_accessed),
    )(labels_2d, noise, *params)

    # NCHW output, like img.view(B, *img_shape)
    return img_flat[:B].reshape(B, *IMG_SHAPE)


# ------------------------------- main -----------------------------------------
if __name__ == "__main__":
    key = jax.random.PRNGKey(0)
    k_params, k_noise, k_labels = jax.random.split(key, 3)

    params = init_params(k_params)

    B = 8
    noise = jax.random.normal(k_noise, (B, LATENT_DIM), jnp.float32)
    labels = jax.random.randint(k_labels, (B,), 0, N_CLASSES, jnp.int32)

    img = generator_forward(noise, labels, params)
    jax.block_until_ready(img)

    assert img.shape == (B,) + IMG_SHAPE, img.shape
    assert bool(jnp.all(jnp.isfinite(img)))
    print("KERNEL_OK")
</pallas_src>

<mosaic_0001>
module attributes {stable_mosaic.version = 11 : i64} {
  func.func @_generator_kernel(%arg0: memref<8x1xi32, #tpu.memory_space<vmem>>, %arg1: memref<8x32xf32, #tpu.memory_space<vmem>>, %arg2: memref<8x128xf32, #tpu.memory_space<vmem>>, %arg3: memref<32x128xbf16, #tpu.memory_space<vmem>>, %arg4: memref<1x128xf32, #tpu.memory_space<vmem>>, %arg5: memref<128x256xbf16, #tpu.memory_space<vmem>>, %arg6: memref<1x256xf32, #tpu.memory_space<vmem>>, %arg7: memref<1x256xf32, #tpu.memory_space<vmem>>, %arg8: memref<1x256xf32, #tpu.memory_space<vmem>>, %arg9: memref<256x512xbf16, #tpu.memory_space<vmem>>, %arg10: memref<1x512xf32, #tpu.memory_space<vmem>>, %arg11: memref<1x512xf32, #tpu.memory_space<vmem>>, %arg12: memref<1x512xf32, #tpu.memory_space<vmem>>, %arg13: memref<512x1024xbf16, #tpu.memory_space<vmem>>, %arg14: memref<1x1024xf32, #tpu.memory_space<vmem>>, %arg15: memref<1x1024xf32, #tpu.memory_space<vmem>>, %arg16: memref<1x1024xf32, #tpu.memory_space<vmem>>, %arg17: memref<1024x256xbf16, #tpu.memory_space<vmem>>, %arg18: memref<1x256xf32, #tpu.memory_space<vmem>>, %arg19: memref<8x256xf32, #tpu.memory_space<vmem>>) attributes {dimension_semantics = [], scalar_prefetch = 0 : i64, scratch_operands = 0 : i64, tpu.core_type = #tpu.core_type<tc>} {
    %c0 = arith.constant 0 : index
    %c0_0 = arith.constant 0 : index
    %0 = vector.load %arg0[%c0, %c0_0] : memref<8x1xi32, #tpu.memory_space<vmem>>, vector<8x1xi32>
    %1 = tpu.iota {dimensions = array<i32: 1>} : vector<8x8xi32>
    %2 = vector.broadcast %0 : vector<8x1xi32> to vector<8x8xi32>
    %3 = arith.cmpi eq, %2, %1 : vector<8x8xi32>
    %4 = arith.extui %3 : vector<8x8xi1> to vector<8x8xi32>
    %5 = arith.sitofp %4 : vector<8x8xi32> to vector<8x8xf32>
    %c0_1 = arith.constant 0 : index
    %c0_2 = arith.constant 0 : index
    %6 = vector.load %arg2[%c0_1, %c0_2] : memref<8x128xf32, #tpu.memory_space<vmem>>, vector<8x128xf32>
    %cst = arith.constant dense<0.000000e+00> : vector<8x128xf32>
    %7 = tpu.matmul %5, %6, %cst {dimension_numbers = #tpu.dot_dimension_numbers<[1], [0], [0], [1], [0, 0, 1, 1], [], []>} : vector<8x8xf32>, vector<8x128xf32>, vector<8x128xf32> -> vector<8x128xf32>
    %c0_3 = arith.constant 0 : index
    %c0_4 = arith.constant 0 : index
    %8 = vector.load %arg1[%c0_3, %c0_4] : memref<8x32xf32, #tpu.memory_space<vmem>>, vector<8x32xf32>
    %9 = arith.truncf %8 : vector<8x32xf32> to vector<8x32xbf16>
    %c0_5 = arith.constant 0 : index
    %c0_6 = arith.constant 0 : index
    %10 = vector.load %arg3[%c0_5, %c0_6] : memref<32x128xbf16, #tpu.memory_space<vmem>>, vector<32x128xbf16>
    %cst_7 = arith.constant dense<0.000000e+00> : vector<8x128xf32>
    %11 = tpu.matmul %9, %10, %cst_7 {dimension_numbers = #tpu.dot_dimension_numbers<[1], [0], [0], [1], [0, 0, 1, 1], [], []>} : vector<8x32xbf16>, vector<32x128xbf16>, vector<8x128xf32> -> vector<8x128xf32>
    %c0_8 = arith.constant 0 : index
    %c0_9 = arith.constant 0 : index
    %12 = vector.load %arg4[%c0_8, %c0_9] : memref<1x128xf32, #tpu.memory_space<vmem>>, vector<1x128xf32>
    %13 = vector.broadcast %12 : vector<1x128xf32> to vector<8x128xf32>
    %14 = arith.addf %11, %13 : vector<8x128xf32>
    %15 = arith.addf %7, %14 : vector<8x128xf32>
    %cst_10 = arith.constant 0.000000e+00 : f32
    %16 = vector.broadcast %cst_10 : f32 to vector<8x128xf32>
    %17 = arith.cmpf ogt, %15, %16 : vector<8x128xf32>
    %cst_11 = arith.constant 2.000000e-01 : f32
    %18 = vector.broadcast %cst_11 : f32 to vector<8x128xf32>
    %19 = arith.mulf %18, %15 : vector<8x128xf32>
    %20 = arith.select %17, %15, %19 : vector<8x128xi1>, vector<8x128xf32>
    %21 = arith.truncf %20 : vector<8x128xf32> to vector<8x128xbf16>
    %c0_12 = arith.constant 0 : index
    %c0_13 = arith.constant 0 : index
    %22 = vector.load %arg5[%c0_12, %c0_13] : memref<128x256xbf16, #tpu.memory_space<vmem>>, vector<128x256xbf16>
    %cst_14 = arith.constant dense<0.000000e+00> : vector<8x256xf32>
    %23 = tpu.matmul %21, %22, %cst_14 {dimension_numbers = #tpu.dot_dimension_numbers<[1], [0], [0], [1], [0, 0, 1, 1], [], []>} : vector<8x128xbf16>, vector<128x256xbf16>, vector<8x256xf32> -> vector<8x256xf32>
    %c0_15 = arith.constant 0 : index
    %c0_16 = arith.constant 0 : index
    %24 = vector.load %arg6[%c0_15, %c0_16] : memref<1x256xf32, #tpu.memory_space<vmem>>, vector<1x256xf32>
    %25 = vector.broadcast %24 : vector<1x256xf32> to vector<8x256xf32>
    %26 = arith.addf %23, %25 : vector<8x256xf32>
    %cst_17 = arith.constant dense<0.000000e+00> : vector<256xf32>
    %27 = vector.multi_reduction <add>, %26, %cst_17 [0] : vector<8x256xf32> to vector<256xf32>
    %28 = vector.shape_cast %27 : vector<256xf32> to vector<1x256xf32>
    %cst_18 = arith.constant 8.000000e+00 : f32
    %29 = vector.broadcast %cst_18 : f32 to vector<1x256xf32>
    %30 = arith.divf %28, %29 : vector<1x256xf32>
    %31 = vector.broadcast %30 : vector<1x256xf32> to vector<8x256xf32>
    %32 = arith.subf %26, %31 : vector<8x256xf32>
    %33 = arith.mulf %32, %32 : vector<8x256xf32>
    %cst_19 = arith.constant dense<0.000000e+00> : vector<256xf32>
    %34 = vector.multi_reduction <add>, %33, %cst_19 [0] : vector<8x256xf32> to vector<256xf32>
    %35 = vector.shape_cast %34 : vector<256xf32> to vector<1x256xf32>
    %cst_20 = arith.constant 8.000000e+00 : f32
    %36 = vector.broadcast %cst_20 : f32 to vector<1x256xf32>
    %37 = arith.divf %35, %36 : vector<1x256xf32>
    %cst_21 = arith.constant 8.000000e-01 : f32
    %38 = vector.broadcast %cst_21 : f32 to vector<1x256xf32>
    %39 = arith.addf %37, %38 : vector<1x256xf32>
    %40 = math.rsqrt %39 : vector<1x256xf32>
    %c0_22 = arith.constant 0 : index
    %c0_23 = arith.constant 0 : index
    %41 = vector.load %arg7[%c0_22, %c0_23] : memref<1x256xf32, #tpu.memory_space<vmem>>, vector<1x256xf32>
    %42 = arith.mulf %40, %41 : vector<1x256xf32>
    %c0_24 = arith.constant 0 : index
    %c0_25 = arith.constant 0 : index
    %43 = vector.load %arg8[%c0_24, %c0_25] : memref<1x256xf32, #tpu.memory_space<vmem>>, vector<1x256xf32>
    %44 = arith.mulf %30, %42 : vector<1x256xf32>
    %45 = arith.subf %43, %44 : vector<1x256xf32>
    %46 = vector.broadcast %42 : vector<1x256xf32> to vector<8x256xf32>
    %47 = arith.mulf %26, %46 : vector<8x256xf32>
    %48 = vector.broadcast %45 : vector<1x256xf32> to vector<8x256xf32>
    %49 = arith.addf %47, %48 : vector<8x256xf32>
    %cst_26 = arith.constant 0.000000e+00 : f32
    %50 = vector.broadcast %cst_26 : f32 to vector<8x256xf32>
    %51 = arith.cmpf ogt, %49, %50 : vector<8x256xf32>
    %cst_27 = arith.constant 2.000000e-01 : f32
    %52 = vector.broadcast %cst_27 : f32 to vector<8x256xf32>
    %53 = arith.mulf %52, %49 : vector<8x256xf32>
    %54 = arith.select %51, %49, %53 : vector<8x256xi1>, vector<8x256xf32>
    %55 = arith.truncf %54 : vector<8x256xf32> to vector<8x256xbf16>
    %c0_28 = arith.constant 0 : index
    %c0_29 = arith.constant 0 : index
    %56 = vector.load %arg9[%c0_28, %c0_29] : memref<256x512xbf16, #tpu.memory_space<vmem>>, vector<256x512xbf16>
    %cst_30 = arith.constant dense<0.000000e+00> : vector<8x512xf32>
    %57 = tpu.matmul %55, %56, %cst_30 {dimension_numbers = #tpu.dot_dimension_numbers<[1], [0], [0], [1], [0, 0, 1, 1], [], []>} : vector<8x256xbf16>, vector<256x512xbf16>, vector<8x512xf32> -> vector<8x512xf32>
    %c0_31 = arith.constant 0 : index
    %c0_32 = arith.constant 0 : index
    %58 = vector.load %arg10[%c0_31, %c0_32] : memref<1x512xf32, #tpu.memory_space<vmem>>, vector<1x512xf32>
    %59 = vector.broadcast %58 : vector<1x512xf32> to vector<8x512xf32>
    %60 = arith.addf %57, %59 : vector<8x512xf32>
    %cst_33 = arith.constant dense<0.000000e+00> : vector<512xf32>
    %61 = vector.multi_reduction <add>, %60, %cst_33 [0] : vector<8x512xf32> to vector<512xf32>
    %62 = vector.shape_cast %61 : vector<512xf32> to vector<1x512xf32>
    %cst_34 = arith.constant 8.000000e+00 : f32
    %63 = vector.broadcast %cst_34 : f32 to vector<1x512xf32>
    %64 = arith.divf %62, %63 : vector<1x512xf32>
    %65 = vector.broadcast %64 : vector<1x512xf32> to vector<8x512xf32>
    %66 = arith.subf %60, %65 : vector<8x512xf32>
    %67 = arith.mulf %66, %66 : vector<8x512xf32>
    %cst_35 = arith.constant dense<0.000000e+00> : vector<512xf32>
    %68 = vector.multi_reduction <add>, %67, %cst_35 [0] : vector<8x512xf32> to vector<512xf32>
    %69 = vector.shape_cast %68 : vector<512xf32> to vector<1x512xf32>
    %cst_36 = arith.constant 8.000000e+00 : f32
    %70 = vector.broadcast %cst_36 : f32 to vector<1x512xf32>
    %71 = arith.divf %69, %70 : vector<1x512xf32>
    %cst_37 = arith.constant 8.000000e-01 : f32
    %72 = vector.broadcast %cst_37 : f32 to vector<1x512xf32>
    %73 = arith.addf %71, %72 : vector<1x512xf32>
    %74 = math.rsqrt %73 : vector<1x512xf32>
    %c0_38 = arith.constant 0 : index
    %c0_39 = arith.constant 0 : index
    %75 = vector.load %arg11[%c0_38, %c0_39] : memref<1x512xf32, #tpu.memory_space<vmem>>, vector<1x512xf32>
    %76 = arith.mulf %74, %75 : vector<1x512xf32>
    %c0_40 = arith.constant 0 : index
    %c0_41 = arith.constant 0 : index
    %77 = vector.load %arg12[%c0_40, %c0_41] : memref<1x512xf32, #tpu.memory_space<vmem>>, vector<1x512xf32>
    %78 = arith.mulf %64, %76 : vector<1x512xf32>
    %79 = arith.subf %77, %78 : vector<1x512xf32>
    %80 = vector.broadcast %76 : vector<1x512xf32> to vector<8x512xf32>
    %81 = arith.mulf %60, %80 : vector<8x512xf32>
    %82 = vector.broadcast %79 : vector<1x512xf32> to vector<8x512xf32>
    %83 = arith.addf %81, %82 : vector<8x512xf32>
    %cst_42 = arith.constant 0.000000e+00 : f32
    %84 = vector.broadcast %cst_42 : f32 to vector<8x512xf32>
    %85 = arith.cmpf ogt, %83, %84 : vector<8x512xf32>
    %cst_43 = arith.constant 2.000000e-01 : f32
    %86 = vector.broadcast %cst_43 : f32 to vector<8x512xf32>
    %87 = arith.mulf %86, %83 : vector<8x512xf32>
    %88 = arith.select %85, %83, %87 : vector<8x512xi1>, vector<8x512xf32>
    %89 = arith.truncf %88 : vector<8x512xf32> to vector<8x512xbf16>
    %c0_44 = arith.constant 0 : index
    %c0_45 = arith.constant 0 : index
    %90 = vector.load %arg13[%c0_44, %c0_45] : memref<512x1024xbf16, #tpu.memory_space<vmem>>, vector<512x1024xbf16>
    %cst_46 = arith.constant dense<0.000000e+00> : vector<8x1024xf32>
    %91 = tpu.matmul %89, %90, %cst_46 {dimension_numbers = #tpu.dot_dimension_numbers<[1], [0], [0], [1], [0, 0, 1, 1], [], []>} : vector<8x512xbf16>, vector<512x1024xbf16>, vector<8x1024xf32> -> vector<8x1024xf32>
    %c0_47 = arith.constant 0 : index
    %c0_48 = arith.constant 0 : index
    %92 = vector.load %arg14[%c0_47, %c0_48] : memref<1x1024xf32, #tpu.memory_space<vmem>>, vector<1x1024xf32>
    %93 = vector.broadcast %92 : vector<1x1024xf32> to vector<8x1024xf32>
    %94 = arith.addf %91, %93 : vector<8x1024xf32>
    %cst_49 = arith.constant dense<0.000000e+00> : vector<1024xf32>
    %95 = vector.multi_reduction <add>, %94, %cst_49 [0] : vector<8x1024xf32> to vector<1024xf32>
    %96 = vector.shape_cast %95 : vector<1024xf32> to vector<1x1024xf32>
    %cst_50 = arith.constant 8.000000e+00 : f32
    %97 = vector.broadcast %cst_50 : f32 to vector<1x1024xf32>
    %98 = arith.divf %96, %97 : vector<1x1024xf32>
    %99 = vector.broadcast %98 : vector<1x1024xf32> to vector<8x1024xf32>
    %100 = arith.subf %94, %99 : vector<8x1024xf32>
    %101 = arith.mulf %100, %100 : vector<8x1024xf32>
    %cst_51 = arith.constant dense<0.000000e+00> : vector<1024xf32>
    %102 = vector.multi_reduction <add>, %101, %cst_51 [0] : vector<8x1024xf32> to vector<1024xf32>
    %103 = vector.shape_cast %102 : vector<1024xf32> to vector<1x1024xf32>
    %cst_52 = arith.constant 8.000000e+00 : f32
    %104 = vector.broadcast %cst_52 : f32 to vector<1x1024xf32>
    %105 = arith.divf %103, %104 : vector<1x1024xf32>
    %cst_53 = arith.constant 8.000000e-01 : f32
    %106 = vector.broadcast %cst_53 : f32 to vector<1x1024xf32>
    %107 = arith.addf %105, %106 : vector<1x1024xf32>
    %108 = math.rsqrt %107 : vector<1x1024xf32>
    %c0_54 = arith.constant 0 : index
    %c0_55 = arith.constant 0 : index
    %109 = vector.load %arg15[%c0_54, %c0_55] : memref<1x1024xf32, #tpu.memory_space<vmem>>, vector<1x1024xf32>
    %110 = arith.mulf %108, %109 : vector<1x1024xf32>
    %c0_56 = arith.constant 0 : index
    %c0_57 = arith.constant 0 : index
    %111 = vector.load %arg16[%c0_56, %c0_57] : memref<1x1024xf32, #tpu.memory_space<vmem>>, vector<1x1024xf32>
    %112 = arith.mulf %98, %110 : vector<1x1024xf32>
    %113 = arith.subf %111, %112 : vector<1x1024xf32>
    %114 = vector.broadcast %110 : vector<1x1024xf32> to vector<8x1024xf32>
    %115 = arith.mulf %94, %114 : vector<8x1024xf32>
    %116 = vector.broadcast %113 : vector<1x1024xf32> to vector<8x1024xf32>
    %117 = arith.addf %115, %116 : vector<8x1024xf32>
    %cst_58 = arith.constant 0.000000e+00 : f32
    %118 = vector.broadcast %cst_58 : f32 to vector<8x1024xf32>
    %119 = arith.cmpf ogt, %117, %118 : vector<8x1024xf32>
    %cst_59 = arith.constant 2.000000e-01 : f32
    %120 = vector.broadcast %cst_59 : f32 to vector<8x1024xf32>
    %121 = arith.mulf %120, %117 : vector<8x1024xf32>
    %122 = arith.select %119, %117, %121 : vector<8x1024xi1>, vector<8x1024xf32>
    %123 = arith.truncf %122 : vector<8x1024xf32> to vector<8x1024xbf16>
    %c0_60 = arith.constant 0 : index
    %c0_61 = arith.constant 0 : index
    %124 = vector.load %arg17[%c0_60, %c0_61] : memref<1024x256xbf16, #tpu.memory_space<vmem>>, vector<1024x256xbf16>
    %cst_62 = arith.constant dense<0.000000e+00> : vector<8x256xf32>
    %125 = tpu.matmul %123, %124, %cst_62 {dimension_numbers = #tpu.dot_dimension_numbers<[1], [0], [0], [1], [0, 0, 1, 1], [], []>} : vector<8x1024xbf16>, vector<1024x256xbf16>, vector<8x256xf32> -> vector<8x256xf32>
    %c0_63 = arith.constant 0 : index
    %c0_64 = arith.constant 0 : index
    %126 = vector.load %arg18[%c0_63, %c0_64] : memref<1x256xf32, #tpu.memory_space<vmem>>, vector<1x256xf32>
    %127 = vector.broadcast %126 : vector<1x256xf32> to vector<8x256xf32>
    %128 = arith.addf %125, %127 : vector<8x256xf32>
    %129 = math.tanh %128 : vector<8x256xf32>
    %c0_65 = arith.constant 0 : index
    %c0_66 = arith.constant 0 : index
    %130 = vector.load %arg19[%c0_65, %c0_66] : memref<8x256xf32, #tpu.memory_space<vmem>>, vector<8x256xf32>
    tpu.vector_store %arg19[%c0_65, %c0_66], %129 {strides = array<i32>} : memref<8x256xf32, #tpu.memory_space<vmem>>, vector<8x256xf32>,
    return
  }
}

</mosaic_0001>

<bundles_post_ra>
// kernel: generator_forward.1
= control target key start
LH: loop header
LB: loop body
LE: loop exit
PB: predicated region body
PF: predicated region fallthrough
CT: control target
= control target key end

     0   :  { %s7969_s0 = inlined_call_operand.vmem [shape: s32[8,1], index: 0, kind: input, shape index: {}]   ;;  %s7970_s1 = inlined_call_operand.vmem [shape: f32[8,32], index: 1, kind: input, shape index: {}]   ;;  %s7971_s2 = inlined_call_operand.hbm [shape: f32[8,128], index: 2, kind: input, shape index: {}]   ;;  %s7972_s3 = inlined_call_operand.hbm [shape: bf16[32,128], index: 3, kind: input, shape index: {}]   ;;  %s7973_s4 = inlined_call_operand.hbm [shape: f32[1,128], index: 4, kind: input, shape index: {}]   ;;  %s7974_s5 = inlined_call_operand.hbm [shape: bf16[128,256], index: 5, kind: input, shape index: {}]   ;;  %s7975_s6 = inlined_call_operand.hbm [shape: f32[1,256], index: 6, kind: input, shape index: {}]   ;;  %s7976_s7 = inlined_call_operand.hbm [shape: f32[1,256], index: 7, kind: input, shape index: {}]   ;;  %s7977_s8 = inlined_call_operand.hbm [shape: f32[1,256], index: 8, kind: input, shape index: {}]   ;;  %s7978_s9 = inlined_call_operand.hbm [shape: bf16[256,512], index: 9, kind: input, shape index: {}]   ;;  %s7979_s10 = inlined_call_operand.hbm [shape: f32[1,512], index: 10, kind: input, shape index: {}]   ;;  %s7980_s11 = inlined_call_operand.hbm [shape: f32[1,512], index: 11, kind: input, shape index: {}]   ;;  %s7981_s12 = inlined_call_operand.hbm [shape: f32[1,512], index: 12, kind: input, shape index: {}]   ;;  %s7982_s13 = inlined_call_operand.hbm [shape: bf16[512,1024], index: 13, kind: input, shape index: {}]   ;;  %s7983_s14 = inlined_call_operand.vmem [shape: f32[1,1024], index: 14, kind: input, shape index: {}]   ;;  %s7984_s15 = inlined_call_operand.vmem [shape: f32[1,1024], index: 15, kind: input, shape index: {}]   ;;  %s7985_s16 = inlined_call_operand.hbm [shape: f32[1,1024], index: 16, kind: input, shape index: {}]   ;;  %s7986_s17 = inlined_call_operand.hbm [shape: bf16[1024,256], index: 17, kind: input, shape index: {}]   ;;  %s7987_s18 = inlined_call_operand.vmem [shape: f32[1,256], index: 18, kind: input, shape index: {}]   ;;  %s7988_s19 = inlined_call_operand.vmem [shape: f32[8,256], index: 19, kind: output, shape index: {}]  }
   0x1   :  { %7990 = sst [smem:[#allocation32_spill]] %s7969_s0 }
   0x2   :  { %7991 = sst [smem:[#allocation33_spill]] %s7970_s1 }
   0x3   :  { %7992 = sst [smem:[#allocation34_spill]] %s7971_s2 }
   0x4   :  { %7993 = sst [smem:[#allocation35_spill]] %s7972_s3 }
   0x5   :  { %24 = vsyncpa [#allocation3], 0 }
   0x6   :  { %25 = vsyncpa [#allocation5], 0 }
   0x7   :  { %26 = vsyncpa [#allocation8], 0 }
   0x8   :  { %27 = vsyncpa [#allocation11], 0 }
   0x9   :  { %28 = vsyncpa [#allocation14], 0 }
   0xa   :  { %29 = vsyncpa [#allocation17], 0 }
   0xb   :  { %30 = vsyncpa [#allocation20], 0  ;;  %s7994_s20 = sld [smem:[#allocation35_spill]] }
  0x11   :  { %s51_s21 = sshll.u32 %s7994_s20, 4  ;;  %s52_s21 = int_to_ptr.hbm [resolvable:$true] %s51_s21 }
  0x12   :  { %31 = vsyncpa [#allocation23], 0  ;;  %s7309_s1 = smov [#allocation4]   ;;  %s75_s24 = sshll.u32 %s7974_s5, 4  ;;  %s76_s24 = int_to_ptr.hbm [resolvable:$true] %s75_s24 }
  0x13   :  { %s53_s22 = sshll.u32 %s7309_s1, 4  ;;  %s7310_s25 = smov 64   ;;  %s54_s22 = int_to_ptr.vmem [resolvable:$true] %s53_s22 }
  0x14   :  { %s7311_s3 = smov 4   ;;  %s7312_s26 = smov [#allocation7]  }
  0x15   :  { %59 = dma.hbm_to_vmem [thread:$0]  %s52_s21, 256, %s54_s22, [#allocation5], %s7310_s25, %s7310_s25, %s7311_s3  }
  0x16   :  { %s77_s27 = sshll.u32 %s7312_s26, 4  ;;  %s7989_s28 = smov 128   ;;  %s78_s27 = int_to_ptr.vmem [resolvable:$true] %s77_s27 }
  0x17   :  { %s7314_s29 = smov 8   ;;  %s100_s20 = sshll.u32 %s7976_s7, 4  ;;  %s101_s20 = int_to_ptr.hbm [resolvable:$true] %s100_s20 }
  0x18   :  { %83 = dma.hbm_to_vmem [thread:$0]  %s76_s24, 2048, %s78_s27, [#allocation8], %s7989_s28, %s7989_s28, %s7314_s29  }
  0x19   :  { %s7315_s1 = smov [#allocation10]   ;;  %s121_s22 = sshll.u32 %s7978_s9, 4  ;;  %s122_s22 = int_to_ptr.hbm [resolvable:$true] %s121_s22 }
  0x1a   :  { %s102_s5 = sshll.u32 %s7315_s1, 4  ;;  %s7316_s23 = smov [#allocation13]   ;;  %s103_s5 = int_to_ptr.vmem [resolvable:$true] %s102_s5 }
  0x1b   :  { %105 = dma.hbm_to_vmem [thread:$0]  %s101_s20, 32, %s103_s5, [#allocation11]  }
  0x1c   :  { %s123_s25 = sshll.u32 %s7316_s23, 4  ;;  %s7317_s3 = smov 256   ;;  %s124_s25 = int_to_ptr.vmem [resolvable:$true] %s123_s25 }
  0x1d   :  { %s7318_s26 = smov 16   ;;  %s146_s7 = sshll.u32 %s7980_s11, 4  ;;  %s147_s7 = int_to_ptr.hbm [resolvable:$true] %s146_s7 }
  0x1e   :  { %129 = dma.hbm_to_vmem [thread:$0]  %s122_s22, 8192, %s124_s25, [#allocation14], %s7317_s3, %s7317_s3, %s7318_s26  }
  0x1f   :  { %s7319_s0 = smov [#allocation16]   ;;  %s167_s9 = sshll.u32 %s7982_s13, 4  ;;  %s168_s9 = int_to_ptr.hbm [resolvable:$true] %s167_s9 }
  0x20   :  { %s148_s30 = sshll.u32 %s7319_s0, 4  ;;  %s7320_s20 = smov [#allocation19]   ;;  %s149_s30 = int_to_ptr.vmem [resolvable:$true] %s148_s30 }
  0x21   :  { %151 = dma.hbm_to_vmem [thread:$0]  %s147_s7, 64, %s149_s30, [#allocation17]  }
  0x22   :  { %s169_s5 = sshll.u32 %s7320_s20, 4  ;;  %s7321_s2 = smov 512   ;;  %s170_s5 = int_to_ptr.vmem [resolvable:$true] %s169_s5 }
  0x23   :  { %s7322_s21 = smov 32   ;;  %s7995_s25 = sld [smem:[#allocation34_spill]] }
  0x24   :  { %175 = dma.hbm_to_vmem [thread:$0]  %s168_s9, 32768, %s170_s5, [#allocation20], %s7321_s2, %s7321_s2, %s7322_s21  }
  0x25   :  { %s7323_s3 = smov [#allocation2]   ;;  %s65_s13 = sshll.u32 %s7973_s4, 4  ;;  %s66_s13 = int_to_ptr.hbm [resolvable:$true] %s65_s13 }
  0x26   :  { %s43_s26 = sshll.u32 %s7323_s3, 4  ;;  %s7324_s28 = smov [#allocation6]   ;;  %s44_s26 = int_to_ptr.vmem [resolvable:$true] %s43_s26 }
  0x27   :  { %s67_s7 = sshll.u32 %s7324_s28, 4  ;;  %s89_s1 = sshll.u32 %s7975_s6, 4  ;;  %s68_s7 = int_to_ptr.vmem [resolvable:$true] %s67_s7  ;;  %s90_s1 = int_to_ptr.hbm [resolvable:$true] %s89_s1 }
  0x28   :  { %70 = dma.hbm_to_vmem [thread:$0]  %s66_s13, 16, %s68_s7, [#allocation5]  }
  0x29   :  { %s41_s11 = sshll.u32 %s7995_s25, 4  ;;  %s111_s5 = sshll.u32 %s7977_s8, 4  ;;  %s42_s11 = int_to_ptr.hbm [resolvable:$true] %s41_s11  ;;  %s112_s5 = int_to_ptr.hbm [resolvable:$true] %s111_s5 }
  0x2a   :  { %46 = dma.hbm_to_vmem [thread:$0]  %s42_s11, 128, %s44_s26, [#allocation3]  }
  0x2b   :  { %s7325_s2 = smov [#allocation9]   ;;  %s7326_s4 = smov [#allocation12]  }
  0x2c   :  { %s91_s21 = sshll.u32 %s7325_s2, 4  ;;  %s113_s22 = sshll.u32 %s7326_s4, 4  ;;  %s92_s21 = int_to_ptr.vmem [resolvable:$true] %s91_s21  ;;  %s114_s22 = int_to_ptr.vmem [resolvable:$true] %s113_s22 }
  0x2d   :  { %94 = dma.hbm_to_vmem [thread:$0]  %s90_s1, 32, %s92_s21, [#allocation8]  }
  0x2e   :  { %s135_s11 = sshll.u32 %s7979_s10, 4  ;;  %s157_s26 = sshll.u32 %s7981_s12, 4  ;;  %s136_s11 = int_to_ptr.hbm [resolvable:$true] %s135_s11  ;;  %s158_s26 = int_to_ptr.hbm [resolvable:$true] %s157_s26 }
  0x2f   :  { %116 = dma.hbm_to_vmem [thread:$0]  %s112_s5, 32, %s114_s22, [#allocation11]  }
  0x30   :  { %s7327_s24 = smov [#allocation15]   ;;  %s7328_s27 = smov [#allocation18]  }
  0x31   :  { %s137_s8 = sshll.u32 %s7327_s24, 4  ;;  %s159_s13 = sshll.u32 %s7328_s27, 4  ;;  %s138_s8 = int_to_ptr.vmem [resolvable:$true] %s137_s8  ;;  %s160_s13 = int_to_ptr.vmem [resolvable:$true] %s159_s13 }
  0x32   :  { %140 = dma.hbm_to_vmem [thread:$0]  %s136_s11, 64, %s138_s8, [#allocation14]  }
  0x33   :  { %s185_s0 = sshll.u32 %s7985_s16, 4  ;;  %s195_s1 = sshll.u32 %s7986_s17, 4  ;;  %s186_s0 = int_to_ptr.hbm [resolvable:$true] %s185_s0  ;;  %s196_s1 = int_to_ptr.hbm [resolvable:$true] %s195_s1 }
  0x34   :  { %162 = dma.hbm_to_vmem [thread:$0]  %s158_s26, 64, %s160_s13, [#allocation17]  }
  0x35   :  { %s7329_s9 = smov [#allocation21]   ;;  %s7330_s20 = smov [#allocation22]  }
  0x36   :  { %s187_s12 = sshll.u32 %s7329_s9, 4  ;;  %s197_s5 = sshll.u32 %s7330_s20, 4  ;;  %s188_s12 = int_to_ptr.vmem [resolvable:$true] %s187_s12  ;;  %s198_s5 = int_to_ptr.vmem [resolvable:$true] %s197_s5 }
  0x37   :  { %190 = dma.hbm_to_vmem [thread:$0]  %s186_s0, 128, %s188_s12, [#allocation20]  }
  0x38   :  { %s7996_s2 = smov 128  }
  0x39   :  { %203 = dma.hbm_to_vmem [thread:$0]  %s196_s1, 16384, %s198_s5, [#allocation23], %s7996_s2, %s7996_s2, %s7314_s29  }
  0x3a   :  { %7293 = dma.done.wait [#allocation3], 128  }
  0x3b   :  { %7294 = vsyncadd [#allocation3], 4294967168 }
  0x3c   :  { %7295 = dma.done.wait [#allocation5], 272  }
  0x3d   :  { %7296 = vsyncadd [#allocation5], 4294967024 }
  0x3e   :  { %7297 = dma.done.wait [#allocation8], 2080  }
  0x3f   :  { %7298 = vsyncadd [#allocation8], 4294965216 }
  0x40   :  { %7299 = dma.done.wait [#allocation11], 64  }
  0x41   :  { %7300 = vsyncadd [#allocation11], 4294967232 }
  0x42   :  { %7301 = dma.done.wait [#allocation14], 8256  }
  0x43   :  { %7302 = vsyncadd [#allocation14], 4294959040 }
  0x44   :  { %7303 = dma.done.wait [#allocation17], 128  }
  0x45   :  { %7304 = vsyncadd [#allocation17], 4294967168 }
  0x46   :  { %7305 = dma.done.wait [#allocation20], 32896  }
  0x47   :  { %7306 = vsyncadd [#allocation20], 4294934400 }
  0x48   :  { %7307 = dma.done.wait [#allocation23], 16384  }
  0x49   :  { %7308 = vsyncadd [#allocation23], 4294950912  ;;  %v7331_v0 = vmov 0   ;;  %s7997_s29 = sld [smem:[#allocation32_spill]]  ;;  %v6430_v2 = vld [vmem:[#allocation4 + $0x8] sm:$0xff]  ;;  %v6429_v3 = vld [vmem:[#allocation4] sm:$0xff]  ;;  %v264_v43 = vlaneseq }
  0x4a   :  { %6920 = vset.pattern.permute.xlu0 %v7331_v0  ;;  %305 = vmatpush.bf16.msra.mxu0 %v6430_v2  ;;  %s7998_s22 = sld [smem:[#allocation33_spill]]  ;;  %vm295_vm0 = vcmask 261120   ;;  %v272_v6 = vld [vmem:[#allocation2] sm:$0xff]  ;;  %v4631_v7 = vld [vmem:[#allocation7 + $0x70] sm:$0xf]  ;;  %vm312_vm1 = vcmask 64512  }
  0x4b   :  { %331 = vmatpush.msra.mxu1 %v272_v6  ;;  %v6446_v8 = vld [vmem:[#allocation7 + $0x74] sm:$0xf0]  ;;  %v6445_v9 = vld [vmem:[#allocation7 + $0x74] sm:$0xf]  ;;  %v4633_v11 = vld [vmem:[#allocation7 + $0x78] sm:$0xf0] }
  0x4c   :  { %v4632_v10 = vor.u32 %v6446_v8, %v4631_v7  ;;  %v4623_v12 = vld [vmem:[#allocation7 + $0x60] sm:$0xf]  ;;  %v6444_v13 = vld [vmem:[#allocation7 + $0x64] sm:$0xf0]  ;;  %v4636_v14 = vor.u32 %v6445_v9, %v4633_v11  ;;  %v6443_v15 = vld [vmem:[#allocation7 + $0x64] sm:$0xf] }
  0x4d   :  { %v4625_v16 = vld [vmem:[#allocation7 + $0x68] sm:$0xf0]  ;;  %v4624_v17 = vor.u32 %v6444_v13, %v4623_v12  ;;  %v4615_v19 = vld [vmem:[#allocation7 + $0x50] sm:$0xf]  ;;  %v6442_v20 = vld [vmem:[#allocation7 + $0x54] sm:$0xf0] }
  0x4e   :  { %306 = vmatpush.bf16.msra.mxu0 %v6429_v3  ;;  %442 = vmatpush.bf16.msra.mxu2 %v4632_v10  ;;  %v4628_v18 = vor.u32 %v6443_v15, %v4625_v16  ;;  %v6441_v21 = vld [vmem:[#allocation7 + $0x54] sm:$0xf]  ;;  %v4617_v22 = vld [vmem:[#allocation7 + $0x58] sm:$0xf0]  ;;  %v4616_v23 = vor.u32 %v6442_v20, %v4615_v19  ;;  %v4607_v25 = vld [vmem:[#allocation7 + $0x40] sm:$0xf] }
  0x4f   :  { %v263_v1 = vld [vmem:[%s7997_s29] sm:$0xff]  ;;  %455 = vmatpush.bf16.msra.mxu3 %v4636_v14  ;;  %v4620_v24 = vor.u32 %v6441_v21, %v4617_v22  ;;  %v4599_v31 = vld [vmem:[#allocation7 + $0x30] sm:$0xf]  ;;  %v6438_v32 = vld [vmem:[#allocation7 + $0x34] sm:$0xf0]  ;;  %v265_v44 = vand.u32 127, %v264_v43 }
  0x50   :  { %267 = vperm.xlu0 %6920, %v263_v1   ;;  %v273_v4 = vld [vmem:[%s7998_s22] sm:$0xff]  ;;  %v6437_v33 = vld [vmem:[#allocation7 + $0x34] sm:$0xf]  ;;  %v4600_v34 = vor.u32 %v6438_v32, %v4599_v31  ;;  %v4601_v35 = vld [vmem:[#allocation7 + $0x38] sm:$0xf0]  ;;  %v7332_v46 = vmov 0.0  }
  0x51   :  { %v274_v5 = vpack.c.bf16 %v273_v4, %v273_v4  ;;  %v6440_v26 = vld [vmem:[#allocation7 + $0x44] sm:$0xf0]  ;;  %v6439_v27 = vld [vmem:[#allocation7 + $0x44] sm:$0xf]  ;;  %v4609_v28 = vld [vmem:[#allocation7 + $0x48] sm:$0xf0]  ;;  %v4604_v38 = vor.u32 %v6437_v33, %v4601_v35 }
  0x52   :  { %443 = vmatpush.bf16.msra.mxu2 %v4624_v17  ;;  %v4608_v29 = vor.u32 %v6440_v26, %v4607_v25  ;;  %v4612_v30 = vor.u32 %v6439_v27, %v4609_v28  ;;  %v4591_v36 = vld [vmem:[#allocation7 + $0x20] sm:$0xf]  ;;  %v6436_v37 = vld [vmem:[#allocation7 + $0x24] sm:$0xf0]  ;;  %v6435_v39 = vld [vmem:[#allocation7 + $0x24] sm:$0xf] }
  0x53   :  { %4571 = vmatmul.msk.bf16.vlgmr.msra.gmra.mxu0 %vm295_vm0, %v274_v5  ;;  %456 = vmatpush.bf16.msra.mxu3 %v4628_v18  ;;  %v4593_v40 = vld [vmem:[#allocation7 + $0x28] sm:$0xf0]  ;;  %v4592_v41 = vor.u32 %v6436_v37, %v4591_v36  ;;  %v4583_v50 = vld [vmem:[#allocation7 + $0x10] sm:$0xf]  ;;  %v6434_v51 = vld [vmem:[#allocation7 + $0x14] sm:$0xf0] }
  0x54   :  { %v4596_v42 = vor.u32 %v6435_v39, %v4593_v40  ;;  %v6433_v52 = vld [vmem:[#allocation7 + $0x14] sm:$0xf]  ;;  %v4584_v53 = vor.u32 %v6434_v51, %v4583_v50  ;;  %v4585_v54 = vld [vmem:[#allocation7 + $0x18] sm:$0xf0]  ;;  %v4575_v56 = vld [vmem:[#allocation7] sm:$0xf] }
  0x55   :  { %v4588_v55 = vor.u32 %v6433_v52, %v4585_v54  ;;  %v6432_v57 = vld [vmem:[#allocation7 + $0x4] sm:$0xf0]  ;;  %v6431_v58 = vld [vmem:[#allocation7 + $0x4] sm:$0xf]  ;;  %v4577_v60 = vld [vmem:[#allocation7 + $0x8] sm:$0xf0] }
  0x56   :  { %444 = vmatpush.bf16.msra.mxu2 %v4616_v23  ;;  %v4576_v59 = vor.u32 %v6432_v57, %v4575_v56  ;;  %v4580_v61 = vor.u32 %v6431_v58, %v4577_v60  ;;  %v6921_v62 = vld [vmem:[#allocation6] ss:$0 sm:$0xff]  ;;  %v7333_v5 = vmov 8.0   ;;  %v356_v7 = vld [vmem:[#allocation9] sm:$0x3]  ;;  %vm543_vm11 = vcmask 1040384  }
  0x57   :  { %457 = vmatpush.bf16.msra.mxu3 %v4620_v24  ;;  %6922 = vrcp.f32 %v7333_v5  ;;  %v4751_v9 = vld [vmem:[#allocation13 + $0xe0] sm:$0xf]  ;;  %v6477_v10 = vld [vmem:[#allocation13 + $0xec] sm:$0xf0]  ;;  %v6475_v14 = vld [vmem:[#allocation13 + $0xe4] sm:$0xf] }
  0x58   :  { %v4879_v11 = vld [vmem:[#allocation13 + $0x1e0] sm:$0xf]  ;;  %v4752_v12 = vor.u32 %v6477_v10, %v4751_v9  ;;  %v6509_v13 = vld [vmem:[#allocation13 + $0x1ec] sm:$0xf0]  ;;  %v4753_v15 = vld [vmem:[#allocation13 + $0xf0] sm:$0xf0] }
  0x59   :  { %v358_v16 = vperm.slane %v356_v7, 0  ;;  %v359_v17 = vperm.slane %v356_v7, 1  ;;  %v4880_v18 = vor.u32 %v6509_v13, %v4879_v11  ;;  %v4756_v19 = vor.u32 %v6475_v14, %v4753_v15  ;;  %v6507_v20 = vld [vmem:[#allocation13 + $0x1e4] sm:$0xf]  ;;  %v4881_v21 = vld [vmem:[#allocation13 + $0x1f0] sm:$0xf0] }
  0x5a   :  { %445 = vmatpush.bf16.msra.mxu2 %v4608_v29  ;;  %960 = vmatpush.bf16.msrb.mxu1 %v4752_v12  ;;  %v4884_v23 = vor.u32 %v6507_v20, %v4881_v21  ;;  %v4735_v24 = vld [vmem:[#allocation13 + $0xc0] sm:$0xf]  ;;  %v6473_v25 = vld [vmem:[#allocation13 + $0xcc] sm:$0xf0]  ;;  %v6471_v31 = vld [vmem:[#allocation13 + $0xc4] sm:$0xf] }
  0x5b   :  { %458 = vmatpush.bf16.msra.mxu3 %v4612_v30  ;;  %973 = vmatpush.bf16.msrb.mxu0 %v4880_v18  ;;  %v4863_v26 = vld [vmem:[#allocation13 + $0x1c0] sm:$0xf]  ;;  %v4736_v29 = vor.u32 %v6473_v25, %v4735_v24  ;;  %v6505_v30 = vld [vmem:[#allocation13 + $0x1cc] sm:$0xf0]  ;;  %v4737_v32 = vld [vmem:[#allocation13 + $0xd0] sm:$0xf0] }
  0x5c   :  { %v4864_v35 = vor.u32 %v6505_v30, %v4863_v26  ;;  %v4740_v36 = vor.u32 %v6471_v31, %v4737_v32  ;;  %v6503_v37 = vld [vmem:[#allocation13 + $0x1c4] sm:$0xf]  ;;  %v6469_v43 = vld [vmem:[#allocation13 + $0xac] sm:$0xf0]  ;;  %v4721_v52 = vld [vmem:[#allocation13 + $0xb0] sm:$0xf0] }
  0x5d   :  { %v7488_v6 = vpop.eup %6922  ;;  %v4849_v54 = vld [vmem:[#allocation13 + $0x1b0] sm:$0xf0]  ;;  %v6465_v60 = vld [vmem:[#allocation13 + $0x8c] sm:$0xf0]  ;;  %v6495_v9 = vld [vmem:[#allocation13 + $0x184] sm:$0xf] }
  0x5e   :  { %446 = vmatpush.bf16.msra.mxu2 %v4600_v34  ;;  %v481_v8 = vmul.f32 8.0, %v7488_v6  ;;  %961 = vmatpush.bf16.msrb.mxu1 %v4736_v29  ;;  %vm485_vm4 = vweird.f32 %v7488_v6  ;;  %v4833_v10 = vld [vmem:[#allocation13 + $0x190] sm:$0xf0]  ;;  %v4687_v15 = vld [vmem:[#allocation13 + $0x60] sm:$0xf] }
  0x5f   :  { %459 = vmatpush.bf16.msra.mxu3 %v4604_v38  ;;  %v4865_v38 = vld [vmem:[#allocation13 + $0x1d0] sm:$0xf0]  ;;  %974 = vmatpush.bf16.msrb.mxu0 %v4864_v35  ;;  %v4836_v12 = vor.u32 %v6495_v9, %v4833_v10  ;;  %v6493_v20 = vld [vmem:[#allocation13 + $0x16c] sm:$0xf0]  ;;  %v6459_v21 = vld [vmem:[#allocation13 + $0x64] sm:$0xf] }
  0x60   :  { %v482_v22 = vsub.f32 1.0, %v481_v8  ;;  %v4868_v39 = vor.u32 %v6503_v37, %v4865_v38  ;;  %v4705_v8 = vld [vmem:[#allocation13 + $0x90] sm:$0xf0]  ;;  %v6491_v26 = vld [vmem:[#allocation13 + $0x164] sm:$0xf] }
  0x61   :  { %v4689_v25 = vld [vmem:[#allocation13 + $0x70] sm:$0xf0]  ;;  %v4671_v31 = vld [vmem:[#allocation13 + $0x40] sm:$0xf]  ;;  %v6457_v32 = vld [vmem:[#allocation13 + $0x4c] sm:$0xf0] }
  0x62   :  { %447 = vmatpush.bf16.msra.mxu2 %v4592_v41  ;;  %v4799_v35 = vld [vmem:[#allocation13 + $0x140] sm:$0xf]  ;;  %v6489_v37 = vld [vmem:[#allocation13 + $0x14c] sm:$0xf0]  ;;  %v6455_v38 = vld [vmem:[#allocation13 + $0x44] sm:$0xf] }
  0x63   :  { %460 = vmatpush.bf16.msra.mxu3 %v4596_v42  ;;  %v4719_v42 = vld [vmem:[#allocation13 + $0xa0] sm:$0xf] }
  0x66   :  { %448 = vmatpush.bf16.msra.mxu2 %v4584_v53  ;;  %v6499_v53 = vld [vmem:[#allocation13 + $0x1a4] sm:$0xf] }
  0x67   :  { %461 = vmatpush.bf16.msra.mxu3 %v4588_v55  ;;  %v4852_v56 = vor.u32 %v6499_v53, %v4849_v54  ;;  %v6485_v53 = vld [vmem:[#allocation13 + $0x12c] sm:$0xf0]  ;;  %v6451_v54 = vld [vmem:[#allocation13 + $0x24] sm:$0xf] }
  0x6a   :  { %449 = vmatpush.bf16.msra.mxu2 %v4576_v59  ;;  %v4703_v59 = vld [vmem:[#allocation13 + $0x80] sm:$0xf] }
  0x6b   :  { %462 = vmatpush.bf16.msra.mxu3 %v4580_v61 }
  0x6e   :  { %986 = vmatpush.bf16.msrb.mxu2 %v4756_v19  ;;  %v4815_v19 = vld [vmem:[#allocation13 + $0x160] sm:$0xf] }
  0x6f   :  { %999 = vmatpush.bf16.msrb.mxu3 %v4884_v23  ;;  %v4816_v24 = vor.u32 %v6493_v20, %v4815_v19  ;;  %v4887_v19 = vld [vmem:[#allocation13 + $0x1e8] sm:$0xf] }
  0x72   :  { %987 = vmatpush.bf16.msrb.mxu2 %v4740_v36  ;;  %v4672_v36 = vor.u32 %v6457_v32, %v4671_v31  ;;  %v4889_v32 = vld [vmem:[#allocation13 + $0x1f8] sm:$0xf0] }
  0x73   :  { %1000 = vmatpush.bf16.msrb.mxu3 %v4868_v39  ;;  %v4673_v39 = vld [vmem:[#allocation13 + $0x50] sm:$0xf0] }
  0x77   :  { %1001 = vmatpush.bf16.msrb.mxu3 %v4852_v56 }
  0x7b   :  { %1002 = vmatpush.bf16.msrb.mxu3 %v4836_v12 }
  0xc2   :  { %v268_v45 = vpop.permute.xlu0 %267 }
  0xc3   :  { %vm269_vm2 = vcmp.eq.s32.totalorder %v268_v45, %v265_v44  ;;  %v483_v44 = vmul.f32 %v7488_v6, %v482_v22  ;;  %v4720_v45 = vor.u32 %v6469_v43, %v4719_v42  ;;  %v4800_v42 = vor.u32 %v6489_v37, %v4799_v35  ;;  %v4743_v35 = vld [vmem:[#allocation13 + $0xc8] sm:$0xf]  ;;  %v6474_v37 = vld [vmem:[#allocation13 + $0xd4] sm:$0xf0] }
  0xc4   :  { %v4562_v47 = vsel %vm269_vm2, 1.0, %v7332_v46  ;;  %v4847_v46 = vld [vmem:[#allocation13 + $0x1a0] sm:$0xf]  ;;  %v4676_v43 = vor.u32 %v6455_v38, %v4673_v39  ;;  %v4871_v38 = vld [vmem:[#allocation13 + $0x1c8] sm:$0xf] }
  0xc5   :  { %4572 = vmatmul.msk.f32.vlgmr.msra.gmra.mxu1 %vm312_vm1, %v4562_v47  ;;  %v6501_v47 = vld [vmem:[#allocation13 + $0x1ac] sm:$0xf0]  ;;  %v484_v61 = vadd.f32 %v7488_v6, %v483_v44  ;;  %v6487_v44 = vld [vmem:[#allocation13 + $0x144] sm:$0xf]  ;;  %v6506_v39 = vld [vmem:[#allocation13 + $0x1d4] sm:$0xf0] }
  0xc6   :  { %v4848_v51 = vor.u32 %v6501_v47, %v4847_v46  ;;  %962 = vmatpush.bf16.msrb.mxu1 %v4720_v45  ;;  %v4801_v45 = vld [vmem:[#allocation13 + $0x150] sm:$0xf0] }
  0xc7   :  { %v4804_v46 = vor.u32 %v6487_v44, %v4801_v45  ;;  %v6472_v44 = vld [vmem:[#allocation13 + $0xcc] sm:$0xf]  ;;  %v4745_v45 = vld [vmem:[#allocation13 + $0xd8] sm:$0xf0] }
  0xc8   :  { %975 = vmatpush.bf16.msrb.mxu0 %v4848_v51  ;;  %v4783_v51 = vld [vmem:[#allocation13 + $0x120] sm:$0xf] }
  0xd0   :  { %v308_v48 = vpop.f32.mrf.mxu0 }
  0xd1   :  { %v309_v63 = vadd.f32 %v6921_v62, %v308_v48  ;;  %v6467_v48 = vld [vmem:[#allocation13 + $0xa4] sm:$0xf] }
  0xd2   :  { %v4724_v55 = vor.u32 %v6467_v48, %v4721_v52 }
  0xd4   :  { %988 = vmatpush.bf16.msrb.mxu2 %v4724_v55 }
  0xd8   :  { %v310_v49 = vpop.f32.mrf.mxu0 }
 0x142   :  { %v333_v0 = vpop.f32.mrf.mxu1 }
 0x143   :  { %v334_v1 = vadd.f32 %v333_v0, %v309_v63  ;;  %v4704_v0 = vor.u32 %v6465_v60, %v4703_v59  ;;  %v6483_v60 = vld [vmem:[#allocation13 + $0x124] sm:$0xf] }
 0x145   :  { %vm336_vm3 = vcmp.gt.f32.partialorder %v334_v1, 0.0  ;;  %v337_v2 = vmul.f32 0.2, %v334_v1  ;;  %963 = vmatpush.bf16.msrb.mxu1 %v4704_v0 }
 0x147   :  { %v338_v3 = vsel %vm336_vm3, %v334_v1, %v337_v2  ;;  %v4831_v1 = vld [vmem:[#allocation13 + $0x180] sm:$0xf]  ;;  %v6497_v2 = vld [vmem:[#allocation13 + $0x18c] sm:$0xf0] }
 0x148   :  { %v339_v4 = vpack.c.bf16 %v338_v3, %v338_v3  ;;  %v6463_v3 = vld [vmem:[#allocation13 + $0x84] sm:$0xf]  ;;  %v4832_v7 = vor.u32 %v6497_v2, %v4831_v1  ;;  %v4639_v1 = vld [vmem:[#allocation13] sm:$0xf]  ;;  %v6449_v2 = vld [vmem:[#allocation13 + $0xc] sm:$0xf0] }
 0x149   :  { %v4708_v11 = vor.u32 %v6463_v3, %v4705_v8  ;;  %v4767_v3 = vld [vmem:[#allocation13 + $0x100] sm:$0xf]  ;;  %v4641_v8 = vld [vmem:[#allocation13 + $0x10] sm:$0xf0] }
 0x14a   :  { %450 = vmatmul.bf16.vlgmr.msra.gmra.mxu2 %v339_v4  ;;  %463 = vmatmul.bf16.vlgmr.msra.gmra.mxu3 %v339_v4 }
 0x14b   :  { %976 = vmatpush.bf16.msrb.mxu0 %v4832_v7  ;;  %989 = vmatpush.bf16.msrb.mxu2 %v4708_v11  ;;  %v6447_v7 = vld [vmem:[#allocation13 + $0x4] sm:$0xf] }
 0x14c   :  { %v4644_v12 = vor.u32 %v6447_v7, %v4641_v8  ;;  %v6464_v8 = vld [vmem:[#allocation13 + $0x8c] sm:$0xf] }
 0x14f   :  { %977 = vmatpush.bf16.msrb.mxu0 %v4816_v24  ;;  %v6476_v24 = vld [vmem:[#allocation13 + $0xec] sm:$0xf] }
 0x153   :  { %978 = vmatpush.bf16.msrb.mxu0 %v4800_v42  ;;  %v4744_v42 = vor.u32 %v6474_v37, %v4743_v35  ;;  %v6458_v35 = vld [vmem:[#allocation13 + $0x54] sm:$0xf0] }
 0x154   :  { %v6490_v37 = vld [vmem:[#allocation13 + $0x154] sm:$0xf0] }
 0x1cd   :  { %v451_v27 = vpop.f32.mrf.mxu2  ;;  %v464_v28 = vpop.f32.mrf.mxu3 }
 0x1ce   :  { %v7491_v33 = vadd.f32 %v451_v27, %v358_v16  ;;  %v7493_v34 = vadd.f32 %v464_v28, %v359_v17  ;;  %v6461_v16 = vld [vmem:[#allocation13 + $0x6c] sm:$0xf0]  ;;  %v7503_v17 = vsel %vm485_vm4, %v7488_v6, %v484_v61  ;;  %v4817_v27 = vld [vmem:[#allocation13 + $0x170] sm:$0xf0]  ;;  %v4692_v28 = vor.u32 %v6459_v21, %v4689_v25 }
 0x1cf   :  { %v4688_v18 = vor.u32 %v6461_v16, %v4687_v15  ;;  %v4820_v29 = vor.u32 %v6491_v26, %v4817_v27  ;;  %v4785_v61 = vld [vmem:[#allocation13 + $0x130] sm:$0xf0]  ;;  %v4759_v16 = vld [vmem:[#allocation13 + $0xe8] sm:$0xf]  ;;  %v4761_v26 = vld [vmem:[#allocation13 + $0xf8] sm:$0xf0] }
 0x1d0   :  { %v468_v40 = vrot.slane %v7491_v33, 4  ;;  %v474_v41 = vrot.slane %v7493_v34, 4  ;;  %990 = vmatpush.bf16.msrb.mxu2 %v4692_v28  ;;  %v4788_v0 = vor.u32 %v6483_v60, %v4785_v61  ;;  %v6508_v27 = vld [vmem:[#allocation13 + $0x1ec] sm:$0xf]  ;;  %v4764_v31 = vor.u32 %v6476_v24, %v4761_v26  ;;  %v4857_v61 = vld [vmem:[#allocation13 + $0x1b8] sm:$0xf0] }
 0x1d1   :  { %964 = vmatpush.bf16.msrb.mxu1 %v4688_v18  ;;  %1003 = vmatpush.bf16.msrb.mxu3 %v4820_v29  ;;  %v6478_v18 = vld [vmem:[#allocation13 + $0xf4] sm:$0xf0]  ;;  %v6500_v60 = vld [vmem:[#allocation13 + $0x1ac] sm:$0xf] }
 0x1d2   :  { %v469_v49 = vadd.f32 %v468_v40, %v7491_v33  ;;  %v475_v50 = vadd.f32 %v474_v41, %v7493_v34  ;;  %v6492_v26 = vld [vmem:[#allocation13 + $0x16c] sm:$0xf] }
 0x1d4   :  { %v470_v57 = vrot.slane %v469_v49, 2  ;;  %v476_v58 = vrot.slane %v475_v50, 2  ;;  %991 = vmatpush.bf16.msrb.mxu2 %v4676_v43  ;;  %v4872_v43 = vor.u32 %v6506_v39, %v4871_v38 }
 0x1d5   :  { %v453_v62 = vpop.f32.mrf.mxu2  ;;  %v466_v63 = vpop.f32.mrf.mxu3  ;;  %965 = vmatpush.bf16.msrb.mxu1 %v4672_v36  ;;  %1004 = vmatpush.bf16.msrb.mxu3 %v4804_v46  ;;  %v4892_v36 = vor.u32 %v6508_v27, %v4889_v32  ;;  %v6504_v46 = vld [vmem:[#allocation13 + $0x1cc] sm:$0xf]  ;;  %v4825_v27 = vld [vmem:[#allocation13 + $0x178] sm:$0xf0] }
 0x1d6   :  { %v471_v4 = vadd.f32 %v470_v57, %v469_v49  ;;  %v477_v5 = vadd.f32 %v476_v58, %v475_v50  ;;  %v4655_v49 = vld [vmem:[#allocation13 + $0x20] sm:$0xf]  ;;  %v6453_v50 = vld [vmem:[#allocation13 + $0x2c] sm:$0xf0]  ;;  %v4784_v57 = vor.u32 %v6485_v53, %v4783_v51  ;;  %v4657_v58 = vld [vmem:[#allocation13 + $0x30] sm:$0xf0]  ;;  %v4828_v32 = vor.u32 %v6492_v26, %v4825_v27 }
 0x1d7   :  { %v4656_v52 = vor.u32 %v6453_v50, %v4655_v49  ;;  %v4660_v59 = vor.u32 %v6451_v54, %v4657_v58  ;;  %v4727_v49 = vld [vmem:[#allocation13 + $0xa8] sm:$0xf]  ;;  %v6470_v50 = vld [vmem:[#allocation13 + $0xb4] sm:$0xf0]  ;;  %v537_v26 = vld [vmem:[#allocation12] sm:$0x3] }
 0x1d8   :  { %v472_v13 = vrot.slane %v471_v4, 1  ;;  %v478_v14 = vrot.slane %v477_v5, 1  ;;  %979 = vmatpush.bf16.msrb.mxu0 %v4784_v57  ;;  %v4728_v54 = vor.u32 %v6470_v50, %v4727_v49  ;;  %v6468_v57 = vld [vmem:[#allocation13 + $0xac] sm:$0xf]  ;;  %v4663_v49 = vld [vmem:[#allocation13 + $0x28] sm:$0xf] }
 0x1d9   :  { %966 = vmatpush.bf16.msrb.mxu1 %v4656_v52  ;;  %992 = vmatpush.bf16.msrb.mxu2 %v4660_v59  ;;  %v4729_v59 = vld [vmem:[#allocation13 + $0xb8] sm:$0xf0]  ;;  %v6454_v50 = vld [vmem:[#allocation13 + $0x34] sm:$0xf0] }
 0x1da   :  { %v473_v22 = vadd.f32 %v472_v13, %v471_v4  ;;  %v479_v23 = vadd.f32 %v478_v14, %v477_v5  ;;  %v4640_v4 = vor.u32 %v6449_v2, %v4639_v1  ;;  %v6481_v5 = vld [vmem:[#allocation13 + $0x10c] sm:$0xf0]  ;;  %1005 = vmatpush.bf16.msrb.mxu3 %v4788_v0  ;;  %v6479_v13 = vld [vmem:[#allocation13 + $0x104] sm:$0xf]  ;;  %v4769_v14 = vld [vmem:[#allocation13 + $0x110] sm:$0xf0]  ;;  %v4732_v0 = vor.u32 %v6468_v57, %v4729_v59 }
 0x1db   :  { %v4768_v11 = vor.u32 %v6481_v5, %v4767_v3  ;;  %v4772_v15 = vor.u32 %v6479_v13, %v4769_v14  ;;  %v4711_v1 = vld [vmem:[#allocation13 + $0x88] sm:$0xf]  ;;  %v4860_v2 = vor.u32 %v6500_v60, %v4857_v61  ;;  %v6466_v3 = vld [vmem:[#allocation13 + $0x94] sm:$0xf0]  ;;  %v4664_v57 = vor.u32 %v6454_v50, %v4663_v49  ;;  %v6484_v59 = vld [vmem:[#allocation13 + $0x12c] sm:$0xf] }
 0x1dc   :  { %v7506_v30 = vmul.f32 %v7503_v17, %v473_v22  ;;  %v7509_v6 = vmul.f32 %v7503_v17, %v479_v23  ;;  %v4760_v22 = vor.u32 %v6478_v18, %v4759_v16  ;;  %v6510_v23 = vld [vmem:[#allocation13 + $0x1f4] sm:$0xf0]  ;;  %v4712_v7 = vor.u32 %v6466_v3, %v4711_v1  ;;  %v4823_v18 = vld [vmem:[#allocation13 + $0x168] sm:$0xf]  ;;  %v4793_v1 = vld [vmem:[#allocation13 + $0x138] sm:$0xf0] }
 0x1dd   :  { %967 = vmatpush.bf16.msrb.mxu1 %v4640_v4  ;;  %980 = vmatpush.bf16.msrb.mxu0 %v4768_v11  ;;  %v4888_v25 = vor.u32 %v6510_v23, %v4887_v19  ;;  %v4839_v4 = vld [vmem:[#allocation13 + $0x188] sm:$0xf]  ;;  %v6498_v5 = vld [vmem:[#allocation13 + $0x194] sm:$0xf0] }
 0x1de   :  { %v489_v40 = vsub.f32 %v7491_v33, %v7506_v30  ;;  %v490_v41 = vsub.f32 %v7493_v34, %v7509_v6  ;;  %993 = vmatpush.bf16.msrb.mxu2 %v4644_v12  ;;  %1006 = vmatpush.bf16.msrb.mxu3 %v4772_v15  ;;  %v4840_v11 = vor.u32 %v6498_v5, %v4839_v4  ;;  %v4841_v12 = vld [vmem:[#allocation13 + $0x198] sm:$0xf0]  ;;  %v4695_v15 = vld [vmem:[#allocation13 + $0x68] sm:$0xf]  ;;  %v6462_v16 = vld [vmem:[#allocation13 + $0x74] sm:$0xf0] }
 0x1df   :  { %v4696_v19 = vor.u32 %v6462_v16, %v4695_v15  ;;  %v6480_v16 = vld [vmem:[#allocation13 + $0x10c] sm:$0xf] }
 0x1e0   :  { %v491_v47 = vmul.f32 %v489_v40, %v489_v40  ;;  %v492_v48 = vmul.f32 %v490_v41, %v490_v41 }
 0x1e1   :  { %1012 = vmatpush.bf16.msra.mxu1 %v4760_v22  ;;  %1025 = vmatpush.bf16.msra.mxu0 %v4888_v25  ;;  %v4697_v22 = vld [vmem:[#allocation13 + $0x78] sm:$0xf0] }
 0x1e2   :  { %v493_v55 = vrot.slane %v491_v47, 4  ;;  %v499_v56 = vrot.slane %v492_v48, 4  ;;  %1038 = vmatpush.bf16.msra.mxu2 %v4764_v31  ;;  %1051 = vmatpush.bf16.msra.mxu3 %v4892_v36  ;;  %v4807_v36 = vld [vmem:[#allocation13 + $0x148] sm:$0xf] }
 0x1e4   :  { %v494_v62 = vadd.f32 %v493_v55, %v491_v47  ;;  %v500_v63 = vadd.f32 %v499_v56, %v492_v48  ;;  %v4748_v47 = vor.u32 %v6472_v44, %v4745_v45  ;;  %v4873_v48 = vld [vmem:[#allocation13 + $0x1d8] sm:$0xf0]  ;;  %v4855_v55 = vld [vmem:[#allocation13 + $0x1a8] sm:$0xf]  ;;  %v6502_v56 = vld [vmem:[#allocation13 + $0x1b4] sm:$0xf0]  ;;  %v4808_v44 = vor.u32 %v6490_v37, %v4807_v36 }
 0x1e5   :  { %1013 = vmatpush.bf16.msra.mxu1 %v4744_v42  ;;  %v4876_v53 = vor.u32 %v6504_v46, %v4873_v48  ;;  %1026 = vmatpush.bf16.msra.mxu0 %v4872_v43  ;;  %v4856_v58 = vor.u32 %v6502_v56, %v4855_v55  ;;  %v529_v43 = vld [vmem:[#allocation10] sm:$0x3]  ;;  %v6488_v45 = vld [vmem:[#allocation13 + $0x14c] sm:$0xf] }
 0x1e6   :  { %v495_v9 = vrot.slane %v494_v62, 2  ;;  %v501_v10 = vrot.slane %v500_v63, 2  ;;  %1039 = vmatpush.bf16.msra.mxu2 %v4748_v47  ;;  %v4809_v46 = vld [vmem:[#allocation13 + $0x158] sm:$0xf0]  ;;  %v6452_v55 = vld [vmem:[#allocation13 + $0x2c] sm:$0xf] }
 0x1e7   :  { %1052 = vmatpush.bf16.msra.mxu3 %v4876_v53  ;;  %v4812_v53 = vor.u32 %v6488_v45, %v4809_v46  ;;  %v531_v61 = vperm.slane %v529_v43, 0  ;;  %v532_v4 = vperm.slane %v529_v43, 1 }
 0x1e8   :  { %v496_v20 = vadd.f32 %v495_v9, %v494_v62  ;;  %v502_v21 = vadd.f32 %v501_v10, %v500_v63  ;;  %v4713_v9 = vld [vmem:[#allocation13 + $0x98] sm:$0xf0]  ;;  %v6496_v10 = vld [vmem:[#allocation13 + $0x18c] sm:$0xf] }
 0x1e9   :  { %1014 = vmatpush.bf16.msra.mxu1 %v4728_v54  ;;  %1027 = vmatpush.bf16.msra.mxu0 %v4856_v58  ;;  %v4716_v13 = vor.u32 %v6464_v8, %v4713_v9  ;;  %v4844_v14 = vor.u32 %v6496_v10, %v4841_v12  ;;  %v6486_v54 = vld [vmem:[#allocation13 + $0x134] sm:$0xf0]  ;;  %v4665_v58 = vld [vmem:[#allocation13 + $0x38] sm:$0xf0]  ;;  %v4775_v8 = vld [vmem:[#allocation13 + $0x108] sm:$0xf]  ;;  %v4796_v10 = vor.u32 %v6484_v59, %v4793_v1 }
 0x1ea   :  { %v497_v28 = vrot.slane %v496_v20, 1  ;;  %v503_v29 = vrot.slane %v502_v21, 1  ;;  %1040 = vmatpush.bf16.msra.mxu2 %v4732_v0  ;;  %v4668_v5 = vor.u32 %v6452_v55, %v4665_v58  ;;  %v6448_v12 = vld [vmem:[#allocation13 + $0xc] sm:$0xf] }
 0x1eb   :  { %1053 = vmatpush.bf16.msra.mxu3 %v4860_v2  ;;  %v4647_v2 = vld [vmem:[#allocation13 + $0x8] sm:$0xf]  ;;  %v6571_v58 = vld [vmem:[#allocation19 + $0x1dc] sm:$0xf0] }
 0x1ec   :  { %v498_v40 = vadd.f32 %v497_v28, %v496_v20  ;;  %v504_v41 = vadd.f32 %v503_v29, %v502_v21  ;;  %v6494_v20 = vld [vmem:[#allocation13 + $0x174] sm:$0xf0]  ;;  %v6460_v21 = vld [vmem:[#allocation13 + $0x6c] sm:$0xf]  ;;  %v4679_v28 = vld [vmem:[#allocation13 + $0x48] sm:$0xf] }
 0x1ed   :  { %1015 = vmatpush.bf16.msra.mxu1 %v4712_v7  ;;  %1028 = vmatpush.bf16.msra.mxu0 %v4840_v11  ;;  %v4824_v24 = vor.u32 %v6494_v20, %v4823_v18  ;;  %v4700_v25 = vor.u32 %v6460_v21, %v4697_v22  ;;  %v4680_v39 = vor.u32 %v6458_v35, %v4679_v28  ;;  %v6450_v7 = vld [vmem:[#allocation13 + $0x14] sm:$0xf0]  ;;  %v4777_v18 = vld [vmem:[#allocation13 + $0x118] sm:$0xf0]  ;;  %v5375_v59 = vld [vmem:[#allocation19 + $0x3c0] sm:$0xf] }
 0x1ee   :  { %v505_v51 = vmul.f32 %v498_v40, %v7503_v17  ;;  %v506_v52 = vmul.f32 %v504_v41, %v7503_v17  ;;  %1041 = vmatpush.bf16.msra.mxu2 %v4716_v13  ;;  %v6456_v40 = vld [vmem:[#allocation13 + $0x4c] sm:$0xf]  ;;  %v4681_v41 = vld [vmem:[#allocation13 + $0x58] sm:$0xf0]  ;;  %v6482_v11 = vld [vmem:[#allocation13 + $0x114] sm:$0xf0]  ;;  %v4648_v15 = vor.u32 %v6450_v7, %v4647_v2 }
 0x1ef   :  { %1054 = vmatpush.bf16.msra.mxu3 %v4844_v14  ;;  %v4684_v48 = vor.u32 %v6456_v40, %v4681_v41  ;;  %v4649_v13 = vld [vmem:[#allocation13 + $0x18] sm:$0xf0]  ;;  %v5631_v1 = vld [vmem:[#allocation19 + $0x5c0] sm:$0xf] }
 0x1f0   :  { %v7517_v62 = vadd.f32 0.8, %v505_v51  ;;  %v7519_v63 = vadd.f32 0.8, %v506_v52  ;;  %v4791_v51 = vld [vmem:[#allocation13 + $0x128] sm:$0xf]  ;;  %v4652_v21 = vor.u32 %v6448_v12, %v4649_v13 }
 0x1f1   :  { %1016 = vmatpush.bf16.msra.mxu1 %v4696_v19  ;;  %1029 = vmatpush.bf16.msra.mxu0 %v4824_v24  ;;  %v4792_v0 = vor.u32 %v6486_v54, %v4791_v51  ;;  %v6763_v7 = vld [vmem:[#allocation19 + $0x7dc] sm:$0xf0] }
 0x1f2   :  { %6924 = vrsqrt.f32 %v7517_v62  ;;  %1042 = vmatpush.bf16.msra.mxu2 %v4700_v25  ;;  %vm515_vm7 = vweird.f32 %v7517_v62  ;;  %vm525_vm9 = vweird.f32 %v7519_v63  ;;  %v4780_v25 = vor.u32 %v6480_v16, %v4777_v18  ;;  %v5087_v12 = vld [vmem:[#allocation19 + $0x180] sm:$0xf] }
 0x1f3   :  { %6926 = vrsqrt.f32 %v7519_v63  ;;  %1055 = vmatpush.bf16.msra.mxu3 %v4828_v32  ;;  %v6563_v13 = vld [vmem:[#allocation19 + $0x19c] sm:$0xf0] }
 0x1f4   :  { %v5088_v16 = vor.u32 %v6563_v13, %v5087_v12  ;;  %v5343_v18 = vld [vmem:[#allocation19 + $0x380] sm:$0xf] }
 0x1f5   :  { %1017 = vmatpush.bf16.msra.mxu1 %v4680_v39  ;;  %1030 = vmatpush.bf16.msra.mxu0 %v4808_v44 }
 0x1f6   :  { %1043 = vmatpush.bf16.msra.mxu2 %v4684_v48 }
 0x1f7   :  { %1056 = vmatpush.bf16.msra.mxu3 %v4812_v53 }
 0x1f8   :  { %v7523_v23 = vpop.eup %6924 }
 0x1f9   :  { %v7525_v29 = vpop.eup %6926  ;;  %v510_v31 = vmul.f32 %v7523_v23, %v7517_v62  ;;  %vm516_vm5 = vweird.f32 %v7523_v23  ;;  %1018 = vmatpush.bf16.msra.mxu1 %v4664_v57  ;;  %1031 = vmatpush.bf16.msra.mxu0 %v4792_v0  ;;  %v4776_v62 = vor.u32 %v6482_v11, %v4775_v8  ;;  %v5119_v57 = vld [vmem:[#allocation19 + $0x1c0] sm:$0xf] }
 0x1fa   :  { %v520_v38 = vmul.f32 %v7525_v29, %v7519_v63  ;;  %vm526_vm6 = vweird.f32 %v7525_v29  ;;  %vm517_vm8 = vmor %vm515_vm7, %vm516_vm5  ;;  %1044 = vmatpush.bf16.msra.mxu2 %v4668_v5  ;;  %v6635_v0 = vld [vmem:[#allocation19 + $0x3dc] sm:$0xf0] }
 0x1fb   :  { %v511_v42 = vmul.f32 %v7523_v23, %v510_v31  ;;  %vm527_vm10 = vmor %vm525_vm9, %vm526_vm6  ;;  %1057 = vmatpush.bf16.msra.mxu3 %v4796_v10  ;;  %v5887_v5 = vld [vmem:[#allocation19 + $0x7c0] sm:$0xf] }
 0x1fc   :  { %v521_v47 = vmul.f32 %v7525_v29, %v520_v38  ;;  %v5888_v10 = vor.u32 %v6763_v7, %v5887_v5 }
 0x1fd   :  { %v512_v52 = vmul.f32 0.5, %v511_v42  ;;  %1019 = vmatpush.bf16.msra.mxu1 %v4648_v15  ;;  %1032 = vmatpush.bf16.msra.mxu0 %v4776_v62 }
 0x1fe   :  { %v522_v56 = vmul.f32 0.5, %v521_v47  ;;  %1045 = vmatpush.bf16.msra.mxu2 %v4652_v21  ;;  %v5599_v21 = vld [vmem:[#allocation19 + $0x580] sm:$0xf] }
 0x1ff   :  { %v513_v60 = vsub.f32 1.5, %v512_v52  ;;  %1058 = vmatpush.bf16.msra.mxu3 %v4780_v25 }
 0x200   :  { %v523_v3 = vsub.f32 1.5, %v522_v56 }
 0x201   :  { %v514_v9 = vmul.f32 %v7523_v23, %v513_v60 }
 0x202   :  { %v524_v14 = vmul.f32 %v7525_v29, %v523_v3  ;;  %v5376_v3 = vor.u32 %v6635_v0, %v5375_v59  ;;  %v6675_v0 = vld [vmem:[#allocation19 + $0x51c] sm:$0xf0] }
 0x203   :  { %v518_v19 = vsel %vm517_vm8, %v7523_v23, %v514_v9 }
 0x204   :  { %v528_v20 = vsel %vm527_vm10, %v7525_v29, %v524_v14  ;;  %v535_v22 = vmul.f32 %v531_v61, %v518_v19  ;;  %v5120_v61 = vor.u32 %v6571_v58, %v5119_v57  ;;  %v6627_v19 = vld [vmem:[#allocation19 + $0x39c] sm:$0xf0]  ;;  %vm1199_vm10 = vcmask 1042434  }
 0x205   :  { %v536_v24 = vmul.f32 %v532_v4, %v528_v20  ;;  %v6699_v4 = vld [vmem:[#allocation19 + $0x5dc] sm:$0xf0]  ;;  %v5344_v20 = vor.u32 %v6627_v19, %v5343_v18 }
 0x206   :  { %v538_v23 = vmul.f32 %v535_v22, %v7506_v30  ;;  %v547_v28 = vperm.slane %v535_v22, 0  ;;  %v5632_v9 = vor.u32 %v6699_v4, %v5631_v1  ;;  %v6691_v22 = vld [vmem:[#allocation19 + $0x59c] sm:$0xf0] }
 0x207   :  { %v539_v63 = vmul.f32 %v536_v24, %v7509_v6  ;;  %v548_v31 = vperm.slane %v536_v24, 0  ;;  %v5855_v24 = vld [vmem:[#allocation19 + $0x780] sm:$0xf] }
 0x208   :  { %v549_v35 = vmul.f32 %v547_v28, %v7491_v33  ;;  %v7550_v33 = vld [vmem:[#allocation15] sm:$0xf]  ;;  %v5279_v57 = vld [vmem:[#allocation19 + $0x300] sm:$0xf] }
 0x209   :  { %v542_v27 = vrot.slane %v539_v63, 7  ;;  %v550_v36 = vmul.f32 %v548_v31, %v7493_v34  ;;  %v632_v34 = vperm.slane %v7550_v33, 0  ;;  %v633_v49 = vperm.slane %v7550_v33, 1  ;;  %v6611_v58 = vld [vmem:[#allocation19 + $0x31c] sm:$0xf0] }
 0x20a   :  { %v634_v15 = vperm.slane %v7550_v33, 2  ;;  %v5791_v1 = vld [vmem:[#allocation19 + $0x700] sm:$0xf] }
 0x20b   :  { %v544_v29 = vsel %vm543_vm11, %v538_v23, %v542_v27  ;;  %v6755_v27 = vld [vmem:[#allocation19 + $0x79c] sm:$0xf0] }
 0x20c   :  { %v546_v32 = vsub.f32 %v537_v26, %v544_v29  ;;  %v5600_v26 = vor.u32 %v6691_v22, %v5599_v21 }
 0x20e   :  { %v553_v37 = vperm.slane %v546_v32, 1  ;;  %v552_v38 = vperm.slane %v546_v32, 0  ;;  %v5856_v32 = vor.u32 %v6755_v27, %v5855_v24 }
 0x210   :  { %v557_v6 = vadd.f32 %v553_v37, %v550_v36  ;;  %v556_v39 = vadd.f32 %v552_v38, %v549_v35  ;;  %v5055_v35 = vld [vmem:[#allocation19 + $0x140] sm:$0xf] }
 0x211   :  { %v6555_v36 = vld [vmem:[#allocation19 + $0x15c] sm:$0xf0] }
 0x212   :  { %vm558_vm12 = vcmp.gt.f32.partialorder %v556_v39, 0.0  ;;  %v560_v40 = vmul.f32 0.2, %v556_v39  ;;  %vm559_vm13 = vcmp.gt.f32.partialorder %v557_v6, 0.0  ;;  %v561_v30 = vmul.f32 0.2, %v557_v6 }
 0x214   :  { %v562_v41 = vsel %vm558_vm12, %v556_v39, %v560_v40  ;;  %v563_v42 = vsel %vm559_vm13, %v557_v6, %v561_v30  ;;  %v5056_v6 = vor.u32 %v6555_v36, %v5055_v35  ;;  %v5311_v39 = vld [vmem:[#allocation19 + $0x340] sm:$0xf]  ;;  %vm1201_vm12 = vcmask 1041408  }
 0x215   :  { %v564_v43 = vpack.c.bf16 %v562_v41, %v562_v41  ;;  %v565_v44 = vpack.c.bf16 %v563_v42, %v563_v42  ;;  %v6619_v40 = vld [vmem:[#allocation19 + $0x35c] sm:$0xf0] }
 0x216   :  { %v5567_v30 = vld [vmem:[#allocation19 + $0x540] sm:$0xf]  ;;  %v5312_v42 = vor.u32 %v6619_v40, %v5311_v39 }
 0x217   :  { %968 = vmatmul.bf16.vlgmr.msrb.gmra.mxu1 %v564_v43  ;;  %981 = vmatmul.bf16.vlgmr.msrb.gmra.mxu0 %v565_v44  ;;  %v4959_v36 = vld [vmem:[#allocation19 + $0x80] sm:$0xf] }
 0x218   :  { %994 = vmatmul.bf16.vlgmr.msrb.gmra.mxu2 %v564_v43  ;;  %1007 = vmatmul.bf16.vlgmr.msrb.gmra.mxu3 %v565_v44 }
 0x219   :  { %2796 = vmatpush.bf16.msrb.mxu1 %v5120_v61  ;;  %2809 = vmatpush.bf16.msrb.mxu0 %v5376_v3  ;;  %v5535_v61 = vld [vmem:[#allocation19 + $0x500] sm:$0xf] }
 0x21a   :  { %2822 = vmatpush.bf16.msrb.mxu2 %v5632_v9  ;;  %2835 = vmatpush.bf16.msrb.mxu3 %v5888_v10  ;;  %v5536_v7 = vor.u32 %v6675_v0, %v5535_v61 }
 0x21d   :  { %2797 = vmatpush.bf16.msrb.mxu1 %v5088_v16  ;;  %2810 = vmatpush.bf16.msrb.mxu0 %v5344_v20  ;;  %v6603_v20 = vld [vmem:[#allocation19 + $0x2dc] sm:$0xf0] }
 0x21e   :  { %2823 = vmatpush.bf16.msrb.mxu2 %v5600_v26  ;;  %2836 = vmatpush.bf16.msrb.mxu3 %v5856_v32 }
 0x221   :  { %2798 = vmatpush.bf16.msrb.mxu1 %v5056_v6  ;;  %2811 = vmatpush.bf16.msrb.mxu0 %v5312_v42 }
 0x227   :  { %1020 = vmatmul.bf16.vlgmr.msra.gmra.mxu1 %v564_v43  ;;  %1033 = vmatmul.bf16.vlgmr.msra.gmra.mxu0 %v565_v44 }
 0x228   :  { %1046 = vmatmul.bf16.vlgmr.msra.gmra.mxu2 %v564_v43  ;;  %1059 = vmatmul.bf16.vlgmr.msra.gmra.mxu3 %v565_v44  ;;  %v6683_v43 = vld [vmem:[#allocation19 + $0x55c] sm:$0xf0] }
 0x229   :  { %v5823_v44 = vld [vmem:[#allocation19 + $0x740] sm:$0xf] }
 0x294   :  { %v969_v45 = vpop.f32.mrf.mxu1  ;;  %v982_v46 = vpop.f32.mrf.mxu0 }
 0x295   :  { %v970_v47 = vadd.f32 %v969_v45, %v632_v34  ;;  %v6747_v34 = vld [vmem:[#allocation19 + $0x75c] sm:$0xf0] }
 0x297   :  { %v7553_v48 = vadd.f32 %v982_v46, %v970_v47  ;;  %v5568_v47 = vor.u32 %v6683_v43, %v5567_v30  ;;  %v5215_v30 = vld [vmem:[#allocation19 + $0x280] sm:$0xf] }
 0x299   :  { %v1064_v50 = vrot.slane %v7553_v48, 4  ;;  %2824 = vmatpush.bf16.msrb.mxu2 %v5568_v47 }
 0x29b   :  { %v1065_v51 = vadd.f32 %v1064_v50, %v7553_v48  ;;  %v995_v52 = vpop.f32.mrf.mxu2  ;;  %v1008_v53 = vpop.f32.mrf.mxu3 }
 0x29c   :  { %v996_v54 = vadd.f32 %v995_v52, %v633_v49  ;;  %v971_v55 = vpop.f32.mrf.mxu1  ;;  %v984_v56 = vpop.f32.mrf.mxu0  ;;  %v5824_v49 = vor.u32 %v6747_v34, %v5823_v44  ;;  %v5023_v52 = vld [vmem:[#allocation19 + $0x100] sm:$0xf] }
 0x29d   :  { %v1066_v60 = vrot.slane %v1065_v51, 2  ;;  %2825 = vmatpush.bf16.msrb.mxu2 %v5536_v7  ;;  %v5471_v34 = vld [vmem:[#allocation19 + $0x480] sm:$0xf] }
 0x29e   :  { %v7558_v2 = vadd.f32 %v1008_v53, %v996_v54  ;;  %v6547_v53 = vld [vmem:[#allocation19 + $0x11c] sm:$0xf0]  ;;  %2837 = vmatpush.bf16.msrb.mxu3 %v5824_v49 }
 0x29f   :  { %v1067_v8 = vadd.f32 %v1066_v60, %v1065_v51  ;;  %v635_v51 = vperm.slane %v7550_v33, 3  ;;  %v5024_v56 = vor.u32 %v6547_v53, %v5023_v52  ;;  %v5280_v60 = vor.u32 %v6611_v58, %v5279_v57  ;;  %v5727_v53 = vld [vmem:[#allocation19 + $0x680] sm:$0xf] }
 0x2a0   :  { %v1070_v11 = vrot.slane %v7558_v2, 4  ;;  %v4927_v58 = vld [vmem:[#allocation19 + $0x40] sm:$0xf] }
 0x2a1   :  { %v1068_v14 = vrot.slane %v1067_v8, 1  ;;  %2799 = vmatpush.bf16.msrb.mxu1 %v5024_v56  ;;  %2812 = vmatpush.bf16.msrb.mxu0 %v5280_v60 }
 0x2a2   :  { %v1071_v62 = vadd.f32 %v1070_v11, %v7558_v2 }
 0x2a3   :  { %v1069_v25 = vadd.f32 %v1068_v14, %v1067_v8  ;;  %v997_v63 = vpop.f32.mrf.mxu2  ;;  %v1010_v23 = vpop.f32.mrf.mxu3  ;;  %v6739_v8 = vld [vmem:[#allocation19 + $0x71c] sm:$0xf0] }
 0x2a4   :  { %v1072_v28 = vrot.slane %v1071_v62, 2  ;;  %v1021_v31 = vpop.f32.mrf.mxu1  ;;  %v1034_v29 = vpop.f32.mrf.mxu0  ;;  %v5792_v13 = vor.u32 %v6739_v8, %v5791_v1  ;;  %v4991_v14 = vld [vmem:[#allocation19 + $0xc0] sm:$0xf] }
 0x2a5   :  { %v7564_v37 = vmul.f32 %v1069_v25, %v7503_v17  ;;  %v1022_v38 = vadd.f32 %v1021_v31, %v634_v15  ;;  %v6539_v15 = vld [vmem:[#allocation19 + $0xdc] sm:$0xf0] }
 0x2a6   :  { %v1073_v41 = vadd.f32 %v1072_v28, %v1071_v62  ;;  %v4992_v19 = vor.u32 %v6539_v15, %v4991_v14  ;;  %v5247_v62 = vld [vmem:[#allocation19 + $0x2c0] sm:$0xf]  ;;  %2838 = vmatpush.bf16.msrb.mxu3 %v5792_v13 }
 0x2a7   :  { %v1092_v45 = vsub.f32 %v7553_v48, %v7564_v37  ;;  %v7568_v46 = vadd.f32 %v1034_v29, %v1022_v38  ;;  %v5248_v24 = vor.u32 %v6603_v20, %v5247_v62  ;;  %v5503_v25 = vld [vmem:[#allocation19 + $0x4c0] sm:$0xf] }
 0x2a8   :  { %v1074_v50 = vrot.slane %v1073_v41, 1  ;;  %v6667_v63 = vld [vmem:[#allocation19 + $0x4dc] sm:$0xf0]  ;;  %2800 = vmatpush.bf16.msrb.mxu1 %v4992_v19 }
 0x2a9   :  { %v1096_v54 = vmul.f32 %v1092_v45, %v1092_v45  ;;  %v1076_v55 = vrot.slane %v7568_v46, 4  ;;  %v5759_v23 = vld [vmem:[#allocation19 + $0x6c0] sm:$0xf]  ;;  %v5504_v28 = vor.u32 %v6667_v63, %v5503_v25  ;;  %2813 = vmatpush.bf16.msrb.mxu0 %v5248_v24 }
 0x2aa   :  { %v1075_v59 = vadd.f32 %v1074_v50, %v1073_v41  ;;  %v6731_v31 = vld [vmem:[#allocation19 + $0x6dc] sm:$0xf0] }
 0x2ab   :  { %v1100_v3 = vrot.slane %v1096_v54, 4  ;;  %v1077_v4 = vadd.f32 %v1076_v55, %v7568_v46  ;;  %v1047_v33 = vpop.f32.mrf.mxu2  ;;  %v1060_v5 = vpop.f32.mrf.mxu3  ;;  %v5760_v35 = vor.u32 %v6731_v31, %v5759_v23  ;;  %v6531_v38 = vld [vmem:[#allocation19 + $0x9c] sm:$0xf0]  ;;  %2826 = vmatpush.bf16.msrb.mxu2 %v5504_v28 }
 0x2ac   :  { %v7574_v9 = vmul.f32 %v1075_v59, %v7503_v17  ;;  %v1048_v10 = vadd.f32 %v1047_v33, %v635_v51  ;;  %v1023_v11 = vpop.f32.mrf.mxu1  ;;  %v1036_v12 = vpop.f32.mrf.mxu0  ;;  %v4960_v40 = vor.u32 %v6531_v38, %v4959_v36  ;;  %v6595_v41 = vld [vmem:[#allocation19 + $0x29c] sm:$0xf0] }
 0x2ad   :  { %v1101_v16 = vadd.f32 %v1100_v3, %v1096_v54  ;;  %v1078_v18 = vrot.slane %v1077_v4, 2  ;;  %2839 = vmatpush.bf16.msrb.mxu3 %v5760_v35  ;;  %v5216_v44 = vor.u32 %v6595_v41, %v5215_v30  ;;  %v6659_v45 = vld [vmem:[#allocation19 + $0x49c] sm:$0xf0]  ;;  %v5121_v30 = vld [vmem:[#allocation19 + $0x1e0] sm:$0xf0] }
 0x2ae   :  { %v1093_v21 = vsub.f32 %v7558_v2, %v7574_v9  ;;  %v7578_v22 = vadd.f32 %v1060_v5, %v1048_v10  ;;  %2801 = vmatpush.bf16.msrb.mxu1 %v4960_v40  ;;  %v5472_v52 = vor.u32 %v6659_v45, %v5471_v34  ;;  %v6723_v54 = vld [vmem:[#allocation19 + $0x69c] sm:$0xf0]  ;;  %v6567_v40 = vld [vmem:[#allocation19 + $0x1c4] sm:$0xf] }
 0x2af   :  { %v1102_v26 = vrot.slane %v1101_v16, 2  ;;  %v1079_v27 = vadd.f32 %v1078_v18, %v1077_v4  ;;  %2814 = vmatpush.bf16.msrb.mxu0 %v5216_v44  ;;  %v5728_v57 = vor.u32 %v6723_v54, %v5727_v53  ;;  %v6523_v59 = vld [vmem:[#allocation19 + $0x5c] sm:$0xf0]  ;;  %v5377_v44 = vld [vmem:[#allocation19 + $0x3e0] sm:$0xf0] }
 0x2b0   :  { %v1097_v29 = vmul.f32 %v1093_v21, %v1093_v21  ;;  %v1082_v32 = vrot.slane %v7578_v22, 4  ;;  %2827 = vmatpush.bf16.msrb.mxu2 %v5472_v52  ;;  %v4928_v0 = vor.u32 %v6523_v59, %v4927_v58  ;;  %v5183_v1 = vld [vmem:[#allocation19 + $0x240] sm:$0xf]  ;;  %v6695_v34 = vld [vmem:[#allocation19 + $0x5c4] sm:$0xf] }
 0x2b1   :  { %v1103_v6 = vadd.f32 %v1102_v26, %v1101_v16  ;;  %v1080_v39 = vrot.slane %v1079_v27, 1  ;;  %v6587_v3 = vld [vmem:[#allocation19 + $0x25c] sm:$0xf0]  ;;  %2840 = vmatpush.bf16.msrb.mxu3 %v5728_v57  ;;  %v5889_v52 = vld [vmem:[#allocation19 + $0x7e0] sm:$0xf0] }
 0x2b2   :  { %v1106_v42 = vrot.slane %v1097_v29, 4  ;;  %v1083_v43 = vadd.f32 %v1082_v32, %v7578_v22  ;;  %v5439_v4 = vld [vmem:[#allocation19 + $0x440] sm:$0xf]  ;;  %v5184_v7 = vor.u32 %v6587_v3, %v5183_v1  ;;  %2802 = vmatpush.bf16.msrb.mxu1 %v4928_v0  ;;  %v5089_v57 = vld [vmem:[#allocation19 + $0x1a0] sm:$0xf0] }
 0x2b3   :  { %v1104_v47 = vrot.slane %v1103_v6, 1  ;;  %v1081_v49 = vadd.f32 %v1080_v39, %v1079_v27  ;;  %v1049_v50 = vpop.f32.mrf.mxu2  ;;  %v1062_v51 = vpop.f32.mrf.mxu3  ;;  %v6651_v8 = vld [vmem:[#allocation19 + $0x45c] sm:$0xf0]  ;;  %v6623_v0 = vld [vmem:[#allocation19 + $0x384] sm:$0xf] }
 0x2b4   :  { %v1107_v55 = vadd.f32 %v1106_v42, %v1097_v29  ;;  %v1084_v56 = vrot.slane %v1083_v43, 2  ;;  %v5695_v10 = vld [vmem:[#allocation19 + $0x640] sm:$0xf]  ;;  %v5440_v12 = vor.u32 %v6651_v8, %v5439_v4  ;;  %2815 = vmatpush.bf16.msrb.mxu0 %v5184_v7  ;;  %v5124_v42 = vor.u32 %v6567_v40, %v5121_v30  ;;  %v5633_v50 = vld [vmem:[#allocation19 + $0x5e0] sm:$0xf0] }
 0x2b5   :  { %v1105_v60 = vadd.f32 %v1104_v47, %v1103_v6  ;;  %v7583_v61 = vmul.f32 %v1081_v49, %v7503_v17  ;;  %v6715_v13 = vld [vmem:[#allocation19 + $0x65c] sm:$0xf0]  ;;  %v6759_v51 = vld [vmem:[#allocation19 + $0x7c4] sm:$0xf]  ;;  %v5636_v54 = vor.u32 %v6695_v34, %v5633_v50 }
 0x2b6   :  { %v1108_v33 = vrot.slane %v1107_v55, 2  ;;  %v1085_v5 = vadd.f32 %v1084_v56, %v1083_v43  ;;  %v5696_v18 = vor.u32 %v6715_v13, %v5695_v10  ;;  %v4895_v19 = vld [vmem:[#allocation19] sm:$0xf]  ;;  %2828 = vmatpush.bf16.msrb.mxu2 %v5440_v12  ;;  %v6631_v43 = vld [vmem:[#allocation19 + $0x3c4] sm:$0xf] }
 0x2b7   :  { %v1094_v11 = vsub.f32 %v7568_v46, %v7583_v61  ;;  %v1124_v14 = vmul.f32 %v1105_v60, %v7503_v17  ;;  %v6515_v62 = vld [vmem:[#allocation19 + $0x1c] sm:$0xf0]  ;;  %v5380_v49 = vor.u32 %v6631_v43, %v5377_v44  ;;  %v6559_v56 = vld [vmem:[#allocation19 + $0x184] sm:$0xf] }
 0x2b8   :  { %v1109_v15 = vadd.f32 %v1108_v33, %v1107_v55  ;;  %v1086_v16 = vrot.slane %v1085_v5, 1  ;;  %v4896_v21 = vor.u32 %v6515_v62, %v4895_v19  ;;  %v5151_v24 = vld [vmem:[#allocation19 + $0x200] sm:$0xf]  ;;  %2841 = vmatpush.bf16.msrb.mxu3 %v5696_v18  ;;  %v5892_v55 = vor.u32 %v6759_v51, %v5889_v52  ;;  %v5345_v1 = vld [vmem:[#allocation19 + $0x3a0] sm:$0xf0] }
 0x2b9   :  { %v1098_v20 = vmul.f32 %v1094_v11, %v1094_v11  ;;  %v6579_v25 = vld [vmem:[#allocation19 + $0x21c] sm:$0xf0]  ;;  %v7588_v36 = vadd.f32 0.8, %v1124_v14  ;;  %v5092_v60 = vor.u32 %v6559_v56, %v5089_v57  ;;  %v5348_v4 = vor.u32 %v6623_v0, %v5345_v1  ;;  %v6687_v33 = vld [vmem:[#allocation19 + $0x584] sm:$0xf] }
 0x2ba   :  { %v1110_v63 = vrot.slane %v1109_v15, 1  ;;  %v1087_v23 = vadd.f32 %v1086_v16, %v1085_v5  ;;  %v5152_v26 = vor.u32 %v6579_v25, %v5151_v24  ;;  %v5407_v27 = vld [vmem:[#allocation19 + $0x400] sm:$0xf]  ;;  %2803 = vmatpush.bf16.msrb.mxu1 %v4896_v21  ;;  %v5601_v5 = vld [vmem:[#allocation19 + $0x5a0] sm:$0xf0] }
 0x2bb   :  { %v6643_v28 = vld [vmem:[#allocation19 + $0x41c] sm:$0xf0]  ;;  %v1112_v31 = vrot.slane %v1098_v20, 4  ;;  %v6751_v7 = vld [vmem:[#allocation19 + $0x784] sm:$0xf]  ;;  %v5604_v14 = vor.u32 %v6687_v33, %v5601_v5  ;;  %vm1138_vm5 = vweird.f32 %v7588_v36 }
 0x2bc   :  { %v5408_v29 = vor.u32 %v6643_v28, %v5407_v27  ;;  %v5663_v32 = vld [vmem:[#allocation19 + $0x600] sm:$0xf]  ;;  %v1111_v38 = vadd.f32 %v1110_v63, %v1109_v15  ;;  %v7591_v6 = vmul.f32 %v1087_v23, %v7503_v17  ;;  %2816 = vmatpush.bf16.msrb.mxu0 %v5152_v26  ;;  %v5857_v8 = vld [vmem:[#allocation19 + $0x7a0] sm:$0xf0] }
 0x2bd   :  { %v6707_v35 = vld [vmem:[#allocation19 + $0x61c] sm:$0xf0]  ;;  %v1113_v41 = vadd.f32 %v1112_v31, %v1098_v20  ;;  %v6551_v10 = vld [vmem:[#allocation19 + $0x144] sm:$0xf]  ;;  %v5860_v16 = vor.u32 %v6751_v7, %v5857_v8 }
 0x2be   :  { %v5664_v39 = vor.u32 %v6707_v35, %v5663_v32  ;;  %2829 = vmatpush.bf16.msrb.mxu2 %v5408_v29  ;;  %v1125_v45 = vmul.f32 %v1111_v38, %v7503_v17  ;;  %v1095_v47 = vsub.f32 %v7578_v22, %v7591_v6  ;;  %2848 = vmatpush.bf16.msra.mxu1 %v5124_v42  ;;  %v5057_v11 = vld [vmem:[#allocation19 + $0x160] sm:$0xf0] }
 0x2bf   :  { %v1114_v53 = vrot.slane %v1113_v41, 2  ;;  %v6615_v15 = vld [vmem:[#allocation19 + $0x344] sm:$0xf]  ;;  %v5060_v18 = vor.u32 %v6551_v10, %v5057_v11 }
 0x2c0   :  { %2842 = vmatpush.bf16.msrb.mxu3 %v5664_v39  ;;  %v7596_v58 = vadd.f32 0.8, %v1125_v45  ;;  %v1099_v59 = vmul.f32 %v1095_v47, %v1095_v47  ;;  %2861 = vmatpush.bf16.msra.mxu0 %v5380_v49  ;;  %v5313_v19 = vld [vmem:[#allocation19 + $0x360] sm:$0xf0] }
 0x2c1   :  { %v1115_v3 = vadd.f32 %v1114_v53, %v1113_v41  ;;  %v6679_v62 = vld [vmem:[#allocation19 + $0x544] sm:$0xf]  ;;  %v5316_v25 = vor.u32 %v6615_v15, %v5313_v19 }
 0x2c2   :  { %2874 = vmatpush.bf16.msra.mxu2 %v5636_v54  ;;  %6928 = vrsqrt.f32 %v7596_v58  ;;  %v1118_v13 = vrot.slane %v1099_v59, 4  ;;  %2849 = vmatpush.bf16.msra.mxu1 %v5092_v60  ;;  %v5569_v20 = vld [vmem:[#allocation19 + $0x560] sm:$0xf0]  ;;  %vm1148_vm15 = vweird.f32 %v7596_v58 }
 0x2c3   :  { %6930 = vrsqrt.f32 %v7588_v36  ;;  %v1116_v12 = vrot.slane %v1115_v3, 1  ;;  %v5572_v63 = vor.u32 %v6679_v62, %v5569_v20  ;;  %v6743_v23 = vld [vmem:[#allocation19 + $0x744] sm:$0xf] }
 0x2c4   :  { %2887 = vmatpush.bf16.msra.mxu3 %v5892_v55  ;;  %2862 = vmatpush.bf16.msra.mxu0 %v5348_v4  ;;  %v1119_v24 = vadd.f32 %v1118_v13, %v1099_v59  ;;  %v5825_v26 = vld [vmem:[#allocation19 + $0x760] sm:$0xf0] }
 0x2c5   :  { %v1117_v21 = vadd.f32 %v1116_v12, %v1115_v3  ;;  %v5828_v27 = vor.u32 %v6743_v23, %v5825_v26  ;;  %v6543_v28 = vld [vmem:[#allocation19 + $0x104] sm:$0xf] }
 0x2c6   :  { %2875 = vmatpush.bf16.msra.mxu2 %v5604_v14  ;;  %v5025_v31 = vld [vmem:[#allocation19 + $0x120] sm:$0xf0]  ;;  %v1120_v32 = vrot.slane %v1119_v24, 2  ;;  %2850 = vmatpush.bf16.msra.mxu1 %v5060_v18 }
 0x2c7   :  { %v1126_v29 = vmul.f32 %v1117_v21, %v7503_v17  ;;  %v5028_v35 = vor.u32 %v6543_v28, %v5025_v31  ;;  %v6607_v38 = vld [vmem:[#allocation19 + $0x304] sm:$0xf] }
 0x2c8   :  { %2888 = vmatpush.bf16.msra.mxu3 %v5860_v16  ;;  %v5281_v39 = vld [vmem:[#allocation19 + $0x320] sm:$0xf0]  ;;  %v7601_v40 = vpop.eup %6928  ;;  %2863 = vmatpush.bf16.msra.mxu0 %v5316_v25  ;;  %v1121_v45 = vadd.f32 %v1120_v32, %v1119_v24 }
 0x2c9   :  { %v5284_v30 = vor.u32 %v6607_v38, %v5281_v39  ;;  %v6671_v41 = vld [vmem:[#allocation19 + $0x504] sm:$0xf]  ;;  %v7603_v43 = vpop.eup %6930  ;;  %v1143_v44 = vmul.f32 %v7601_v40, %v7596_v58  ;;  %v7607_v34 = vadd.f32 0.8, %v1126_v29  ;;  %vm1149_vm14 = vweird.f32 %v7601_v40 }
 0x2ca   :  { %v5537_v42 = vld [vmem:[#allocation19 + $0x520] sm:$0xf0]  ;;  %2876 = vmatpush.bf16.msra.mxu2 %v5572_v63  ;;  %v1122_v55 = vrot.slane %v1121_v45, 1  ;;  %2851 = vmatpush.bf16.msra.mxu1 %v5028_v35  ;;  %v1133_v59 = vmul.f32 %v7603_v43, %v7588_v36  ;;  %vm1150_vm1 = vmor %vm1148_vm15, %vm1149_vm14  ;;  %vm1139_vm4 = vweird.f32 %v7603_v43 }
 0x2cb   :  { %v6735_v47 = vld [vmem:[#allocation19 + $0x704] sm:$0xf]  ;;  %v5540_v50 = vor.u32 %v6671_v41, %v5537_v42  ;;  %v1144_v54 = vmul.f32 %v7601_v40, %v1143_v44  ;;  %6932 = vrsqrt.f32 %v7607_v34  ;;  %vm1158_vm2 = vweird.f32 %v7607_v34  ;;  %vm1140_vm7 = vmor %vm1138_vm5, %vm1139_vm4 }
 0x2cc   :  { %v5793_v49 = vld [vmem:[#allocation19 + $0x720] sm:$0xf0]  ;;  %2889 = vmatpush.bf16.msra.mxu3 %v5828_v27  ;;  %2864 = vmatpush.bf16.msra.mxu0 %v5284_v30  ;;  %v1123_v4 = vadd.f32 %v1122_v55, %v1121_v45  ;;  %v1134_v18 = vmul.f32 %v7603_v43, %v1133_v59 }
 0x2cd   :  { %v5796_v51 = vor.u32 %v6735_v47, %v5793_v49  ;;  %v6535_v52 = vld [vmem:[#allocation19 + $0xc4] sm:$0xf]  ;;  %v1145_v13 = vmul.f32 0.5, %v1144_v54 }
 0x2ce   :  { %v4993_v53 = vld [vmem:[#allocation19 + $0xe0] sm:$0xf0]  ;;  %2877 = vmatpush.bf16.msra.mxu2 %v5540_v50  ;;  %v1127_v14 = vmul.f32 %v1123_v4, %v7503_v17  ;;  %v1135_v41 = vmul.f32 0.5, %v1134_v18 }
 0x2cf   :  { %v6599_v56 = vld [vmem:[#allocation19 + $0x2c4] sm:$0xf]  ;;  %v4996_v60 = vor.u32 %v6535_v52, %v4993_v53  ;;  %v1146_v42 = vsub.f32 1.5, %v1145_v13 }
 0x2d0   :  { %v5249_v57 = vld [vmem:[#allocation19 + $0x2e0] sm:$0xf0]  ;;  %2890 = vmatpush.bf16.msra.mxu3 %v5796_v51  ;;  %v7617_v63 = vadd.f32 0.8, %v1127_v14 }
 0x2d1   :  { %v5252_v0 = vor.u32 %v6599_v56, %v5249_v57  ;;  %v6663_v1 = vld [vmem:[#allocation19 + $0x4c4] sm:$0xf]  ;;  %2852 = vmatpush.bf16.msra.mxu1 %v4996_v60  ;;  %v7615_v25 = vpop.eup %6932 }
 0x2d2   :  { %v5505_v3 = vld [vmem:[#allocation19 + $0x4e0] sm:$0xf0]  ;;  %v1153_v28 = vmul.f32 %v7615_v25, %v7607_v34  ;;  %6934 = vrsqrt.f32 %v7617_v63  ;;  %vm1159_vm0 = vweird.f32 %v7615_v25  ;;  %vm1168_vm8 = vweird.f32 %v7617_v63 }
 0x2d3   :  { %v5508_v33 = vor.u32 %v6663_v1, %v5505_v3  ;;  %v6727_v5 = vld [vmem:[#allocation19 + $0x6c4] sm:$0xf]  ;;  %2865 = vmatpush.bf16.msra.mxu0 %v5252_v0  ;;  %v1147_v1 = vmul.f32 %v7601_v40, %v1146_v42  ;;  %vm1160_vm3 = vmor %vm1158_vm2, %vm1159_vm0 }
 0x2d4   :  { %v5761_v7 = vld [vmem:[#allocation19 + $0x6e0] sm:$0xf0]  ;;  %v1154_v44 = vmul.f32 %v7615_v25, %v1153_v28 }
 0x2d5   :  { %v5764_v8 = vor.u32 %v6727_v5, %v5761_v7  ;;  %v6527_v10 = vld [vmem:[#allocation19 + $0x84] sm:$0xf]  ;;  %2878 = vmatpush.bf16.msra.mxu2 %v5508_v33  ;;  %v1136_v5 = vsub.f32 1.5, %v1135_v41  ;;  %v1151_v14 = vsel %vm1150_vm1, %v7601_v40, %v1147_v1  ;;  %v5639_v1 = vld [vmem:[#allocation19 + $0x5c8] sm:$0xf] }
 0x2d6   :  { %v4961_v11 = vld [vmem:[#allocation19 + $0xa0] sm:$0xf0]  ;;  %v1155_v53 = vmul.f32 0.5, %v1154_v44 }
 0x2d7   :  { %v6591_v12 = vld [vmem:[#allocation19 + $0x284] sm:$0xf]  ;;  %v4964_v19 = vor.u32 %v6527_v10, %v4961_v11  ;;  %2891 = vmatpush.bf16.msra.mxu3 %v5764_v8  ;;  %v1172_v8 = vld [vmem:[#allocation16] sm:$0xf] }
 0x2d8   :  { %v5217_v15 = vld [vmem:[#allocation19 + $0x2a0] sm:$0xf0]  ;;  %v1156_v3 = vsub.f32 1.5, %v1155_v53  ;;  %v6935_v33 = vpop.eup %6934  ;;  %v1175_v13 = vperm.slane %v1172_v8, 1  ;;  %v1174_v40 = vperm.slane %v1172_v8, 0 }
 0x2d9   :  { %v6655_v16 = vld [vmem:[#allocation19 + $0x484] sm:$0xf]  ;;  %v5220_v62 = vor.u32 %v6591_v12, %v5217_v15  ;;  %2853 = vmatpush.bf16.msra.mxu1 %v4964_v19  ;;  %v1163_v11 = vmul.f32 %v6935_v33, %v7617_v63  ;;  %v1176_v15 = vperm.slane %v1172_v8, 2  ;;  %vm1169_vm6 = vweird.f32 %v6935_v33  ;;  %v5127_v53 = vld [vmem:[#allocation19 + $0x1c8] sm:$0xf] }
 0x2da   :  { %v5473_v20 = vld [vmem:[#allocation19 + $0x4a0] sm:$0xf0]  ;;  %v1157_v10 = vmul.f32 %v7615_v25, %v1156_v3  ;;  %vm1170_vm9 = vmor %vm1168_vm8, %vm1169_vm6  ;;  %v5895_v3 = vld [vmem:[#allocation19 + $0x7c8] sm:$0xf] }
 0x2db   :  { %v6719_v21 = vld [vmem:[#allocation19 + $0x684] sm:$0xf]  ;;  %v5476_v23 = vor.u32 %v6655_v16, %v5473_v20  ;;  %2866 = vmatpush.bf16.msra.mxu0 %v5220_v62  ;;  %v1164_v58 = vmul.f32 %v6935_v33, %v1163_v11  ;;  %v1137_v16 = vmul.f32 %v7603_v43, %v1136_v5  ;;  %v1183_v62 = vmul.f32 %v1175_v13, %v1151_v14 }
 0x2dc   :  { %v5729_v24 = vld [vmem:[#allocation19 + $0x6a0] sm:$0xf0]  ;;  %v1161_v18 = vsel %vm1160_vm3, %v7615_v25, %v1157_v10 }
 0x2dd   :  { %v6519_v26 = vld [vmem:[#allocation19 + $0x44] sm:$0xf]  ;;  %v5732_v31 = vor.u32 %v6719_v21, %v5729_v24  ;;  %2879 = vmatpush.bf16.msra.mxu2 %v5476_v23  ;;  %v1165_v19 = vmul.f32 0.5, %v1164_v58  ;;  %v1184_v34 = vmul.f32 %v1176_v15, %v1161_v18  ;;  %v1177_v21 = vperm.slane %v1172_v8, 3  ;;  %v5095_v58 = vld [vmem:[#allocation19 + $0x188] sm:$0xf] }
 0x2de   :  { %v4929_v27 = vld [vmem:[#allocation19 + $0x60] sm:$0xf0]  ;;  %v1141_v24 = vsel %vm1140_vm7, %v7603_v43, %v1137_v16  ;;  %v6564_v15 = vld [vmem:[#allocation19 + $0x1a4] sm:$0xf0] }
 0x2df   :  { %v6583_v29 = vld [vmem:[#allocation19 + $0x244] sm:$0xf]  ;;  %v4932_v38 = vor.u32 %v6519_v26, %v4929_v27  ;;  %2892 = vmatpush.bf16.msra.mxu3 %v5732_v31  ;;  %v1166_v20 = vsub.f32 1.5, %v1165_v19  ;;  %v1188_v26 = vmul.f32 %v1183_v62, %v7574_v9  ;;  %v1182_v27 = vmul.f32 %v1174_v40, %v1141_v24  ;;  %v6628_v40 = vld [vmem:[#allocation19 + $0x3a4] sm:$0xf0] }
 0x2e0   :  { %v5185_v32 = vld [vmem:[#allocation19 + $0x260] sm:$0xf0]  ;;  %v1189_v28 = vmul.f32 %v1184_v34, %v7583_v61  ;;  %v1207_v63 = vperm.slane %v1184_v34, 0  ;;  %v5607_v34 = vld [vmem:[#allocation19 + $0x588] sm:$0xf] }
 0x2e1   :  { %v6647_v35 = vld [vmem:[#allocation19 + $0x444] sm:$0xf]  ;;  %v5188_v45 = vor.u32 %v6583_v29, %v5185_v32  ;;  %2854 = vmatpush.bf16.msra.mxu1 %v4932_v38  ;;  %v1167_v23 = vmul.f32 %v6935_v33, %v1166_v20  ;;  %v1195_v36 = vrot.slane %v1188_v26, 7  ;;  %v1187_v32 = vmul.f32 %v1182_v27, %v7564_v37  ;;  %v5351_v20 = vld [vmem:[#allocation19 + $0x388] sm:$0xf] }
 0x2e2   :  { %v5441_v39 = vld [vmem:[#allocation19 + $0x460] sm:$0xf0]  ;;  %v1205_v43 = vperm.slane %v1182_v27, 0  ;;  %v1211_v37 = vmul.f32 %v1207_v63, %v7568_v46  ;;  %v5863_v24 = vld [vmem:[#allocation19 + $0x788] sm:$0xf]  ;;  %v5096_v26 = vor.u32 %v6564_v15, %v5095_v58 }
 0x2e3   :  { %v6711_v30 = vld [vmem:[#allocation19 + $0x644] sm:$0xf]  ;;  %v5444_v49 = vor.u32 %v6647_v35, %v5441_v39  ;;  %2867 = vmatpush.bf16.msra.mxu0 %v5188_v45  ;;  %v1171_v25 = vsel %vm1170_vm9, %v6935_v33, %v1167_v23  ;;  %v1196_v35 = vrot.slane %v1189_v28, 6  ;;  %v1206_v39 = vperm.slane %v1183_v62, 0  ;;  %v6756_v23 = vld [vmem:[#allocation19 + $0x7a4] sm:$0xf0] }
 0x2e4   :  { %v5697_v47 = vld [vmem:[#allocation19 + $0x660] sm:$0xf0]  ;;  %v1185_v31 = vmul.f32 %v1177_v21, %v1171_v25  ;;  %v1198_v41 = vsel %vm543_vm11, %v1187_v32, %v1195_v36  ;;  %v6692_v21 = vld [vmem:[#allocation19 + $0x5a4] sm:$0xf0]  ;;  %v5352_v25 = vor.u32 %v6628_v40, %v5351_v20  ;;  %v5864_v36 = vor.u32 %v6756_v23, %v5863_v24 }
 0x2e5   :  { %v6511_v50 = vld [vmem:[#allocation19 + $0x4] sm:$0xf]  ;;  %v5700_v54 = vor.u32 %v6711_v30, %v5697_v47  ;;  %2880 = vmatpush.bf16.msra.mxu2 %v5444_v49  ;;  %v1186_v30 = vld [vmem:[#allocation18] sm:$0xf]  ;;  %v1210_v45 = vmul.f32 %v1206_v39, %v7558_v2  ;;  %v6764_v2 = vld [vmem:[#allocation19 + $0x7e4] sm:$0xf0] }
 0x2e6   :  { %v4897_v51 = vld [vmem:[#allocation19 + $0x20] sm:$0xf0]  ;;  %v1190_v29 = vmul.f32 %v1185_v31, %v7591_v6  ;;  %v1208_v9 = vperm.slane %v1185_v31, 0  ;;  %v1209_v6 = vmul.f32 %v1205_v43, %v7553_v48  ;;  %v6700_v48 = vld [vmem:[#allocation19 + $0x5e4] sm:$0xf0]  ;;  %v5896_v62 = vor.u32 %v6764_v2, %v5895_v3 }
 0x2e7   :  { %v6575_v52 = vld [vmem:[#allocation19 + $0x204] sm:$0xf]  ;;  %v4900_v57 = vor.u32 %v6511_v50, %v4897_v51  ;;  %2893 = vmatpush.bf16.msra.mxu3 %v5700_v54  ;;  %v5640_v19 = vor.u32 %v6700_v48, %v5639_v1  ;;  %v5063_v27 = vld [vmem:[#allocation19 + $0x148] sm:$0xf]  ;;  %v5608_v31 = vor.u32 %v6692_v21, %v5607_v34 }
 0x2e8   :  { %v5153_v55 = vld [vmem:[#allocation19 + $0x220] sm:$0xf0]  ;;  %v1197_v38 = vrot.slane %v1190_v29, 5  ;;  %v1212_v47 = vmul.f32 %v1208_v9, %v7578_v22  ;;  %v6556_v28 = vld [vmem:[#allocation19 + $0x164] sm:$0xf0] }
 0x2e9   :  { %v6639_v56 = vld [vmem:[#allocation19 + $0x404] sm:$0xf]  ;;  %v5156_v4 = vor.u32 %v6575_v52, %v5153_v55  ;;  %2855 = vmatpush.bf16.msra.mxu1 %v4900_v57  ;;  %v5319_v29 = vld [vmem:[#allocation19 + $0x348] sm:$0xf]  ;;  %v5064_v63 = vor.u32 %v6556_v28, %v5063_v27 }
 0x2ea   :  { %v5409_v59 = vld [vmem:[#allocation19 + $0x420] sm:$0xf0]  ;;  %v1200_v42 = vsel %vm1199_vm10, %v1196_v35, %v1197_v38  ;;  %v6620_v32 = vld [vmem:[#allocation19 + $0x364] sm:$0xf0] }
 0x2eb   :  { %v6703_v60 = vld [vmem:[#allocation19 + $0x604] sm:$0xf]  ;;  %v5412_v7 = vor.u32 %v6639_v56, %v5409_v59  ;;  %2868 = vmatpush.bf16.msra.mxu0 %v5156_v4  ;;  %v1202_v61 = vsel %vm1201_vm12, %v1198_v41, %v1200_v42  ;;  %v6572_v59 = vld [vmem:[#allocation19 + $0x1e4] sm:$0xf0] }
 0x2ec   :  { %v5665_v0 = vld [vmem:[#allocation19 + $0x620] sm:$0xf0]  ;;  %v1204_v44 = vsub.f32 %v1186_v30, %v1202_v61  ;;  %v5128_v8 = vor.u32 %v6572_v59, %v5127_v53  ;;  %v5575_v35 = vld [vmem:[#allocation19 + $0x548] sm:$0xf]  ;;  %v5320_v30 = vor.u32 %v6620_v32, %v5319_v29 }
 0x2ed   :  { %v5668_v12 = vor.u32 %v6703_v60, %v5665_v0  ;;  %2881 = vmatpush.bf16.msra.mxu2 %v5412_v7  ;;  %v5383_v60 = vld [vmem:[#allocation19 + $0x3c8] sm:$0xf] }
 0x2ee   :  { %v1214_v49 = vperm.slane %v1204_v44, 0  ;;  %v1215_v50 = vperm.slane %v1204_v44, 1  ;;  %v1216_v51 = vperm.slane %v1204_v44, 2  ;;  %v1217_v52 = vperm.slane %v1204_v44, 3  ;;  %v6636_v0 = vld [vmem:[#allocation19 + $0x3e4] sm:$0xf0] }
 0x2ef   :  { %2894 = vmatpush.bf16.msra.mxu3 %v5668_v12  ;;  %v5384_v10 = vor.u32 %v6636_v0, %v5383_v60  ;;  %v6684_v38 = vld [vmem:[#allocation19 + $0x564] sm:$0xf0] }
 0x2f0   :  { %v1222_v54 = vadd.f32 %v1214_v49, %v1209_v6  ;;  %v1223_v55 = vadd.f32 %v1215_v50, %v1210_v45  ;;  %v1224_v56 = vadd.f32 %v1216_v51, %v1211_v37  ;;  %v1225_v57 = vadd.f32 %v1217_v52, %v1212_v47  ;;  %v5831_v43 = vld [vmem:[#allocation19 + $0x748] sm:$0xf] }
 0x2f1   :  { %v6748_v39 = vld [vmem:[#allocation19 + $0x764] sm:$0xf0]  ;;  %v5576_v42 = vor.u32 %v6684_v38, %v5575_v35 }
 0x2f2   :  { %vm1229_vm13 = vcmp.gt.f32.partialorder %v1225_v57, 0.0  ;;  %v1230_v46 = vmul.f32 0.2, %v1222_v54  ;;  %v1231_v4 = vmul.f32 0.2, %v1223_v55  ;;  %vm1226_vm14 = vcmp.gt.f32.partialorder %v1222_v54, 0.0 }
 0x2f3   :  { %v1232_v22 = vmul.f32 0.2, %v1224_v56  ;;  %v1233_v33 = vmul.f32 0.2, %v1225_v57  ;;  %vm1227_vm15 = vcmp.gt.f32.partialorder %v1223_v55, 0.0  ;;  %vm1228_vm0 = vcmp.gt.f32.partialorder %v1224_v56, 0.0 }
 0x2f4   :  { %v1234_v5 = vsel %vm1226_vm14, %v1222_v54, %v1230_v46  ;;  %v1235_v7 = vsel %vm1227_vm15, %v1223_v55, %v1231_v4  ;;  %v5031_v9 = vld [vmem:[#allocation19 + $0x108] sm:$0xf]  ;;  %v5832_v61 = vor.u32 %v6748_v39, %v5831_v43 }
 0x2f5   :  { %v1237_v11 = vsel %vm1229_vm13, %v1225_v57, %v1233_v33  ;;  %v7650_v12 = vpack.c.bf16 %v1234_v5, %v1234_v5  ;;  %v7652_v13 = vpack.c.bf16 %v1235_v7, %v1235_v7  ;;  %v1236_v14 = vsel %vm1228_vm0, %v1224_v56, %v1232_v22  ;;  %v6548_v41 = vld [vmem:[#allocation19 + $0x124] sm:$0xf0] }
 0x2f6   :  { %v7654_v16 = vpack.c.bf16 %v1237_v11, %v1237_v11  ;;  %v7656_v18 = vpack.c.bf16 %v1236_v14, %v1236_v14  ;;  %v5287_v44 = vld [vmem:[#allocation19 + $0x308] sm:$0xf]  ;;  %v5032_v50 = vor.u32 %v6548_v41, %v5031_v9  ;;  %v5129_v9 = vld [vmem:[#allocation19 + $0x1e8] sm:$0xf0] }
 0x2f7   :  { %2804 = vmatmul.bf16.vlgmr.msrb.gmra.mxu1 %v7650_v12  ;;  %2817 = vmatmul.bf16.vlgmr.msrb.gmra.mxu0 %v7652_v13  ;;  %v6612_v6 = vld [vmem:[#allocation19 + $0x324] sm:$0xf0]  ;;  %v6632_v41 = vld [vmem:[#allocation19 + $0x3cc] sm:$0xf] }
 0x2f8   :  { %2830 = vmatmul.bf16.vlgmr.msrb.gmra.mxu2 %v7656_v18  ;;  %2843 = vmatmul.bf16.vlgmr.msrb.gmra.mxu3 %v7654_v16  ;;  %v5543_v45 = vld [vmem:[#allocation19 + $0x508] sm:$0xf]  ;;  %v5288_v51 = vor.u32 %v6612_v6, %v5287_v44 }
 0x2f9   :  { %2900 = vmatpush.bf16.msrb.mxu1 %v5128_v8  ;;  %2913 = vmatpush.bf16.msrb.mxu0 %v5384_v10  ;;  %v6676_v37 = vld [vmem:[#allocation19 + $0x524] sm:$0xf0] }
 0x2fa   :  { %2926 = vmatpush.bf16.msrb.mxu2 %v5640_v19  ;;  %2939 = vmatpush.bf16.msrb.mxu3 %v5896_v62  ;;  %v5799_v47 = vld [vmem:[#allocation19 + $0x708] sm:$0xf]  ;;  %v5544_v54 = vor.u32 %v6676_v37, %v5543_v45  ;;  %v5641_v45 = vld [vmem:[#allocation19 + $0x5e8] sm:$0xf0] }
 0x2fb   :  { %v6740_v49 = vld [vmem:[#allocation19 + $0x724] sm:$0xf0]  ;;  %v6760_v37 = vld [vmem:[#allocation19 + $0x7cc] sm:$0xf] }
 0x2fc   :  { %v4999_v52 = vld [vmem:[#allocation19 + $0xc8] sm:$0xf]  ;;  %v5800_v55 = vor.u32 %v6740_v49, %v5799_v47  ;;  %v5897_v47 = vld [vmem:[#allocation19 + $0x7e8] sm:$0xf0] }
 0x2fd   :  { %2901 = vmatpush.bf16.msrb.mxu1 %v5096_v26  ;;  %2914 = vmatpush.bf16.msrb.mxu0 %v5352_v25  ;;  %v6540_v53 = vld [vmem:[#allocation19 + $0xe4] sm:$0xf0] }
 0x2fe   :  { %2927 = vmatpush.bf16.msrb.mxu2 %v5608_v31  ;;  %2940 = vmatpush.bf16.msrb.mxu3 %v5864_v36  ;;  %v5255_v56 = vld [vmem:[#allocation19 + $0x2c8] sm:$0xf]  ;;  %v5000_v48 = vor.u32 %v6540_v53, %v4999_v52  ;;  %v6560_v53 = vld [vmem:[#allocation19 + $0x18c] sm:$0xf] }
 0x2ff   :  { %v6604_v57 = vld [vmem:[#allocation19 + $0x2e4] sm:$0xf0] }
 0x300   :  { %v5511_v59 = vld [vmem:[#allocation19 + $0x4c8] sm:$0xf]  ;;  %v5256_v3 = vor.u32 %v6604_v57, %v5255_v56  ;;  %v5900_v56 = vor.u32 %v6760_v37, %v5897_v47  ;;  %v6624_v57 = vld [vmem:[#allocation19 + $0x38c] sm:$0xf] }
 0x301   :  { %2902 = vmatpush.bf16.msrb.mxu1 %v5064_v63  ;;  %2915 = vmatpush.bf16.msrb.mxu0 %v5320_v30  ;;  %v6668_v60 = vld [vmem:[#allocation19 + $0x4e4] sm:$0xf0]  ;;  %v6568_v30 = vld [vmem:[#allocation19 + $0x1cc] sm:$0xf] }
 0x302   :  { %2928 = vmatpush.bf16.msrb.mxu2 %v5576_v42  ;;  %2941 = vmatpush.bf16.msrb.mxu3 %v5832_v61  ;;  %v5767_v0 = vld [vmem:[#allocation19 + $0x6c8] sm:$0xf]  ;;  %v5512_v4 = vor.u32 %v6668_v60, %v5511_v59  ;;  %v5385_v42 = vld [vmem:[#allocation19 + $0x3e8] sm:$0xf0] }
 0x303   :  { %v6732_v1 = vld [vmem:[#allocation19 + $0x6e4] sm:$0xf0]  ;;  %v6696_v61 = vld [vmem:[#allocation19 + $0x5cc] sm:$0xf]  ;;  %v5388_v52 = vor.u32 %v6632_v41, %v5385_v42 }
 0x304   :  { %v4967_v2 = vld [vmem:[#allocation19 + $0x88] sm:$0xf]  ;;  %v5768_v22 = vor.u32 %v6732_v1, %v5767_v0  ;;  %v5353_v59 = vld [vmem:[#allocation19 + $0x3a8] sm:$0xf0] }
 0x305   :  { %2903 = vmatpush.bf16.msrb.mxu1 %v5032_v50  ;;  %2916 = vmatpush.bf16.msrb.mxu0 %v5288_v51  ;;  %v6532_v46 = vld [vmem:[#allocation19 + $0xa4] sm:$0xf0]  ;;  %v5132_v51 = vor.u32 %v6568_v30, %v5129_v9  ;;  %v6688_v60 = vld [vmem:[#allocation19 + $0x58c] sm:$0xf] }
 0x306   :  { %2929 = vmatpush.bf16.msrb.mxu2 %v5544_v54  ;;  %2942 = vmatpush.bf16.msrb.mxu3 %v5800_v55  ;;  %v5223_v33 = vld [vmem:[#allocation19 + $0x288] sm:$0xf]  ;;  %v4968_v14 = vor.u32 %v6532_v46, %v4967_v2  ;;  %v5097_v54 = vld [vmem:[#allocation19 + $0x1a8] sm:$0xf0]  ;;  %v5644_v55 = vor.u32 %v6696_v61, %v5641_v45  ;;  %v5356_v2 = vor.u32 %v6624_v57, %v5353_v59 }
 0x307   :  { %v6596_v5 = vld [vmem:[#allocation19 + $0x2a4] sm:$0xf0]  ;;  %2856 = vmatmul.bf16.vlgmr.msra.gmra.mxu1 %v7650_v12  ;;  %2869 = vmatmul.bf16.vlgmr.msra.gmra.mxu0 %v7652_v13  ;;  %v5609_v0 = vld [vmem:[#allocation19 + $0x5a8] sm:$0xf0] }
 0x308   :  { %v5479_v7 = vld [vmem:[#allocation19 + $0x488] sm:$0xf]  ;;  %2882 = vmatmul.bf16.vlgmr.msra.gmra.mxu2 %v7656_v18  ;;  %2895 = vmatmul.bf16.vlgmr.msra.gmra.mxu3 %v7654_v16  ;;  %v5224_v58 = vor.u32 %v6596_v5, %v5223_v33  ;;  %v6752_v1 = vld [vmem:[#allocation19 + $0x78c] sm:$0xf] }
 0x309   :  { %v6660_v8 = vld [vmem:[#allocation19 + $0x4a4] sm:$0xf0]  ;;  %2904 = vmatpush.bf16.msrb.mxu1 %v5000_v48  ;;  %2917 = vmatpush.bf16.msrb.mxu0 %v5256_v3  ;;  %v5865_v48 = vld [vmem:[#allocation19 + $0x7a8] sm:$0xf0]  ;;  %v5100_v3 = vor.u32 %v6560_v53, %v5097_v54 }
 0x30a   :  { %v5735_v10 = vld [vmem:[#allocation19 + $0x688] sm:$0xf]  ;;  %2930 = vmatpush.bf16.msrb.mxu2 %v5512_v4  ;;  %2943 = vmatpush.bf16.msrb.mxu3 %v5768_v22  ;;  %v5480_v62 = vor.u32 %v6660_v8, %v5479_v7  ;;  %v6552_v46 = vld [vmem:[#allocation19 + $0x14c] sm:$0xf]  ;;  %v5612_v22 = vor.u32 %v6688_v60, %v5609_v0  ;;  %v5868_v33 = vor.u32 %v6752_v1, %v5865_v48 }
 0x30b   :  { %v6724_v11 = vld [vmem:[#allocation19 + $0x6a4] sm:$0xf0]  ;;  %v5065_v4 = vld [vmem:[#allocation19 + $0x168] sm:$0xf0] }
 0x30c   :  { %v4935_v15 = vld [vmem:[#allocation19 + $0x48] sm:$0xf]  ;;  %v5736_v20 = vor.u32 %v6724_v11, %v5735_v10  ;;  %v6616_v5 = vld [vmem:[#allocation19 + $0x34c] sm:$0xf] }
 0x30d   :  { %v6524_v19 = vld [vmem:[#allocation19 + $0x64] sm:$0xf0]  ;;  %2905 = vmatpush.bf16.msrb.mxu1 %v4968_v14  ;;  %2918 = vmatpush.bf16.msrb.mxu0 %v5224_v58  ;;  %v5321_v7 = vld [vmem:[#allocation19 + $0x368] sm:$0xf0]  ;;  %v5068_v58 = vor.u32 %v6552_v46, %v5065_v4 }
 0x30e   :  { %v5191_v40 = vld [vmem:[#allocation19 + $0x248] sm:$0xf]  ;;  %v4936_v27 = vor.u32 %v6524_v19, %v4935_v15  ;;  %2931 = vmatpush.bf16.msrb.mxu2 %v5480_v62  ;;  %2944 = vmatpush.bf16.msrb.mxu3 %v5736_v20  ;;  %v6680_v8 = vld [vmem:[#allocation19 + $0x54c] sm:$0xf]  ;;  %v5324_v15 = vor.u32 %v6616_v5, %v5321_v7 }
 0x30f   :  { %v6588_v34 = vld [vmem:[#allocation19 + $0x264] sm:$0xf0]  ;;  %v5577_v10 = vld [vmem:[#allocation19 + $0x568] sm:$0xf0] }
 0x310   :  { %v5447_v21 = vld [vmem:[#allocation19 + $0x448] sm:$0xf]  ;;  %v5192_v28 = vor.u32 %v6588_v34, %v5191_v40  ;;  %v6744_v11 = vld [vmem:[#allocation19 + $0x74c] sm:$0xf]  ;;  %v5580_v20 = vor.u32 %v6680_v8, %v5577_v10 }
 0x311   :  { %v6652_v24 = vld [vmem:[#allocation19 + $0x464] sm:$0xf0]  ;;  %2906 = vmatpush.bf16.msrb.mxu1 %v4936_v27  ;;  %v5833_v14 = vld [vmem:[#allocation19 + $0x768] sm:$0xf0] }
 0x312   :  { %v5703_v23 = vld [vmem:[#allocation19 + $0x648] sm:$0xf]  ;;  %v5448_v32 = vor.u32 %v6652_v24, %v5447_v21  ;;  %2919 = vmatpush.bf16.msrb.mxu0 %v5192_v28  ;;  %v6544_v19 = vld [vmem:[#allocation19 + $0x10c] sm:$0xf]  ;;  %v5836_v40 = vor.u32 %v6744_v11, %v5833_v14 }
 0x313   :  { %v6716_v26 = vld [vmem:[#allocation19 + $0x664] sm:$0xf0]  ;;  %v5033_v62 = vld [vmem:[#allocation19 + $0x128] sm:$0xf0] }
 0x314   :  { %v4903_v25 = vld [vmem:[#allocation19 + $0x8] sm:$0xf]  ;;  %v5704_v35 = vor.u32 %v6716_v26, %v5703_v23  ;;  %2932 = vmatpush.bf16.msrb.mxu2 %v5448_v32  ;;  %v6608_v34 = vld [vmem:[#allocation19 + $0x30c] sm:$0xf]  ;;  %v5036_v27 = vor.u32 %v6544_v19, %v5033_v62  ;;  %v6573_v19 = vld [vmem:[#allocation19 + $0x1ec] sm:$0xf0] }
 0x315   :  { %v6516_v31 = vld [vmem:[#allocation19 + $0x24] sm:$0xf0]  ;;  %v5289_v21 = vld [vmem:[#allocation19 + $0x328] sm:$0xf0]  ;;  %v5391_v62 = vld [vmem:[#allocation19 + $0x3d0] sm:$0xf] }
 0x316   :  { %v5159_v36 = vld [vmem:[#allocation19 + $0x208] sm:$0xf]  ;;  %v4904_v44 = vor.u32 %v6516_v31, %v4903_v25  ;;  %2945 = vmatpush.bf16.msrb.mxu3 %v5704_v35  ;;  %v6672_v24 = vld [vmem:[#allocation19 + $0x50c] sm:$0xf]  ;;  %v5292_v28 = vor.u32 %v6608_v34, %v5289_v21 }
 0x317   :  { %v6580_v29 = vld [vmem:[#allocation19 + $0x224] sm:$0xf0]  ;;  %v5545_v23 = vld [vmem:[#allocation19 + $0x528] sm:$0xf0] }
 0x318   :  { %v5415_v38 = vld [vmem:[#allocation19 + $0x408] sm:$0xf]  ;;  %v5160_v6 = vor.u32 %v6580_v29, %v5159_v36  ;;  %2907 = vmatpush.bf16.msrb.mxu1 %v4904_v44  ;;  %v6736_v26 = vld [vmem:[#allocation19 + $0x70c] sm:$0xf]  ;;  %v5548_v29 = vor.u32 %v6672_v24, %v5545_v23  ;;  %v6701_v24 = vld [vmem:[#allocation19 + $0x5ec] sm:$0xf0] }
 0x319   :  { %v6644_v43 = vld [vmem:[#allocation19 + $0x424] sm:$0xf0]  ;;  %v5801_v25 = vld [vmem:[#allocation19 + $0x728] sm:$0xf0]  ;;  %v5903_v23 = vld [vmem:[#allocation19 + $0x7d0] sm:$0xf] }
 0x31a   :  { %v5671_v39 = vld [vmem:[#allocation19 + $0x608] sm:$0xf]  ;;  %v5416_v49 = vor.u32 %v6644_v43, %v5415_v38  ;;  %2920 = vmatpush.bf16.msrb.mxu0 %v5160_v6  ;;  %v6536_v31 = vld [vmem:[#allocation19 + $0xcc] sm:$0xf]  ;;  %v5804_v32 = vor.u32 %v6736_v26, %v5801_v25  ;;  %v6765_v26 = vld [vmem:[#allocation19 + $0x7ec] sm:$0xf0] }
 0x31b   :  { %v6708_v63 = vld [vmem:[#allocation19 + $0x624] sm:$0xf0]  ;;  %2908 = vmatmul.bf16.vlgmr.msrb.gmra.mxu1 %v7650_v12  ;;  %v5001_v36 = vld [vmem:[#allocation19 + $0xe8] sm:$0xf0] }
 0x31c   :  { %v5672_v50 = vor.u32 %v6708_v63, %v5671_v39  ;;  %2933 = vmatpush.bf16.msrb.mxu2 %v5416_v49  ;;  %2952 = vmatpush.bf16.msra.mxu1 %v5132_v51  ;;  %v6600_v35 = vld [vmem:[#allocation19 + $0x2cc] sm:$0xf]  ;;  %v5004_v9 = vor.u32 %v6536_v31, %v5001_v36  ;;  %v5103_v36 = vld [vmem:[#allocation19 + $0x190] sm:$0xf] }
 0x31d   :  { %2921 = vmatmul.bf16.vlgmr.msrb.gmra.mxu0 %v7652_v13  ;;  %v5257_v38 = vld [vmem:[#allocation19 + $0x2e8] sm:$0xf0] }
 0x31e   :  { %2946 = vmatpush.bf16.msrb.mxu3 %v5672_v50  ;;  %2965 = vmatpush.bf16.msra.mxu0 %v5388_v52  ;;  %v6664_v43 = vld [vmem:[#allocation19 + $0x4cc] sm:$0xf]  ;;  %v5260_v41 = vor.u32 %v6600_v35, %v5257_v38  ;;  %v5904_v35 = vor.u32 %v6765_v26, %v5903_v23  ;;  %v5359_v38 = vld [vmem:[#allocation19 + $0x390] sm:$0xf] }
 0x31f   :  { %2934 = vmatmul.bf16.vlgmr.msrb.gmra.mxu2 %v7656_v18  ;;  %v5513_v39 = vld [vmem:[#allocation19 + $0x4e8] sm:$0xf0]  ;;  %v6597_v23 = vld [vmem:[#allocation19 + $0x2ac] sm:$0xf0] }
 0x320   :  { %2978 = vmatpush.bf16.msra.mxu2 %v5644_v55  ;;  %2953 = vmatpush.bf16.msra.mxu1 %v5100_v3  ;;  %v6728_v63 = vld [vmem:[#allocation19 + $0x6cc] sm:$0xf]  ;;  %v5516_v44 = vor.u32 %v6664_v43, %v5513_v39  ;;  %v6629_v43 = vld [vmem:[#allocation19 + $0x3ac] sm:$0xf0] }
 0x321   :  { %2947 = vmatmul.bf16.vlgmr.msrb.gmra.mxu3 %v7654_v16  ;;  %v5769_v30 = vld [vmem:[#allocation19 + $0x6e8] sm:$0xf0]  ;;  %v5615_v39 = vld [vmem:[#allocation19 + $0x590] sm:$0xf] }
 0x322   :  { %2991 = vmatpush.bf16.msra.mxu3 %v5900_v56  ;;  %2966 = vmatpush.bf16.msra.mxu0 %v5356_v2  ;;  %v6528_v42 = vld [vmem:[#allocation19 + $0x8c] sm:$0xf]  ;;  %v5772_v6 = vor.u32 %v6728_v63, %v5769_v30  ;;  %v6693_v63 = vld [vmem:[#allocation19 + $0x5ac] sm:$0xf0] }
 0x323   :  { %v4969_v61 = vld [vmem:[#allocation19 + $0xa8] sm:$0xf0]  ;;  %v5871_v30 = vld [vmem:[#allocation19 + $0x790] sm:$0xf] }
 0x324   :  { %2979 = vmatpush.bf16.msra.mxu2 %v5612_v22  ;;  %2954 = vmatpush.bf16.msra.mxu1 %v5068_v58  ;;  %v6592_v45 = vld [vmem:[#allocation19 + $0x28c] sm:$0xf]  ;;  %v4972_v52 = vor.u32 %v6528_v42, %v4969_v61  ;;  %v5360_v42 = vor.u32 %v6629_v43, %v5359_v38  ;;  %v5071_v61 = vld [vmem:[#allocation19 + $0x150] sm:$0xf] }
 0x325   :  { %v5225_v37 = vld [vmem:[#allocation19 + $0x2a8] sm:$0xf0]  ;;  %v5487_v26 = vld [vmem:[#allocation19 + $0x490] sm:$0xf] }
 0x326   :  { %2992 = vmatpush.bf16.msra.mxu3 %v5868_v33  ;;  %2967 = vmatpush.bf16.msra.mxu0 %v5324_v15  ;;  %v6656_v47 = vld [vmem:[#allocation19 + $0x48c] sm:$0xf]  ;;  %v5228_v53 = vor.u32 %v6592_v45, %v5225_v37  ;;  %v5135_v15 = vld [vmem:[#allocation19 + $0x1d0] sm:$0xf] }
 0x327   :  { %v5481_v49 = vld [vmem:[#allocation19 + $0x4a8] sm:$0xf0]  ;;  %v5327_v37 = vld [vmem:[#allocation19 + $0x350] sm:$0xf] }
 0x328   :  { %2980 = vmatpush.bf16.msra.mxu2 %v5580_v20  ;;  %2955 = vmatpush.bf16.msra.mxu1 %v5036_v27  ;;  %v6720_v50 = vld [vmem:[#allocation19 + $0x68c] sm:$0xf]  ;;  %v5484_v56 = vor.u32 %v6656_v47, %v5481_v49  ;;  %v6637_v20 = vld [vmem:[#allocation19 + $0x3ec] sm:$0xf0] }
 0x329   :  { %v5737_v51 = vld [vmem:[#allocation19 + $0x6a8] sm:$0xf0]  ;;  %v5392_v31 = vor.u32 %v6637_v20, %v5391_v62  ;;  %v6621_v47 = vld [vmem:[#allocation19 + $0x36c] sm:$0xf0] }
 0x32a   :  { %2993 = vmatpush.bf16.msra.mxu3 %v5836_v40  ;;  %2968 = vmatpush.bf16.msra.mxu0 %v5292_v28  ;;  %v6520_v54 = vld [vmem:[#allocation19 + $0x4c] sm:$0xf]  ;;  %v5740_v57 = vor.u32 %v6720_v50, %v5737_v51  ;;  %v5647_v40 = vld [vmem:[#allocation19 + $0x5d0] sm:$0xf]  ;;  %v5136_v28 = vor.u32 %v6573_v19, %v5135_v15 }
 0x32b   :  { %v4937_v55 = vld [vmem:[#allocation19 + $0x68] sm:$0xf0]  ;;  %v5583_v49 = vld [vmem:[#allocation19 + $0x550] sm:$0xf] }
 0x32c   :  { %2981 = vmatpush.bf16.msra.mxu2 %v5548_v29  ;;  %2956 = vmatpush.bf16.msra.mxu1 %v5004_v9  ;;  %v6584_v59 = vld [vmem:[#allocation19 + $0x24c] sm:$0xf]  ;;  %v4940_v46 = vor.u32 %v6520_v54, %v4937_v55  ;;  %v6565_v29 = vld [vmem:[#allocation19 + $0x1ac] sm:$0xf0]  ;;  %v5328_v54 = vor.u32 %v6621_v47, %v5327_v37 }
 0x32d   :  { %v5193_v60 = vld [vmem:[#allocation19 + $0x268] sm:$0xf0]  ;;  %v6757_v9 = vld [vmem:[#allocation19 + $0x7ac] sm:$0xf0] }
 0x32e   :  { %2994 = vmatpush.bf16.msra.mxu3 %v5804_v32  ;;  %2969 = vmatpush.bf16.msra.mxu0 %v5260_v41  ;;  %v6648_v0 = vld [vmem:[#allocation19 + $0x44c] sm:$0xf]  ;;  %v5196_v4 = vor.u32 %v6584_v59, %v5193_v60  ;;  %v5648_v32 = vor.u32 %v6701_v24, %v5647_v40  ;;  %v5104_v41 = vor.u32 %v6565_v29, %v5103_v36  ;;  %v6685_v50 = vld [vmem:[#allocation19 + $0x56c] sm:$0xf0] }
 0x32f   :  { %v5449_v1 = vld [vmem:[#allocation19 + $0x468] sm:$0xf0]  ;;  %v5872_v45 = vor.u32 %v6757_v9, %v5871_v30  ;;  %v5839_v51 = vld [vmem:[#allocation19 + $0x750] sm:$0xf] }
 0x330   :  { %2982 = vmatpush.bf16.msra.mxu2 %v5516_v44  ;;  %v6712_v48 = vld [vmem:[#allocation19 + $0x64c] sm:$0xf]  ;;  %2957 = vmatpush.bf16.msra.mxu1 %v4972_v52  ;;  %v5452_v7 = vor.u32 %v6648_v0, %v5449_v1  ;;  %v6557_v44 = vld [vmem:[#allocation19 + $0x16c] sm:$0xf0] }
 0x331   :  { %v5705_v3 = vld [vmem:[#allocation19 + $0x668] sm:$0xf0]  ;;  %v6749_v52 = vld [vmem:[#allocation19 + $0x76c] sm:$0xf0] }
 0x332   :  { %2995 = vmatpush.bf16.msra.mxu3 %v5772_v6  ;;  %v6512_v2 = vld [vmem:[#allocation19 + $0xc] sm:$0xf]  ;;  %2970 = vmatpush.bf16.msra.mxu0 %v5228_v53  ;;  %v5708_v8 = vor.u32 %v6712_v48, %v5705_v3  ;;  %v5616_v6 = vor.u32 %v6693_v63, %v5615_v39  ;;  %v5072_v53 = vor.u32 %v6557_v44, %v5071_v61  ;;  %v5039_v55 = vld [vmem:[#allocation19 + $0x110] sm:$0xf] }
 0x333   :  { %v4905_v22 = vld [vmem:[#allocation19 + $0x28] sm:$0xf0]  ;;  %v5840_v59 = vor.u32 %v6749_v52, %v5839_v51  ;;  %v5295_v60 = vld [vmem:[#allocation19 + $0x310] sm:$0xf] }
 0x334   :  { %v6576_v33 = vld [vmem:[#allocation19 + $0x20c] sm:$0xf]  ;;  %2983 = vmatpush.bf16.msra.mxu2 %v5484_v56  ;;  %2958 = vmatpush.bf16.msra.mxu1 %v4940_v46  ;;  %v4908_v34 = vor.u32 %v6512_v2, %v4905_v22  ;;  %v6549_v56 = vld [vmem:[#allocation19 + $0x12c] sm:$0xf0] }
 0x335   :  { %v5161_v5 = vld [vmem:[#allocation19 + $0x228] sm:$0xf0]  ;;  %v6613_v0 = vld [vmem:[#allocation19 + $0x32c] sm:$0xf0]  ;;  %v5040_v46 = vor.u32 %v6549_v56, %v5039_v55  ;;  %v5137_v55 = vld [vmem:[#allocation19 + $0x1f0] sm:$0xf0] }
 0x336   :  { %2996 = vmatpush.bf16.msra.mxu3 %v5740_v57  ;;  %v6640_v10 = vld [vmem:[#allocation19 + $0x40c] sm:$0xf]  ;;  %2971 = vmatpush.bf16.msra.mxu0 %v5196_v4  ;;  %v5164_v21 = vor.u32 %v6576_v33, %v5161_v5  ;;  %v5584_v57 = vor.u32 %v6685_v50, %v5583_v49  ;;  %v5551_v1 = vld [vmem:[#allocation19 + $0x510] sm:$0xf]  ;;  %v5296_v4 = vor.u32 %v6613_v0, %v5295_v60  ;;  %v6633_v56 = vld [vmem:[#allocation19 + $0x3d4] sm:$0xf] }
 0x337   :  { %v5417_v11 = vld [vmem:[#allocation19 + $0x428] sm:$0xf0]  ;;  %v6677_v48 = vld [vmem:[#allocation19 + $0x52c] sm:$0xf0] }
 0x338   :  { %v6704_v14 = vld [vmem:[#allocation19 + $0x60c] sm:$0xf]  ;;  %2984 = vmatpush.bf16.msra.mxu2 %v5452_v7  ;;  %v5420_v25 = vor.u32 %v6640_v10, %v5417_v11  ;;  %2959 = vmatpush.bf16.msra.mxu1 %v4908_v34  ;;  %v5807_v3 = vld [vmem:[#allocation19 + $0x710] sm:$0xf]  ;;  %v5552_v5 = vor.u32 %v6677_v48, %v5551_v1  ;;  %v5649_v1 = vld [vmem:[#allocation19 + $0x5f0] sm:$0xf0] }
 0x339   :  { %v5673_v58 = vld [vmem:[#allocation19 + $0x628] sm:$0xf0]  ;;  %v6741_v2 = vld [vmem:[#allocation19 + $0x72c] sm:$0xf0]  ;;  %v6761_v48 = vld [vmem:[#allocation19 + $0x7d4] sm:$0xf] }
 0x33a   :  { %2997 = vmatpush.bf16.msra.mxu3 %v5708_v8  ;;  %v5676_v27 = vor.u32 %v6704_v14, %v5673_v58  ;;  %2972 = vmatpush.bf16.msra.mxu0 %v5164_v21  ;;  %v5007_v22 = vld [vmem:[#allocation19 + $0xd0] sm:$0xf]  ;;  %v5808_v7 = vor.u32 %v6741_v2, %v5807_v3  ;;  %v5905_v3 = vld [vmem:[#allocation19 + $0x7f0] sm:$0xf0] }
 0x33b   :  { %2960 = vmatmul.bf16.vlgmr.msra.gmra.mxu1 %v7650_v12  ;;  %v6541_v33 = vld [vmem:[#allocation19 + $0xec] sm:$0xf0] }
 0x33c   :  { %2985 = vmatpush.bf16.msra.mxu2 %v5420_v25  ;;  %3004 = vmatpush.bf16.msrb.mxu1 %v5136_v28  ;;  %v5263_v8 = vld [vmem:[#allocation19 + $0x2d0] sm:$0xf]  ;;  %v5008_v19 = vor.u32 %v6541_v33, %v5007_v22  ;;  %v6561_v33 = vld [vmem:[#allocation19 + $0x194] sm:$0xf] }
 0x33d   :  { %2973 = vmatmul.bf16.vlgmr.msra.gmra.mxu0 %v7652_v13  ;;  %v6605_v10 = vld [vmem:[#allocation19 + $0x2ec] sm:$0xf0] }
 0x33e   :  { %2998 = vmatpush.bf16.msra.mxu3 %v5676_v27  ;;  %3017 = vmatpush.bf16.msrb.mxu0 %v5392_v31  ;;  %v5519_v11 = vld [vmem:[#allocation19 + $0x4d0] sm:$0xf]  ;;  %v5264_v62 = vor.u32 %v6605_v10, %v5263_v8  ;;  %v5908_v8 = vor.u32 %v6761_v48, %v5905_v3  ;;  %v6625_v10 = vld [vmem:[#allocation19 + $0x394] sm:$0xf] }
 0x33f   :  { %2986 = vmatmul.bf16.vlgmr.msra.gmra.mxu2 %v7656_v18  ;;  %v6669_v14 = vld [vmem:[#allocation19 + $0x4ec] sm:$0xf0]  ;;  %v5233_v48 = vld [vmem:[#allocation19 + $0x2b0] sm:$0xf0] }
 0x340   :  { %3030 = vmatpush.bf16.msrb.mxu2 %v5648_v32  ;;  %3005 = vmatpush.bf16.msrb.mxu1 %v5104_v41  ;;  %v5775_v58 = vld [vmem:[#allocation19 + $0x6d0] sm:$0xf]  ;;  %v5520_v34 = vor.u32 %v6669_v14, %v5519_v11  ;;  %v5361_v11 = vld [vmem:[#allocation19 + $0x3b0] sm:$0xf0] }
 0x341   :  { %2999 = vmatmul.bf16.vlgmr.msra.gmra.mxu3 %v7654_v16  ;;  %v6733_v15 = vld [vmem:[#allocation19 + $0x6ec] sm:$0xf0]  ;;  %v6689_v14 = vld [vmem:[#allocation19 + $0x594] sm:$0xf] }
 0x342   :  { %3043 = vmatpush.bf16.msrb.mxu3 %v5904_v35  ;;  %3018 = vmatpush.bf16.msrb.mxu0 %v5360_v42  ;;  %v4975_v20 = vld [vmem:[#allocation19 + $0x90] sm:$0xf]  ;;  %v5776_v21 = vor.u32 %v6733_v15, %v5775_v58  ;;  %v5617_v58 = vld [vmem:[#allocation19 + $0x5b0] sm:$0xf0] }
 0x343   :  { %v6533_v40 = vld [vmem:[#allocation19 + $0xac] sm:$0xf0]  ;;  %v6753_v15 = vld [vmem:[#allocation19 + $0x794] sm:$0xf] }
 0x344   :  { %3031 = vmatpush.bf16.msrb.mxu2 %v5616_v6  ;;  %3006 = vmatpush.bf16.msrb.mxu1 %v5072_v53  ;;  %v5231_v24 = vld [vmem:[#allocation19 + $0x290] sm:$0xf]  ;;  %v4976_v31 = vor.u32 %v6533_v40, %v4975_v20  ;;  %v5364_v20 = vor.u32 %v6625_v10, %v5361_v11  ;;  %v6553_v40 = vld [vmem:[#allocation19 + $0x154] sm:$0xf] }
 0x345   :  { %v6661_v25 = vld [vmem:[#allocation19 + $0x4ac] sm:$0xf0]  ;;  %v5232_v36 = vor.u32 %v6597_v23, %v5231_v24  ;;  %v6617_v23 = vld [vmem:[#allocation19 + $0x354] sm:$0xf] }
 0x346   :  { %3044 = vmatpush.bf16.msrb.mxu3 %v5872_v45  ;;  %3019 = vmatpush.bf16.msrb.mxu0 %v5328_v54  ;;  %v5743_v27 = vld [vmem:[#allocation19 + $0x690] sm:$0xf]  ;;  %v5488_v35 = vor.u32 %v6661_v25, %v5487_v26  ;;  %v6569_v54 = vld [vmem:[#allocation19 + $0x1d4] sm:$0xf] }
 0x347   :  { %v6725_v28 = vld [vmem:[#allocation19 + $0x6ac] sm:$0xf0]  ;;  %v5329_v26 = vld [vmem:[#allocation19 + $0x370] sm:$0xf0] }
 0x348   :  { %3032 = vmatpush.bf16.msrb.mxu2 %v5584_v57  ;;  %3007 = vmatpush.bf16.msrb.mxu1 %v5040_v46  ;;  %v4943_v29 = vld [vmem:[#allocation19 + $0x50] sm:$0xf]  ;;  %v5744_v38 = vor.u32 %v6725_v28, %v5743_v27  ;;  %v5393_v57 = vld [vmem:[#allocation19 + $0x3f0] sm:$0xf0] }
 0x349   :  { %v6525_v32 = vld [vmem:[#allocation19 + $0x6c] sm:$0xf0]  ;;  %v5396_v22 = vor.u32 %v6633_v56, %v5393_v57  ;;  %v6681_v25 = vld [vmem:[#allocation19 + $0x554] sm:$0xf] }
 0x34a   :  { %3045 = vmatpush.bf16.msrb.mxu3 %v5840_v59  ;;  %3020 = vmatpush.bf16.msrb.mxu0 %v5296_v4  ;;  %v5199_v43 = vld [vmem:[#allocation19 + $0x250] sm:$0xf]  ;;  %v4944_v61 = vor.u32 %v6525_v32, %v4943_v29  ;;  %v6697_v59 = vld [vmem:[#allocation19 + $0x5d4] sm:$0xf]  ;;  %v5140_v4 = vor.u32 %v6569_v54, %v5137_v55  ;;  %v5332_v29 = vor.u32 %v6617_v23, %v5329_v26 }
 0x34b   :  { %v6589_v39 = vld [vmem:[#allocation19 + $0x26c] sm:$0xf0]  ;;  %v5585_v27 = vld [vmem:[#allocation19 + $0x570] sm:$0xf0] }
 0x34c   :  { %3033 = vmatpush.bf16.msrb.mxu2 %v5552_v5  ;;  %3008 = vmatpush.bf16.msrb.mxu1 %v5008_v19  ;;  %v5455_v63 = vld [vmem:[#allocation19 + $0x450] sm:$0xf]  ;;  %v5200_v44 = vor.u32 %v6589_v39, %v5199_v43  ;;  %v5105_v5 = vld [vmem:[#allocation19 + $0x1b0] sm:$0xf0] }
 0x34d   :  { %v6653_v30 = vld [vmem:[#allocation19 + $0x46c] sm:$0xf0]  ;;  %v5873_v19 = vld [vmem:[#allocation19 + $0x7b0] sm:$0xf0] }
 0x34e   :  { %3046 = vmatpush.bf16.msrb.mxu3 %v5808_v7  ;;  %3021 = vmatpush.bf16.msrb.mxu0 %v5264_v62  ;;  %v5711_v9 = vld [vmem:[#allocation19 + $0x650] sm:$0xf]  ;;  %v5456_v47 = vor.u32 %v6653_v30, %v5455_v63  ;;  %v5652_v7 = vor.u32 %v6697_v59, %v5649_v1  ;;  %v5108_v62 = vor.u32 %v6561_v33, %v5105_v5  ;;  %v6745_v28 = vld [vmem:[#allocation19 + $0x754] sm:$0xf] }
 0x34f   :  { %v6717_v41 = vld [vmem:[#allocation19 + $0x66c] sm:$0xf0]  ;;  %v5876_v24 = vor.u32 %v6753_v15, %v5873_v19  ;;  %v6545_v32 = vld [vmem:[#allocation19 + $0x114] sm:$0xf] }
 0x350   :  { %3034 = vmatpush.bf16.msrb.mxu2 %v5520_v34  ;;  %v4911_v42 = vld [vmem:[#allocation19 + $0x10] sm:$0xf]  ;;  %3009 = vmatpush.bf16.msrb.mxu1 %v4976_v31  ;;  %v5712_v49 = vor.u32 %v6717_v41, %v5711_v9  ;;  %v5073_v34 = vld [vmem:[#allocation19 + $0x170] sm:$0xf0] }
 0x351   :  { %v6517_v6 = vld [vmem:[#allocation19 + $0x2c] sm:$0xf0]  ;;  %v5841_v31 = vld [vmem:[#allocation19 + $0x770] sm:$0xf0] }
 0x352   :  { %3047 = vmatpush.bf16.msrb.mxu3 %v5776_v21  ;;  %3022 = vmatpush.bf16.msrb.mxu0 %v5232_v36  ;;  %v5167_v45 = vld [vmem:[#allocation19 + $0x210] sm:$0xf]  ;;  %v4912_v60 = vor.u32 %v6517_v6, %v4911_v42  ;;  %v5620_v21 = vor.u32 %v6689_v14, %v5617_v58  ;;  %v5076_v36 = vor.u32 %v6553_v40, %v5073_v34  ;;  %v6609_v39 = vld [vmem:[#allocation19 + $0x314] sm:$0xf] }
 0x353   :  { %v6581_v37 = vld [vmem:[#allocation19 + $0x22c] sm:$0xf0]  ;;  %v5844_v43 = vor.u32 %v6745_v28, %v5841_v31  ;;  %v5297_v63 = vld [vmem:[#allocation19 + $0x330] sm:$0xf0] }
 0x354   :  { %3035 = vmatpush.bf16.msrb.mxu2 %v5488_v35  ;;  %v5423_v50 = vld [vmem:[#allocation19 + $0x410] sm:$0xf]  ;;  %3010 = vmatpush.bf16.msrb.mxu1 %v4944_v61  ;;  %v5168_v0 = vor.u32 %v6581_v37, %v5167_v45  ;;  %v5041_v35 = vld [vmem:[#allocation19 + $0x130] sm:$0xf0] }
 0x355   :  { %v6645_v51 = vld [vmem:[#allocation19 + $0x42c] sm:$0xf0]  ;;  %v6673_v30 = vld [vmem:[#allocation19 + $0x514] sm:$0xf]  ;;  %v5044_v61 = vor.u32 %v6545_v32, %v5041_v35  ;;  %v6574_v32 = vld [vmem:[#allocation19 + $0x1f4] sm:$0xf0] }
 0x356   :  { %3048 = vmatpush.bf16.msrb.mxu3 %v5744_v38  ;;  %v5679_v52 = vld [vmem:[#allocation19 + $0x610] sm:$0xf]  ;;  %3023 = vmatpush.bf16.msrb.mxu0 %v5200_v44  ;;  %v5424_v2 = vor.u32 %v6645_v51, %v5423_v50  ;;  %v5588_v38 = vor.u32 %v6681_v25, %v5585_v27  ;;  %v5553_v9 = vld [vmem:[#allocation19 + $0x530] sm:$0xf0]  ;;  %v5300_v44 = vor.u32 %v6609_v39, %v5297_v63  ;;  %v5399_v35 = vld [vmem:[#allocation19 + $0x3d8] sm:$0xf] }
 0x357   :  { %v6709_v53 = vld [vmem:[#allocation19 + $0x62c] sm:$0xf0]  ;;  %v6737_v41 = vld [vmem:[#allocation19 + $0x714] sm:$0xf]  ;;  %v5556_v37 = vor.u32 %v6673_v30, %v5553_v9  ;;  %v6702_v30 = vld [vmem:[#allocation19 + $0x5f4] sm:$0xf0] }
 0x358   :  { %3036 = vmatpush.bf16.msrb.mxu2 %v5456_v47  ;;  %v5680_v46 = vor.u32 %v6709_v53, %v5679_v52  ;;  %3011 = vmatpush.bf16.msrb.mxu1 %v4912_v60  ;;  %v5809_v42 = vld [vmem:[#allocation19 + $0x730] sm:$0xf0]  ;;  %v5911_v9 = vld [vmem:[#allocation19 + $0x7d8] sm:$0xf] }
 0x359   :  { %v6537_v6 = vld [vmem:[#allocation19 + $0xd4] sm:$0xf]  ;;  %v5812_v47 = vor.u32 %v6737_v41, %v5809_v42  ;;  %v6766_v41 = vld [vmem:[#allocation19 + $0x7f4] sm:$0xf0] }
 0x35a   :  { %3049 = vmatpush.bf16.msrb.mxu3 %v5712_v49  ;;  %3024 = vmatpush.bf16.msrb.mxu0 %v5168_v0  ;;  %v5009_v45 = vld [vmem:[#allocation19 + $0xf0] sm:$0xf0] }
 0x35b   :  { %3012 = vmatmul.bf16.vlgmr.msrb.gmra.mxu1 %v7650_v12  ;;  %v6601_v49 = vld [vmem:[#allocation19 + $0x2d4] sm:$0xf]  ;;  %v5012_v55 = vor.u32 %v6537_v6, %v5009_v45  ;;  %v5111_v45 = vld [vmem:[#allocation19 + $0x198] sm:$0xf] }
 0x35c   :  { %3037 = vmatpush.bf16.msrb.mxu2 %v5424_v2  ;;  %3056 = vmatpush.bf16.msra.mxu1 %v5140_v4  ;;  %v5265_v50 = vld [vmem:[#allocation19 + $0x2f0] sm:$0xf0] }
 0x35d   :  { %3025 = vmatmul.bf16.vlgmr.msrb.gmra.mxu0 %v7652_v13  ;;  %v6665_v51 = vld [vmem:[#allocation19 + $0x4d4] sm:$0xf]  ;;  %v5268_v56 = vor.u32 %v6601_v49, %v5265_v50  ;;  %v5912_v50 = vor.u32 %v6766_v41, %v5911_v9  ;;  %v6734_v9 = vld [vmem:[#allocation19 + $0x6f4] sm:$0xf0] }
 0x35e   :  { %3050 = vmatpush.bf16.msrb.mxu3 %v5680_v46  ;;  %3069 = vmatpush.bf16.msra.mxu0 %v5396_v22  ;;  %v5521_v52 = vld [vmem:[#allocation19 + $0x4f0] sm:$0xf0] }
 0x35f   :  { %3038 = vmatmul.bf16.vlgmr.msrb.gmra.mxu2 %v7656_v18  ;;  %v6729_v53 = vld [vmem:[#allocation19 + $0x6d4] sm:$0xf]  ;;  %v5524_v60 = vor.u32 %v6665_v51, %v5521_v52  ;;  %v6630_v51 = vld [vmem:[#allocation19 + $0x3b4] sm:$0xf0] }
 0x360   :  { %3082 = vmatpush.bf16.msra.mxu2 %v5652_v7  ;;  %3057 = vmatpush.bf16.msra.mxu1 %v5108_v62  ;;  %v5777_v54 = vld [vmem:[#allocation19 + $0x6f0] sm:$0xf0]  ;;  %v5623_v52 = vld [vmem:[#allocation19 + $0x598] sm:$0xf] }
 0x361   :  { %3051 = vmatmul.bf16.vlgmr.msrb.gmra.mxu3 %v7654_v16  ;;  %v6529_v57 = vld [vmem:[#allocation19 + $0x94] sm:$0xf]  ;;  %v5780_v0 = vor.u32 %v6729_v53, %v5777_v54  ;;  %v6694_v54 = vld [vmem:[#allocation19 + $0x5b4] sm:$0xf0] }
 0x362   :  { %3095 = vmatpush.bf16.msra.mxu3 %v5908_v8  ;;  %3070 = vmatpush.bf16.msra.mxu0 %v5364_v20  ;;  %v4977_v59 = vld [vmem:[#allocation19 + $0xb0] sm:$0xf0] }
 0x363   :  { %v6593_v1 = vld [vmem:[#allocation19 + $0x294] sm:$0xf]  ;;  %v4980_v22 = vor.u32 %v6529_v57, %v4977_v59 }
 0x364   :  { %3083 = vmatpush.bf16.msra.mxu2 %v5620_v21  ;;  %3058 = vmatpush.bf16.msra.mxu1 %v5076_v36  ;;  %v6657_v3 = vld [vmem:[#allocation19 + $0x494] sm:$0xf]  ;;  %v5236_v33 = vor.u32 %v6593_v1, %v5233_v48  ;;  %v5624_v48 = vor.u32 %v6694_v54, %v5623_v52  ;;  %v6598_v52 = vld [vmem:[#allocation19 + $0x2b4] sm:$0xf0] }
 0x365   :  { %v5489_v2 = vld [vmem:[#allocation19 + $0x4b0] sm:$0xf0]  ;;  %v5495_v54 = vld [vmem:[#allocation19 + $0x498] sm:$0xf] }
 0x366   :  { %3096 = vmatpush.bf16.msra.mxu3 %v5876_v24  ;;  %3071 = vmatpush.bf16.msra.mxu0 %v5332_v29  ;;  %v6721_v46 = vld [vmem:[#allocation19 + $0x694] sm:$0xf]  ;;  %v5492_v8 = vor.u32 %v6657_v3, %v5489_v2  ;;  %v5143_v29 = vld [vmem:[#allocation19 + $0x1d8] sm:$0xf] }
 0x367   :  { %v5745_v4 = vld [vmem:[#allocation19 + $0x6b0] sm:$0xf0]  ;;  %v5335_v2 = vld [vmem:[#allocation19 + $0x358] sm:$0xf] }
 0x368   :  { %3084 = vmatpush.bf16.msra.mxu2 %v5588_v38  ;;  %3059 = vmatpush.bf16.msra.mxu1 %v5044_v61  ;;  %v6521_v5 = vld [vmem:[#allocation19 + $0x54] sm:$0xf]  ;;  %v5748_v10 = vor.u32 %v6721_v46, %v5745_v4  ;;  %v6638_v38 = vld [vmem:[#allocation19 + $0x3f4] sm:$0xf0] }
 0x369   :  { %v4945_v7 = vld [vmem:[#allocation19 + $0x70] sm:$0xf0]  ;;  %v5400_v6 = vor.u32 %v6638_v38, %v5399_v35  ;;  %v6622_v46 = vld [vmem:[#allocation19 + $0x374] sm:$0xf0] }
 0x36a   :  { %3097 = vmatpush.bf16.msra.mxu3 %v5844_v43  ;;  %3072 = vmatpush.bf16.msra.mxu0 %v5300_v44  ;;  %v6585_v11 = vld [vmem:[#allocation19 + $0x254] sm:$0xf]  ;;  %v4948_v40 = vor.u32 %v6521_v5, %v4945_v7  ;;  %v5655_v43 = vld [vmem:[#allocation19 + $0x5d8] sm:$0xf]  ;;  %v5144_v44 = vor.u32 %v6574_v32, %v5143_v29 }
 0x36b   :  { %v5201_v14 = vld [vmem:[#allocation19 + $0x270] sm:$0xf0]  ;;  %v5656_v49 = vor.u32 %v6702_v30, %v5655_v43  ;;  %v5591_v4 = vld [vmem:[#allocation19 + $0x558] sm:$0xf] }
 0x36c   :  { %3085 = vmatpush.bf16.msra.mxu2 %v5556_v37  ;;  %3060 = vmatpush.bf16.msra.mxu1 %v5012_v55  ;;  %v6649_v58 = vld [vmem:[#allocation19 + $0x454] sm:$0xf]  ;;  %v5204_v34 = vor.u32 %v6585_v11, %v5201_v14  ;;  %v6566_v37 = vld [vmem:[#allocation19 + $0x1b4] sm:$0xf0]  ;;  %v5336_v11 = vor.u32 %v6622_v46, %v5335_v2 }
 0x36d   :  { %v5457_v15 = vld [vmem:[#allocation19 + $0x470] sm:$0xf0]  ;;  %v5879_v55 = vld [vmem:[#allocation19 + $0x798] sm:$0xf]  ;;  %v5112_v57 = vor.u32 %v6566_v37, %v5111_v45 }
 0x36e   :  { %3098 = vmatpush.bf16.msra.mxu3 %v5812_v47  ;;  %3073 = vmatpush.bf16.msra.mxu0 %v5268_v56  ;;  %v6713_v19 = vld [vmem:[#allocation19 + $0x654] sm:$0xf]  ;;  %v5460_v26 = vor.u32 %v6649_v58, %v5457_v15  ;;  %v5367_v47 = vld [vmem:[#allocation19 + $0x398] sm:$0xf] }
 0x36f   :  { %v5713_v62 = vld [vmem:[#allocation19 + $0x670] sm:$0xf0]  ;;  %v6758_v56 = vld [vmem:[#allocation19 + $0x7b4] sm:$0xf0]  ;;  %v5368_v59 = vor.u32 %v6630_v51, %v5367_v47 }
 0x370   :  { %3086 = vmatpush.bf16.msra.mxu2 %v5524_v60  ;;  %v6513_v20 = vld [vmem:[#allocation19 + $0x14] sm:$0xf]  ;;  %3061 = vmatpush.bf16.msra.mxu1 %v4980_v22  ;;  %v5716_v25 = vor.u32 %v6713_v19, %v5713_v62  ;;  %v5079_v60 = vld [vmem:[#allocation19 + $0x158] sm:$0xf]  ;;  %v5880_v3 = vor.u32 %v6758_v56, %v5879_v55 }
 0x371   :  { %v4913_v21 = vld [vmem:[#allocation19 + $0x30] sm:$0xf0]  ;;  %v6686_v22 = vld [vmem:[#allocation19 + $0x574] sm:$0xf0] }
 0x372   :  { %3099 = vmatpush.bf16.msra.mxu3 %v5780_v0  ;;  %3074 = vmatpush.bf16.msra.mxu0 %v5236_v33  ;;  %v6577_v24 = vld [vmem:[#allocation19 + $0x214] sm:$0xf]  ;;  %v4916_v39 = vor.u32 %v6513_v20, %v4913_v21  ;;  %v6558_v0 = vld [vmem:[#allocation19 + $0x174] sm:$0xf0]  ;;  %v5592_v19 = vor.u32 %v6686_v22, %v5591_v4 }
 0x373   :  { %v5169_v23 = vld [vmem:[#allocation19 + $0x230] sm:$0xf0]  ;;  %v5847_v33 = vld [vmem:[#allocation19 + $0x758] sm:$0xf] }
 0x374   :  { %3087 = vmatpush.bf16.msra.mxu2 %v5492_v8  ;;  %v6641_v27 = vld [vmem:[#allocation19 + $0x414] sm:$0xf]  ;;  %3062 = vmatpush.bf16.msra.mxu1 %v4948_v40  ;;  %v5172_v63 = vor.u32 %v6577_v24, %v5169_v23  ;;  %v6750_v5 = vld [vmem:[#allocation19 + $0x774] sm:$0xf0]  ;;  %v2805_v7 = vpop.f32.mrf.mxu1  ;;  %v2818_v8 = vpop.f32.mrf.mxu0 }
 0x375   :  { %v5425_v28 = vld [vmem:[#allocation19 + $0x430] sm:$0xf0]  ;;  %v5047_v58 = vld [vmem:[#allocation19 + $0x118] sm:$0xf]  ;;  %v5848_v62 = vor.u32 %v6750_v5, %v5847_v33 }
 0x376   :  { %3100 = vmatpush.bf16.msra.mxu3 %v5748_v10  ;;  %v6705_v31 = vld [vmem:[#allocation19 + $0x614] sm:$0xf]  ;;  %3075 = vmatpush.bf16.msra.mxu0 %v5204_v34  ;;  %v5428_v42 = vor.u32 %v6641_v27, %v5425_v28  ;;  %v5080_v10 = vor.u32 %v6558_v0, %v5079_v60  ;;  %v6550_v15 = vld [vmem:[#allocation19 + $0x134] sm:$0xf0] }
 0x377   :  { %v5681_v36 = vld [vmem:[#allocation19 + $0x630] sm:$0xf0]  ;;  %v5303_v20 = vld [vmem:[#allocation19 + $0x318] sm:$0xf] }
 0x378   :  { %3088 = vmatpush.bf16.msra.mxu2 %v5460_v26  ;;  %v5684_v61 = vor.u32 %v6705_v31, %v5681_v36  ;;  %v7681_v53 = vld [vmem:[%s7983_s14] sm:$0xff]  ;;  %3063 = vmatpush.bf16.msra.mxu1 %v4916_v39 }
 0x379   :  { %v1500_v1 = vperm.slane %v7681_v53, 0  ;;  %v6614_v40 = vld [vmem:[#allocation19 + $0x334] sm:$0xf0] }
 0x37a   :  { %3101 = vmatpush.bf16.msra.mxu3 %v5716_v25  ;;  %3076 = vmatpush.bf16.msra.mxu0 %v5172_v63  ;;  %v5559_v34 = vld [vmem:[#allocation19 + $0x518] sm:$0xf]  ;;  %v5048_v25 = vor.u32 %v6550_v15, %v5047_v58  ;;  %v5304_v27 = vor.u32 %v6614_v40, %v5303_v20 }
 0x37b   :  { %3064 = vmatmul.bf16.vlgmr.msra.gmra.mxu1 %v7650_v12  ;;  %v2806_v14 = vadd.f32 %v2805_v7, %v1500_v1  ;;  %v6678_v24 = vld [vmem:[#allocation19 + $0x534] sm:$0xf0]  ;;  %v2831_v43 = vpop.f32.mrf.mxu2  ;;  %v2844_v39 = vpop.f32.mrf.mxu3 }
 0x37c   :  { %3089 = vmatpush.bf16.msra.mxu2 %v5428_v42  ;;  %3108 = vmatpush.bf16.msrb.mxu1 %v5144_v44  ;;  %v5815_v23 = vld [vmem:[#allocation19 + $0x718] sm:$0xf]  ;;  %v5560_v36 = vor.u32 %v6678_v24, %v5559_v34  ;;  %v2807_v42 = vpop.f32.mrf.mxu1 }
 0x37d   :  { %3077 = vmatmul.bf16.vlgmr.msra.gmra.mxu0 %v7652_v13  ;;  %v2819_v21 = vadd.f32 %v2818_v8, %v2806_v14  ;;  %v6742_v26 = vld [vmem:[#allocation19 + $0x734] sm:$0xf0]  ;;  %v5657_v42 = vld [vmem:[#allocation19 + $0x5f8] sm:$0xf0] }
 0x37e   :  { %3102 = vmatpush.bf16.msra.mxu3 %v5684_v61  ;;  %3121 = vmatpush.bf16.msrb.mxu0 %v5400_v6  ;;  %v5015_v28 = vld [vmem:[#allocation19 + $0xd8] sm:$0xf]  ;;  %v5816_v29 = vor.u32 %v6742_v26, %v5815_v23  ;;  %v2820_v61 = vpop.f32.mrf.mxu0 }
 0x37f   :  { %3090 = vmatmul.bf16.vlgmr.msra.gmra.mxu2 %v7656_v18  ;;  %v6542_v31 = vld [vmem:[#allocation19 + $0xf4] sm:$0xf0]  ;;  %v2832_v41 = vadd.f32 %v2831_v43, %v2819_v21  ;;  %v6634_v43 = vld [vmem:[#allocation19 + $0x3dc] sm:$0xf] }
 0x380   :  { %3134 = vmatpush.bf16.msrb.mxu2 %v5656_v49  ;;  %3109 = vmatpush.bf16.msrb.mxu1 %v5112_v57  ;;  %v5271_v32 = vld [vmem:[#allocation19 + $0x2d8] sm:$0xf]  ;;  %v5016_v44 = vor.u32 %v6542_v31, %v5015_v28  ;;  %v6762_v61 = vld [vmem:[#allocation19 + $0x7dc] sm:$0xf] }
 0x381   :  { %3103 = vmatmul.bf16.vlgmr.msra.gmra.mxu3 %v7654_v16  ;;  %v6606_v35 = vld [vmem:[#allocation19 + $0x2f4] sm:$0xf0]  ;;  %v7688_v47 = vadd.f32 %v2844_v39, %v2832_v41 }
 0x382   :  { %3147 = vmatpush.bf16.msrb.mxu3 %v5912_v50  ;;  %3122 = vmatpush.bf16.msrb.mxu0 %v5368_v59  ;;  %v5527_v38 = vld [vmem:[#allocation19 + $0x4d8] sm:$0xf]  ;;  %v5272_v6 = vor.u32 %v6606_v35, %v5271_v32  ;;  %v6570_v35 = vld [vmem:[#allocation19 + $0x1dc] sm:$0xf] }
 0x383   :  { %v6670_v63 = vld [vmem:[#allocation19 + $0x4f4] sm:$0xf0]  ;;  %v3212_v59 = vrot.slane %v7688_v47, 4  ;;  %v2833_v7 = vpop.f32.mrf.mxu2  ;;  %v2846_v8 = vpop.f32.mrf.mxu3 }
 0x384   :  { %3135 = vmatpush.bf16.msrb.mxu2 %v5624_v48  ;;  %3110 = vmatpush.bf16.msrb.mxu1 %v5080_v10  ;;  %v5783_v30 = vld [vmem:[#allocation19 + $0x6d8] sm:$0xf]  ;;  %v5528_v49 = vor.u32 %v6670_v63, %v5527_v38  ;;  %v2857_v15 = vpop.f32.mrf.mxu1  ;;  %v5145_v38 = vld [vmem:[#allocation19 + $0x1f8] sm:$0xf0] }
 0x385   :  { %v4983_v45 = vld [vmem:[#allocation19 + $0x98] sm:$0xf]  ;;  %v5784_v50 = vor.u32 %v6734_v9, %v5783_v30  ;;  %v3213_v2 = vadd.f32 %v3212_v59, %v7688_v47  ;;  %v5401_v63 = vld [vmem:[#allocation19 + $0x3f8] sm:$0xf0] }
 0x386   :  { %3148 = vmatpush.bf16.msrb.mxu3 %v5880_v3  ;;  %3123 = vmatpush.bf16.msrb.mxu0 %v5336_v11  ;;  %v6534_v37 = vld [vmem:[#allocation19 + $0xb4] sm:$0xf0]  ;;  %v1501_v3 = vperm.slane %v7681_v53, 1  ;;  %v6698_v30 = vld [vmem:[#allocation19 + $0x5dc] sm:$0xf] }
 0x387   :  { %v5239_v51 = vld [vmem:[#allocation19 + $0x298] sm:$0xf]  ;;  %v4984_v60 = vor.u32 %v6534_v37, %v4983_v45  ;;  %v3214_v58 = vrot.slane %v3213_v2, 2 }
 0x388   :  { %3136 = vmatpush.bf16.msrb.mxu2 %v5592_v19  ;;  %3111 = vmatpush.bf16.msrb.mxu1 %v5048_v25  ;;  %v6662_v55 = vld [vmem:[#allocation19 + $0x4b4] sm:$0xf0]  ;;  %v5240_v0 = vor.u32 %v6598_v52, %v5239_v51  ;;  %v2870_v19 = vpop.f32.mrf.mxu0  ;;  %v2858_v21 = vadd.f32 %v2857_v15, %v1501_v3  ;;  %v5369_v3 = vld [vmem:[#allocation19 + $0x3b8] sm:$0xf0] }
 0x389   :  { %v5751_v56 = vld [vmem:[#allocation19 + $0x698] sm:$0xf]  ;;  %v5496_v46 = vor.u32 %v6662_v55, %v5495_v54  ;;  %v3215_v25 = vadd.f32 %v3214_v58, %v3213_v2  ;;  %v6562_v54 = vld [vmem:[#allocation19 + $0x19c] sm:$0xf] }
 0x38a   :  { %3149 = vmatpush.bf16.msrb.mxu3 %v5848_v62  ;;  %3124 = vmatpush.bf16.msrb.mxu0 %v5304_v27  ;;  %v6726_v57 = vld [vmem:[#allocation19 + $0x6b4] sm:$0xf0]  ;;  %v2871_v32 = vadd.f32 %v2870_v19, %v2858_v21  ;;  %v5113_v55 = vld [vmem:[#allocation19 + $0x1b8] sm:$0xf0] }
 0x38b   :  { %v4951_v1 = vld [vmem:[#allocation19 + $0x58] sm:$0xf]  ;;  %v5752_v4 = vor.u32 %v6726_v57, %v5751_v56  ;;  %v3216_v39 = vrot.slane %v3215_v25, 1  ;;  %v2883_v51 = vpop.f32.mrf.mxu2  ;;  %v2896_v52 = vpop.f32.mrf.mxu3  ;;  %v5660_v57 = vor.u32 %v6698_v30, %v5657_v42  ;;  %v6690_v2 = vld [vmem:[#allocation19 + $0x59c] sm:$0xf]  ;;  %v5116_v7 = vor.u32 %v6562_v54, %v5113_v55 }
 0x38c   :  { %3137 = vmatpush.bf16.msrb.mxu2 %v5560_v36  ;;  %3112 = vmatpush.bf16.msrb.mxu1 %v5016_v44  ;;  %v6526_v48 = vld [vmem:[#allocation19 + $0x74] sm:$0xf0]  ;;  %v5913_v44 = vld [vmem:[#allocation19 + $0x7f8] sm:$0xf0] }
 0x38d   :  { %v5207_v22 = vld [vmem:[#allocation19 + $0x258] sm:$0xf]  ;;  %v4952_v40 = vor.u32 %v6526_v48, %v4951_v1  ;;  %v5916_v59 = vor.u32 %v6762_v61, %v5913_v44  ;;  %v6626_v48 = vld [vmem:[#allocation19 + $0x39c] sm:$0xf] }
 0x38e   :  { %3150 = vmatpush.bf16.msrb.mxu3 %v5816_v29  ;;  %3125 = vmatpush.bf16.msrb.mxu0 %v5272_v6  ;;  %v6590_v33 = vld [vmem:[#allocation19 + $0x274] sm:$0xf0]  ;;  %v3217_v6 = vadd.f32 %v3216_v39, %v3215_v25  ;;  %v5372_v8 = vor.u32 %v6626_v48, %v5369_v3  ;;  %v6746_v21 = vld [vmem:[#allocation19 + $0x75c] sm:$0xf] }
 0x38f   :  { %v5463_v5 = vld [vmem:[#allocation19 + $0x458] sm:$0xf]  ;;  %v5208_v34 = vor.u32 %v6590_v33, %v5207_v22  ;;  %v5881_v22 = vld [vmem:[#allocation19 + $0x7b8] sm:$0xf0] }
 0x390   :  { %3138 = vmatpush.bf16.msrb.mxu2 %v5528_v49  ;;  %v6654_v10 = vld [vmem:[#allocation19 + $0x474] sm:$0xf0]  ;;  %3113 = vmatpush.bf16.msrb.mxu1 %v4984_v60  ;;  %v5148_v49 = vor.u32 %v6570_v35, %v5145_v38  ;;  %v7694_v56 = vmul.f32 %v3217_v6, %v7503_v17  ;;  %v2884_v60 = vadd.f32 %v2883_v51, %v2871_v32  ;;  %v2872_v1 = vpop.f32.mrf.mxu0  ;;  %v6546_v25 = vld [vmem:[#allocation19 + $0x11c] sm:$0xf] }
 0x391   :  { %v5719_v11 = vld [vmem:[#allocation19 + $0x658] sm:$0xf]  ;;  %v5464_v27 = vor.u32 %v6654_v10, %v5463_v5  ;;  %v6554_v10 = vld [vmem:[#allocation19 + $0x15c] sm:$0xf] }
 0x392   :  { %3151 = vmatpush.bf16.msrb.mxu3 %v5784_v50  ;;  %v6718_v14 = vld [vmem:[#allocation19 + $0x674] sm:$0xf0]  ;;  %3126 = vmatpush.bf16.msrb.mxu0 %v5240_v0  ;;  %v5404_v50 = vor.u32 %v6634_v43, %v5401_v63  ;;  %v2859_v0 = vpop.f32.mrf.mxu1  ;;  %v3268_v33 = vsub.f32 %v7688_v47, %v7694_v56  ;;  %v7698_v5 = vadd.f32 %v2896_v52, %v2884_v60  ;;  %v5049_v32 = vld [vmem:[#allocation19 + $0x138] sm:$0xf0] }
 0x393   :  { %v4919_v62 = vld [vmem:[#allocation19 + $0x18] sm:$0xf]  ;;  %v5720_v28 = vor.u32 %v6718_v14, %v5719_v11  ;;  %v5081_v11 = vld [vmem:[#allocation19 + $0x178] sm:$0xf0]  ;;  %v5052_v51 = vor.u32 %v6546_v25, %v5049_v32 }
 0x394   :  { %v6518_v20 = vld [vmem:[#allocation19 + $0x34] sm:$0xf0]  ;;  %3139 = vmatpush.bf16.msrb.mxu2 %v5496_v46  ;;  %3114 = vmatpush.bf16.msrb.mxu1 %v4952_v40  ;;  %v5625_v46 = vld [vmem:[#allocation19 + $0x5b8] sm:$0xf0]  ;;  %v3276_v58 = vmul.f32 %v3268_v33, %v3268_v33  ;;  %v3218_v15 = vrot.slane %v7698_v5, 4 }
 0x395   :  { %v5175_v24 = vld [vmem:[#allocation19 + $0x218] sm:$0xf]  ;;  %v4920_v9 = vor.u32 %v6518_v20, %v4919_v62  ;;  %v6618_v14 = vld [vmem:[#allocation19 + $0x35c] sm:$0xf]  ;;  %v5628_v19 = vor.u32 %v6690_v2, %v5625_v46 }
 0x396   :  { %v6582_v23 = vld [vmem:[#allocation19 + $0x234] sm:$0xf0]  ;;  %3152 = vmatpush.bf16.msrb.mxu3 %v5752_v4  ;;  %3127 = vmatpush.bf16.msrb.mxu0 %v5208_v34  ;;  %v6754_v4 = vld [vmem:[#allocation19 + $0x79c] sm:$0xf] }
 0x397   :  { %v5431_v26 = vld [vmem:[#allocation19 + $0x418] sm:$0xf]  ;;  %v5176_v41 = vor.u32 %v6582_v23, %v5175_v24  ;;  %v5884_v62 = vor.u32 %v6754_v4, %v5881_v22  ;;  %v5337_v20 = vld [vmem:[#allocation19 + $0x378] sm:$0xf0]  ;;  %v3284_v23 = vrot.slane %v3276_v58, 4 }
 0x398   :  { %v6646_v31 = vld [vmem:[#allocation19 + $0x434] sm:$0xf0]  ;;  %3140 = vmatpush.bf16.msrb.mxu2 %v5464_v27  ;;  %3115 = vmatpush.bf16.msrb.mxu1 %v4920_v9  ;;  %v6682_v40 = vld [vmem:[#allocation19 + $0x55c] sm:$0xf]  ;;  %v5084_v27 = vor.u32 %v6554_v10, %v5081_v11 }
 0x399   :  { %v5687_v36 = vld [vmem:[#allocation19 + $0x618] sm:$0xf]  ;;  %v5432_v45 = vor.u32 %v6646_v31, %v5431_v26  ;;  %v5593_v34 = vld [vmem:[#allocation19 + $0x578] sm:$0xf0]  ;;  %v3219_v26 = vadd.f32 %v3218_v15, %v7698_v5  ;;  %v2885_v31 = vpop.f32.mrf.mxu2  ;;  %v3285_v38 = vadd.f32 %v3284_v23, %v3276_v58 }
 0x39a   :  { %v6710_v29 = vld [vmem:[#allocation19 + $0x634] sm:$0xf0]  ;;  %3153 = vmatpush.bf16.msrb.mxu3 %v5720_v28  ;;  %3128 = vmatpush.bf16.msrb.mxu0 %v5176_v41  ;;  %v5849_v24 = vld [vmem:[#allocation19 + $0x778] sm:$0xf0]  ;;  %v5340_v28 = vor.u32 %v6618_v14, %v5337_v20  ;;  %v5596_v39 = vor.u32 %v6682_v40, %v5593_v34 }
 0x39b   :  { %v5688_v37 = vor.u32 %v6710_v29, %v5687_v36  ;;  %3116 = vmatmul.bf16.vlgmr.msrb.gmra.mxu1 %v7650_v12  ;;  %v2898_v36 = vpop.f32.mrf.mxu3  ;;  %v1502_v29 = vperm.slane %v7681_v53, 2  ;;  %v6610_v35 = vld [vmem:[#allocation19 + $0x31c] sm:$0xf]  ;;  %v3220_v43 = vrot.slane %v3219_v26, 2  ;;  %v5852_v63 = vor.u32 %v6746_v21, %v5849_v24 }
 0x39c   :  { %3141 = vmatpush.bf16.msrb.mxu2 %v5432_v45  ;;  %3160 = vmatpush.bf16.msra.mxu1 %v5148_v49  ;;  %v5305_v30 = vld [vmem:[#allocation19 + $0x338] sm:$0xf0]  ;;  %v3286_v44 = vrot.slane %v3285_v38, 2  ;;  %v2909_v45 = vpop.f32.mrf.mxu1 }
 0x39d   :  { %3129 = vmatmul.bf16.vlgmr.msrb.gmra.mxu0 %v7652_v13  ;;  %v6674_v9 = vld [vmem:[#allocation19 + $0x51c] sm:$0xf]  ;;  %v3221_v6 = vadd.f32 %v3220_v43, %v3219_v26  ;;  %v5308_v52 = vor.u32 %v6610_v35, %v5305_v30 }
 0x39e   :  { %3154 = vmatpush.bf16.msrb.mxu3 %v5688_v37  ;;  %3173 = vmatpush.bf16.msra.mxu0 %v5404_v50  ;;  %v5561_v41 = vld [vmem:[#allocation19 + $0x538] sm:$0xf0]  ;;  %v2922_v37 = vpop.f32.mrf.mxu0  ;;  %v2910_v50 = vadd.f32 %v2909_v45, %v1502_v29 }
 0x39f   :  { %3142 = vmatmul.bf16.vlgmr.msrb.gmra.mxu2 %v7656_v18  ;;  %v6738_v42 = vld [vmem:[#allocation19 + $0x71c] sm:$0xf]  ;;  %v3222_v60 = vrot.slane %v3221_v6, 1  ;;  %v5564_v0 = vor.u32 %v6674_v9, %v5561_v41 }
 0x3a0   :  { %3186 = vmatpush.bf16.msra.mxu2 %v5660_v57  ;;  %3161 = vmatpush.bf16.msra.mxu1 %v5116_v7  ;;  %v5817_v61 = vld [vmem:[#allocation19 + $0x738] sm:$0xf0]  ;;  %v2923_v2 = vadd.f32 %v2922_v37, %v2910_v50 }
 0x3a1   :  { %3155 = vmatmul.bf16.vlgmr.msrb.gmra.mxu3 %v7654_v16  ;;  %v6538_v49 = vld [vmem:[#allocation19 + $0xdc] sm:$0xf]  ;;  %v5820_v1 = vor.u32 %v6738_v42, %v5817_v61  ;;  %v3223_v33 = vadd.f32 %v3222_v60, %v3221_v6 }
 0x3a2   :  { %3199 = vmatpush.bf16.msra.mxu3 %v5916_v59  ;;  %3174 = vmatpush.bf16.msra.mxu0 %v5372_v8  ;;  %v5017_v54 = vld [vmem:[#allocation19 + $0xf8] sm:$0xf0]  ;;  %v3287_v59 = vadd.f32 %v3286_v44, %v3285_v38  ;;  %v2935_v21 = vpop.f32.mrf.mxu2 }
 0x3a3   :  { %v6602_v55 = vld [vmem:[#allocation19 + $0x2dc] sm:$0xf]  ;;  %v5020_v7 = vor.u32 %v6538_v49, %v5017_v54 }
 0x3a4   :  { %3187 = vmatpush.bf16.msra.mxu2 %v5628_v19  ;;  %3162 = vmatpush.bf16.msra.mxu1 %v5084_v27  ;;  %v5273_v57 = vld [vmem:[#allocation19 + $0x2f8] sm:$0xf0]  ;;  %v3288_v22 = vrot.slane %v3287_v59, 1  ;;  %v7708_v19 = vmul.f32 %v3223_v33, %v7503_v17  ;;  %v2948_v24 = vpop.f32.mrf.mxu3  ;;  %v2911_v31 = vpop.f32.mrf.mxu1 }
 0x3a5   :  { %v6666_v48 = vld [vmem:[#allocation19 + $0x4dc] sm:$0xf]  ;;  %v5276_v8 = vor.u32 %v6602_v55, %v5273_v57  ;;  %v1503_v31 = vperm.slane %v7681_v53, 3 }
 0x3a6   :  { %3200 = vmatpush.bf16.msra.mxu3 %v5884_v62  ;;  %3175 = vmatpush.bf16.msra.mxu0 %v5340_v28  ;;  %v5529_v3 = vld [vmem:[#allocation19 + $0x4f8] sm:$0xf0]  ;;  %v3289_v15 = vadd.f32 %v3288_v22, %v3287_v59  ;;  %v3269_v27 = vsub.f32 %v7698_v5, %v7708_v19  ;;  %v2936_v28 = vadd.f32 %v2935_v21, %v2923_v2  ;;  %v2924_v36 = vpop.f32.mrf.mxu0 }
 0x3a7   :  { %v6730_v46 = vld [vmem:[#allocation19 + $0x6dc] sm:$0xf]  ;;  %v5532_v10 = vor.u32 %v6666_v48, %v5529_v3 }
 0x3a8   :  { %3188 = vmatpush.bf16.msra.mxu2 %v5596_v39  ;;  %v5785_v4 = vld [vmem:[#allocation19 + $0x6f8] sm:$0xf0]  ;;  %3163 = vmatpush.bf16.msra.mxu1 %v5052_v51  ;;  %v3332_v25 = vmul.f32 %v3289_v15, %v7503_v17  ;;  %v3277_v9 = vmul.f32 %v3269_v27, %v3269_v27  ;;  %v7715_v41 = vadd.f32 %v2948_v24, %v2936_v28 }
 0x3a9   :  { %v6530_v11 = vld [vmem:[#allocation19 + $0x9c] sm:$0xf]  ;;  %v5788_v62 = vor.u32 %v6730_v46, %v5785_v4 }
 0x3aa   :  { %3201 = vmatpush.bf16.msra.mxu3 %v5852_v63  ;;  %3176 = vmatpush.bf16.msra.mxu0 %v5308_v52  ;;  %v4985_v14 = vld [vmem:[#allocation19 + $0xb8] sm:$0xf0]  ;;  %v7713_v30 = vadd.f32 0.8, %v3332_v25  ;;  %v3290_v37 = vrot.slane %v3277_v9, 4  ;;  %v3224_v49 = vrot.slane %v7715_v41, 4  ;;  %v2937_v2 = vpop.f32.mrf.mxu2 }
 0x3ab   :  { %v6594_v58 = vld [vmem:[#allocation19 + $0x29c] sm:$0xf]  ;;  %v4988_v32 = vor.u32 %v6530_v11, %v4985_v14 }
 0x3ac   :  { %3189 = vmatpush.bf16.msra.mxu2 %v5564_v0  ;;  %v5241_v20 = vld [vmem:[#allocation19 + $0x2b8] sm:$0xf0]  ;;  %3164 = vmatpush.bf16.msra.mxu1 %v5020_v7  ;;  %6936 = vrsqrt.f32 %v7713_v30  ;;  %v3291_v59 = vadd.f32 %v3290_v37, %v3277_v9  ;;  %v3225_v60 = vadd.f32 %v3224_v49, %v7715_v41  ;;  %v2950_v46 = vpop.f32.mrf.mxu3  ;;  %vm3354_vm2 = vweird.f32 %v7713_v30 }
 0x3ad   :  { %v6658_v40 = vld [vmem:[#allocation19 + $0x49c] sm:$0xf]  ;;  %v5244_v35 = vor.u32 %v6594_v58, %v5241_v20 }
 0x3ae   :  { %3202 = vmatpush.bf16.msra.mxu3 %v5820_v1  ;;  %v5497_v34 = vld [vmem:[#allocation19 + $0x4b8] sm:$0xf0]  ;;  %3177 = vmatpush.bf16.msra.mxu0 %v5276_v8  ;;  %v3292_v33 = vrot.slane %v3291_v59, 2  ;;  %v3226_v7 = vrot.slane %v3225_v60, 2 }
 0x3af   :  { %v6722_v23 = vld [vmem:[#allocation19 + $0x69c] sm:$0xf]  ;;  %v5500_v38 = vor.u32 %v6658_v40, %v5497_v34 }
 0x3b0   :  { %v5753_v26 = vld [vmem:[#allocation19 + $0x6b8] sm:$0xf0]  ;;  %3190 = vmatpush.bf16.msra.mxu2 %v5532_v10  ;;  %3165 = vmatpush.bf16.msra.mxu1 %v4988_v32  ;;  %v3293_v14 = vadd.f32 %v3292_v33, %v3291_v59  ;;  %v3227_v58 = vadd.f32 %v3226_v7, %v3225_v60 }
 0x3b1   :  { %v6522_v29 = vld [vmem:[#allocation19 + $0x5c] sm:$0xf]  ;;  %v5756_v42 = vor.u32 %v6722_v23, %v5753_v26 }
 0x3b2   :  { %v4953_v43 = vld [vmem:[#allocation19 + $0x78] sm:$0xf0]  ;;  %3203 = vmatpush.bf16.msra.mxu3 %v5788_v62  ;;  %3178 = vmatpush.bf16.msra.mxu0 %v5244_v35  ;;  %v6937_v62 = vpop.eup %6936  ;;  %v3294_v20 = vrot.slane %v3293_v14, 1  ;;  %v3228_v40 = vrot.slane %v3227_v58, 1 }
 0x3b3   :  { %v6586_v39 = vld [vmem:[#allocation19 + $0x25c] sm:$0xf]  ;;  %v4956_v50 = vor.u32 %v6522_v29, %v4953_v43  ;;  %v3349_v24 = vmul.f32 %v6937_v62, %v7713_v30  ;;  %vm3355_vm1 = vweird.f32 %v6937_v62 }
 0x3b4   :  { %v5209_v63 = vld [vmem:[#allocation19 + $0x278] sm:$0xf0]  ;;  %3191 = vmatpush.bf16.msra.mxu2 %v5500_v38  ;;  %v3295_v34 = vadd.f32 %v3294_v20, %v3293_v14  ;;  %v3229_v21 = vadd.f32 %v3228_v40, %v3227_v58  ;;  %vm3356_vm4 = vmor %vm3354_vm2, %vm3355_vm1 }
 0x3b5   :  { %v6650_v61 = vld [vmem:[#allocation19 + $0x45c] sm:$0xf]  ;;  %v5212_v51 = vor.u32 %v6586_v39, %v5209_v63  ;;  %3166 = vmatpush.bf16.msra.mxu1 %v4956_v50  ;;  %v3350_v28 = vmul.f32 %v6937_v62, %v3349_v24  ;;  %v7735_v50 = vld [vmem:[%s7984_s15] sm:$0xff] }
 0x3b6   :  { %v5465_v44 = vld [vmem:[#allocation19 + $0x478] sm:$0xf0]  ;;  %3204 = vmatpush.bf16.msra.mxu3 %v5756_v42  ;;  %v3333_v23 = vmul.f32 %v3295_v34, %v7503_v17  ;;  %v7723_v26 = vmul.f32 %v3229_v21, %v7503_v17 }
 0x3b7   :  { %v6714_v6 = vld [vmem:[#allocation19 + $0x65c] sm:$0xf]  ;;  %v5468_v52 = vor.u32 %v6650_v61, %v5465_v44  ;;  %3179 = vmatpush.bf16.msra.mxu0 %v5212_v51  ;;  %v3351_v38 = vmul.f32 0.5, %v3350_v28 }
 0x3b8   :  { %v5721_v45 = vld [vmem:[#allocation19 + $0x678] sm:$0xf0]  ;;  %v3341_v25 = vadd.f32 0.8, %v3333_v23  ;;  %v3270_v27 = vsub.f32 %v7715_v41, %v7723_v26  ;;  %v2961_v32 = vpop.f32.mrf.mxu1 }
 0x3b9   :  { %v6514_v54 = vld [vmem:[#allocation19 + $0x1c] sm:$0xf]  ;;  %v5724_v0 = vor.u32 %v6714_v6, %v5721_v45  ;;  %3192 = vmatpush.bf16.msra.mxu2 %v5468_v52  ;;  %v3352_v63 = vsub.f32 1.5, %v3351_v38 }
 0x3ba   :  { %v4921_v55 = vld [vmem:[#allocation19 + $0x38] sm:$0xf0]  ;;  %6938 = vrsqrt.f32 %v3341_v25  ;;  %v3278_v36 = vmul.f32 %v3270_v27, %v3270_v27  ;;  %v2974_v35 = vpop.f32.mrf.mxu0  ;;  %vm3364_vm5 = vweird.f32 %v3341_v25 }
 0x3bb   :  { %v6578_v57 = vld [vmem:[#allocation19 + $0x21c] sm:$0xf]  ;;  %v4924_v8 = vor.u32 %v6514_v54, %v4921_v55  ;;  %3205 = vmatpush.bf16.msra.mxu3 %v5724_v0  ;;  %v3353_v49 = vmul.f32 %v6937_v62, %v3352_v63  ;;  %v3430_v55 = vperm.slane %v7735_v50, 0 }
 0x3bc   :  { %v5177_v1 = vld [vmem:[#allocation19 + $0x238] sm:$0xf0]  ;;  %v3296_v29 = vrot.slane %v3278_v36, 4 }
 0x3bd   :  { %v6642_v48 = vld [vmem:[#allocation19 + $0x41c] sm:$0xf]  ;;  %v5180_v10 = vor.u32 %v6578_v57, %v5177_v1  ;;  %3167 = vmatpush.bf16.msra.mxu1 %v4924_v8  ;;  %v3431_v57 = vperm.slane %v7735_v50, 1  ;;  %v3357_v0 = vsel %vm3356_vm4, %v6937_v62, %v3353_v49 }
 0x3be   :  { %v5433_v3 = vld [vmem:[#allocation19 + $0x438] sm:$0xf0]  ;;  %v3297_v43 = vadd.f32 %v3296_v29, %v3278_v36  ;;  %v7744_v30 = vmul.f32 %v3430_v55, %v3357_v0 }
 0x3bf   :  { %v6706_v4 = vld [vmem:[#allocation19 + $0x61c] sm:$0xf]  ;;  %v5436_v11 = vor.u32 %v6642_v48, %v5433_v3  ;;  %3180 = vmatpush.bf16.msra.mxu0 %v5180_v10 }
 0x3c0   :  { %v5689_v22 = vld [vmem:[#allocation19 + $0x638] sm:$0xf0]  ;;  %3168 = vmatmul.bf16.vlgmr.msra.gmra.mxu1 %v7650_v12  ;;  %v2962_v12 = vadd.f32 %v2961_v32, %v1503_v31  ;;  %v6939_v39 = vpop.eup %6938  ;;  %v2963_v45 = vpop.f32.mrf.mxu1  ;;  %v3455_v10 = vmul.f32 %v7744_v30, %v7694_v56 }
 0x3c1   :  { %v5692_v15 = vor.u32 %v6706_v4, %v5689_v22  ;;  %3193 = vmatpush.bf16.msra.mxu2 %v5436_v11  ;;  %vm3365_vm3 = vweird.f32 %v6939_v39 }
 0x3c2   :  { %3181 = vmatmul.bf16.vlgmr.msra.gmra.mxu0 %v7652_v13  ;;  %v2975_v13 = vadd.f32 %v2974_v35, %v2962_v12  ;;  %v2987_v42 = vpop.f32.mrf.mxu2  ;;  %v2976_v37 = vpop.f32.mrf.mxu0  ;;  %vm3366_vm6 = vmor %vm3364_vm5, %vm3365_vm3  ;;  %vm3481_vm3 = vcmask 1044484  }
 0x3c3   :  { %3206 = vmatpush.bf16.msra.mxu3 %v5692_v15 }
 0x3c4   :  { %3194 = vmatmul.bf16.vlgmr.msra.gmra.mxu2 %v7656_v18  ;;  %v3298_v18 = vrot.slane %v3297_v43, 2  ;;  %v3000_v61 = vpop.f32.mrf.mxu3  ;;  %v2988_v6 = vadd.f32 %v2987_v42, %v2975_v13 }
 0x3c6   :  { %3207 = vmatmul.bf16.vlgmr.msra.gmra.mxu3 %v7654_v16  ;;  %v3359_v16 = vmul.f32 %v6939_v39, %v3341_v25  ;;  %v3299_v44 = vadd.f32 %v3298_v18, %v3297_v43  ;;  %v7737_v52 = vadd.f32 %v3000_v61, %v2988_v6 }
 0x3c8   :  { %v3360_v9 = vmul.f32 %v6939_v39, %v3359_v16  ;;  %v3300_v59 = vrot.slane %v3299_v44, 1  ;;  %v3230_v60 = vrot.slane %v7737_v52, 4 }
 0x3ca   :  { %v3361_v51 = vmul.f32 0.5, %v3360_v9  ;;  %v3231_v48 = vadd.f32 %v3230_v60, %v7737_v52  ;;  %v2989_v2 = vpop.f32.mrf.mxu2  ;;  %v3301_v22 = vadd.f32 %v3300_v59, %v3299_v44 }
 0x3cc   :  { %v3362_v54 = vsub.f32 1.5, %v3361_v51  ;;  %v3002_v46 = vpop.f32.mrf.mxu3  ;;  %v3232_v33 = vrot.slane %v3231_v48, 2  ;;  %v3334_v14 = vmul.f32 %v3301_v22, %v7503_v17 }
 0x3ce   :  { %v3363_v1 = vmul.f32 %v6939_v39, %v3362_v54  ;;  %v3233_v8 = vadd.f32 %v3232_v33, %v3231_v48  ;;  %v3342_v20 = vadd.f32 0.8, %v3334_v14 }
 0x3d0   :  { %v3367_v3 = vsel %vm3366_vm6, %v6939_v39, %v3363_v1  ;;  %v3234_v58 = vrot.slane %v3233_v8, 1  ;;  %6940 = vrsqrt.f32 %v3342_v20  ;;  %vm3374_vm7 = vweird.f32 %v3342_v20 }
 0x3d1   :  { %v7746_v4 = vmul.f32 %v3431_v57, %v3367_v3  ;;  %v3432_v3 = vperm.slane %v7735_v50, 2 }
 0x3d2   :  { %v3235_v62 = vadd.f32 %v3234_v58, %v3233_v8 }
 0x3d3   :  { %v3456_v7 = vmul.f32 %v7746_v4, %v7708_v19  ;;  %v1504_v19 = vperm.slane %v7681_v53, 4 }
 0x3d4   :  { %v7757_v40 = vmul.f32 %v3235_v62, %v7503_v17 }
 0x3d5   :  { %v3471_v11 = vrot.slane %v3456_v7, 7  ;;  %v1505_v7 = vperm.slane %v7681_v53, 5 }
 0x3d6   :  { %v3271_v34 = vsub.f32 %v7737_v52, %v7757_v40  ;;  %v6941_v31 = vpop.eup %6940 }
 0x3d7   :  { %v7754_v15 = vsel %vm543_vm11, %v3455_v10, %v3471_v11  ;;  %v3369_v32 = vmul.f32 %v6941_v31, %v3342_v20  ;;  %vm3375_vm11 = vweird.f32 %v6941_v31  ;;  %v3433_v11 = vperm.slane %v7735_v50, 3 }
 0x3d8   :  { %v3279_v21 = vmul.f32 %v3271_v34, %v3271_v34  ;;  %v3013_v24 = vpop.f32.mrf.mxu1  ;;  %vm3376_vm8 = vmor %vm3374_vm7, %vm3375_vm11 }
 0x3d9   :  { %v3014_v25 = vadd.f32 %v3013_v24, %v1504_v19  ;;  %v3370_v16 = vmul.f32 %v6941_v31, %v3369_v32 }
 0x3da   :  { %v3302_v56 = vrot.slane %v3279_v21, 4  ;;  %v3026_v23 = vpop.f32.mrf.mxu0 }
 0x3db   :  { %v3027_v28 = vadd.f32 %v3026_v23, %v3014_v25  ;;  %v3371_v6 = vmul.f32 0.5, %v3370_v16 }
 0x3dc   :  { %v3303_v27 = vadd.f32 %v3302_v56, %v3279_v21 }
 0x3dd   :  { %v3372_v54 = vsub.f32 1.5, %v3371_v6 }
 0x3de   :  { %v3304_v36 = vrot.slane %v3303_v27, 2 }
 0x3df   :  { %v3373_v60 = vmul.f32 %v6941_v31, %v3372_v54 }
 0x3e0   :  { %v3305_v29 = vadd.f32 %v3304_v36, %v3303_v27  ;;  %v3015_v13 = vpop.f32.mrf.mxu1 }
 0x3e1   :  { %v3377_v46 = vsel %vm3376_vm8, %v6941_v31, %v3373_v60 }
 0x3e2   :  { %v3039_v35 = vpop.f32.mrf.mxu2  ;;  %v3306_v12 = vrot.slane %v3305_v29, 1  ;;  %v3028_v39 = vpop.f32.mrf.mxu0  ;;  %v7774_v10 = vmul.f32 %v3432_v3, %v3377_v46 }
 0x3e3   :  { %v3040_v43 = vadd.f32 %v3039_v35, %v3027_v28 }
 0x3e4   :  { %v3052_v38 = vpop.f32.mrf.mxu3  ;;  %v3307_v18 = vadd.f32 %v3306_v12, %v3305_v29  ;;  %v3457_v56 = vmul.f32 %v7774_v10, %v7723_v26 }
 0x3e5   :  { %v7762_v63 = vadd.f32 %v3052_v38, %v3040_v43 }
 0x3e6   :  { %v3335_v9 = vmul.f32 %v3307_v18, %v7503_v17  ;;  %v3472_v29 = vrot.slane %v3457_v56, 6 }
 0x3e7   :  { %v3236_v42 = vrot.slane %v7762_v63, 4 }
 0x3e8   :  { %v3343_v61 = vadd.f32 0.8, %v3335_v9 }
 0x3e9   :  { %v3237_v44 = vadd.f32 %v3236_v42, %v7762_v63 }
 0x3ea   :  { %v3041_v45 = vpop.f32.mrf.mxu2  ;;  %6942 = vrsqrt.f32 %v3343_v61  ;;  %vm3384_vm13 = vweird.f32 %v3343_v61 }
 0x3eb   :  { %v3238_v49 = vrot.slane %v3237_v44, 2 }
 0x3ec   :  { %v3054_v37 = vpop.f32.mrf.mxu3 }
 0x3ed   :  { %v3239_v51 = vadd.f32 %v3238_v49, %v3237_v44 }
 0x3ef   :  { %v3240_v55 = vrot.slane %v3239_v51, 1 }
 0x3f0   :  { %v6943_v57 = vpop.eup %6942 }
 0x3f1   :  { %v3241_v59 = vadd.f32 %v3240_v55, %v3239_v51  ;;  %v3379_v0 = vmul.f32 %v6943_v57, %v3343_v61  ;;  %vm3385_vm9 = vweird.f32 %v6943_v57  ;;  %v1506_v55 = vperm.slane %v7681_v53, 6 }
 0x3f2   :  { %vm3386_vm14 = vmor %vm3384_vm13, %vm3385_vm9  ;;  %vm3483_vm9 = vcmask 1046534   ;;  %vm3485_vm13 = vcmask 1045508  }
 0x3f3   :  { %v7768_v1 = vmul.f32 %v3241_v59, %v7503_v17  ;;  %v3380_v48 = vmul.f32 %v6943_v57, %v3379_v0 }
 0x3f5   :  { %v3272_v2 = vsub.f32 %v7762_v63, %v7768_v1  ;;  %v3381_v22 = vmul.f32 0.5, %v3380_v48 }
 0x3f7   :  { %v3280_v33 = vmul.f32 %v3272_v2, %v3272_v2  ;;  %v3382_v8 = vsub.f32 1.5, %v3381_v22 }
 0x3f8   :  { %v3065_v58 = vpop.f32.mrf.mxu1 }
 0x3f9   :  { %v3308_v14 = vrot.slane %v3280_v33, 4  ;;  %v3383_v20 = vmul.f32 %v6943_v57, %v3382_v8  ;;  %v3066_v19 = vadd.f32 %v3065_v58, %v1505_v7 }
 0x3fa   :  { %v3078_v62 = vpop.f32.mrf.mxu0 }
 0x3fb   :  { %v3309_v34 = vadd.f32 %v3308_v14, %v3280_v33  ;;  %v3387_v21 = vsel %vm3386_vm14, %v6943_v57, %v3383_v20  ;;  %v3079_v28 = vadd.f32 %v3078_v62, %v3066_v19  ;;  %vm3487_vm14 = vcmask 1043456  }
 0x3fc   :  { %v7779_v24 = vmul.f32 %v3433_v11, %v3387_v21 }
 0x3fd   :  { %v3310_v23 = vrot.slane %v3309_v34, 2 }
 0x3fe   :  { %v3458_v25 = vmul.f32 %v7779_v24, %v7757_v40 }
 0x3ff   :  { %v3311_v27 = vadd.f32 %v3310_v23, %v3309_v34 }
 0x400   :  { %v3473_v32 = vrot.slane %v3458_v25, 5  ;;  %v3067_v38 = vpop.f32.mrf.mxu1 }
 0x401   :  { %v3312_v13 = vrot.slane %v3311_v27, 1  ;;  %v6782_v38 = vld [vmem:[#allocation22 + $0x74] sm:$0xf0] }
 0x402   :  { %v3091_v31 = vpop.f32.mrf.mxu2  ;;  %v3080_v12 = vpop.f32.mrf.mxu0  ;;  %v3479_v43 = vsel %vm1199_vm10, %v3472_v29, %v3473_v32 }
 0x403   :  { %v3092_v35 = vadd.f32 %v3091_v31, %v3079_v28  ;;  %v7788_v26 = vsel %vm1201_vm12, %v7754_v15, %v3479_v43  ;;  %v3313_v18 = vadd.f32 %v3312_v13, %v3311_v27  ;;  %v6039_v13 = vld [vmem:[#allocation22 + $0xf0] sm:$0xf] }
 0x404   :  { %v3104_v36 = vpop.f32.mrf.mxu3 }
 0x405   :  { %v7784_v39 = vadd.f32 %v3104_v36, %v3092_v35  ;;  %v3336_v44 = vmul.f32 %v3313_v18, %v7503_v17  ;;  %v5975_v35 = vld [vmem:[#allocation22 + $0x70] sm:$0xf] }
 0x406   :  { %v5976_v43 = vor.u32 %v6782_v38, %v5975_v35  ;;  %v6103_v18 = vld [vmem:[#allocation22 + $0x170] sm:$0xf]  ;;  %v3435_v38 = vperm.slane %v7735_v50, 5 }
 0x407   :  { %v3242_v40 = vrot.slane %v7784_v39, 4  ;;  %v3344_v37 = vadd.f32 0.8, %v3336_v44  ;;  %v6167_v44 = vld [vmem:[#allocation22 + $0x1f0] sm:$0xf] }
 0x408   :  { %4338 = vmatpush.bf16.msrb.mxu1 %v5976_v43  ;;  %v6087_v35 = vld [vmem:[#allocation22 + $0x150] sm:$0xf] }
 0x409   :  { %v3243_v16 = vadd.f32 %v3242_v40, %v7784_v39  ;;  %6944 = vrsqrt.f32 %v3344_v37  ;;  %v6798_v40 = vld [vmem:[#allocation22 + $0xf4] sm:$0xf0]  ;;  %vm3394_vm12 = vweird.f32 %v3344_v37 }
 0x40a   :  { %v3093_v9 = vpop.f32.mrf.mxu2 }
 0x40b   :  { %v3244_v61 = vrot.slane %v3243_v16, 2 }
 0x40c   :  { %v3106_v42 = vpop.f32.mrf.mxu3 }
 0x40d   :  { %v3245_v6 = vadd.f32 %v3244_v61, %v3243_v16  ;;  %v6040_v42 = vor.u32 %v6798_v40, %v6039_v13  ;;  %v6814_v61 = vld [vmem:[#allocation22 + $0x174] sm:$0xf0]  ;;  %v6151_v40 = vld [vmem:[#allocation22 + $0x1d0] sm:$0xf] }
 0x40e   :  { %v6810_v13 = vld [vmem:[#allocation22 + $0x154] sm:$0xf0] }
 0x40f   :  { %v3246_v45 = vrot.slane %v3245_v6, 1  ;;  %v7799_v0 = vpop.eup %6944  ;;  %4351 = vmatpush.bf16.msrb.mxu0 %v6040_v42 }
 0x410   :  { %v3389_v46 = vmul.f32 %v7799_v0, %v3344_v37  ;;  %vm3395_vm10 = vweird.f32 %v7799_v0  ;;  %v6780_v37 = vld [vmem:[#allocation22 + $0x64] sm:$0xf0] }
 0x411   :  { %v3247_v49 = vadd.f32 %v3246_v45, %v3245_v6  ;;  %v6830_v6 = vld [vmem:[#allocation22 + $0x1f4] sm:$0xf0]  ;;  %vm7819_vm15 = vmor %vm3394_vm12, %vm3395_vm10 }
 0x412   :  { %v3390_v53 = vmul.f32 %v7799_v0, %v3389_v46  ;;  %v6796_v46 = vld [vmem:[#allocation22 + $0xe4] sm:$0xf0] }
 0x413   :  { %v7794_v51 = vmul.f32 %v3247_v49, %v7503_v17  ;;  %v6104_v49 = vor.u32 %v6814_v61, %v6103_v18  ;;  %v6088_v61 = vor.u32 %v6810_v13, %v6087_v35 }
 0x414   :  { %v3391_v56 = vmul.f32 0.5, %v3390_v53 }
 0x415   :  { %v3273_v15 = vsub.f32 %v7784_v39, %v7794_v51  ;;  %4364 = vmatpush.bf16.msrb.mxu2 %v6104_v49  ;;  %v5951_v49 = vld [vmem:[#allocation22 + $0x40] sm:$0xf] }
 0x416   :  { %v3392_v36 = vsub.f32 1.5, %v3391_v56  ;;  %v5959_v56 = vld [vmem:[#allocation22 + $0x50] sm:$0xf] }
 0x417   :  { %v3281_v54 = vmul.f32 %v3273_v15, %v3273_v15  ;;  %v6168_v15 = vor.u32 %v6830_v6, %v6167_v44  ;;  %v6826_v44 = vld [vmem:[#allocation22 + $0x1d4] sm:$0xf0] }
 0x418   :  { %v3117_v59 = vpop.f32.mrf.mxu1  ;;  %v3393_v12 = vmul.f32 %v7799_v0, %v3392_v36 }
 0x419   :  { %v3314_v57 = vrot.slane %v3281_v54, 4  ;;  %v3118_v3 = vadd.f32 %v3117_v59, %v1506_v55  ;;  %v3434_v55 = vperm.slane %v7735_v50, 4  ;;  %v5967_v59 = vld [vmem:[#allocation22 + $0x60] sm:$0xf]  ;;  %4377 = vmatpush.bf16.msrb.mxu3 %v6168_v15  ;;  %v6776_v15 = vld [vmem:[#allocation22 + $0x44] sm:$0xf0] }
 0x41a   :  { %v3130_v60 = vpop.f32.mrf.mxu0 }
 0x41b   :  { %v3315_v48 = vadd.f32 %v3314_v57, %v3281_v54  ;;  %v3131_v33 = vadd.f32 %v3130_v60, %v3118_v3  ;;  %v3397_v60 = vsel %vm7819_vm15, %v7799_v0, %v3393_v12  ;;  %v5968_v3 = vor.u32 %v6780_v37, %v5967_v59  ;;  %v6956_v0 = vld [vmem:[%s7983_s14] sm:$0xff]  ;;  %v6015_v54 = vld [vmem:[#allocation22 + $0xc0] sm:$0xf]  ;;  %v6792_v37 = vld [vmem:[#allocation22 + $0xc4] sm:$0xf0] }
 0x41c   :  { %v5952_v59 = vor.u32 %v6776_v15, %v5951_v49  ;;  %v6063_v49 = vld [vmem:[#allocation22 + $0x120] sm:$0xf] }
 0x41d   :  { %v3316_v2 = vrot.slane %v3315_v48, 2  ;;  %4339 = vmatpush.bf16.msrb.mxu1 %v5968_v3 }
 0x41f   :  { %v3317_v22 = vadd.f32 %v3316_v2, %v3315_v48  ;;  %v6031_v2 = vld [vmem:[#allocation22 + $0xe0] sm:$0xf] }
 0x420   :  { %v3119_v58 = vpop.f32.mrf.mxu1 }
 0x421   :  { %v3318_v11 = vrot.slane %v3317_v22, 1 }
 0x422   :  { %v3143_v7 = vpop.f32.mrf.mxu2  ;;  %v3132_v62 = vpop.f32.mrf.mxu0 }
 0x423   :  { %v3144_v14 = vadd.f32 %v3143_v7, %v3131_v33  ;;  %v3319_v20 = vadd.f32 %v3318_v11, %v3317_v22  ;;  %v6095_v22 = vld [vmem:[#allocation22 + $0x160] sm:$0xf]  ;;  %v6032_v7 = vor.u32 %v6796_v46, %v6031_v2  ;;  %v1507_v62 = vperm.slane %v6956_v0, 7 }
 0x424   :  { %v3156_v8 = vpop.f32.mrf.mxu3  ;;  %v6159_v11 = vld [vmem:[#allocation22 + $0x1e0] sm:$0xf]  ;;  %v6016_v46 = vor.u32 %v6792_v37, %v6015_v54  ;;  %v6804_v54 = vld [vmem:[#allocation22 + $0x124] sm:$0xf0] }
 0x425   :  { %v7803_v34 = vadd.f32 %v3156_v8, %v3144_v14  ;;  %v3337_v19 = vmul.f32 %v3319_v20, %v7503_v17  ;;  %v6812_v8 = vld [vmem:[#allocation22 + $0x164] sm:$0xf0]  ;;  %4352 = vmatpush.bf16.msrb.mxu0 %v6032_v7 }
 0x426   :  { %v6828_v14 = vld [vmem:[#allocation22 + $0x1e4] sm:$0xf0]  ;;  %v6096_v53 = vor.u32 %v6812_v8, %v6095_v22  ;;  %v6143_v22 = vld [vmem:[#allocation22 + $0x1c0] sm:$0xf] }
 0x427   :  { %v3248_v21 = vrot.slane %v7803_v34, 4  ;;  %v7807_v23 = vadd.f32 0.8, %v3337_v19  ;;  %v6160_v20 = vor.u32 %v6828_v14, %v6159_v11  ;;  %v7836_v19 = vmul.f32 %v3434_v55, %v3397_v60  ;;  %v6079_v60 = vld [vmem:[#allocation22 + $0x140] sm:$0xf] }
 0x428   :  { %4365 = vmatpush.bf16.msrb.mxu2 %v6096_v53  ;;  %v5943_v53 = vld [vmem:[#allocation22 + $0x30] sm:$0xf] }
 0x429   :  { %v3249_v25 = vadd.f32 %v3248_v21, %v7803_v34  ;;  %6946 = vrsqrt.f32 %v7807_v23  ;;  %4378 = vmatpush.bf16.msrb.mxu3 %v6160_v20  ;;  %vm3404_vm1 = vweird.f32 %v7807_v23  ;;  %v6774_v20 = vld [vmem:[#allocation22 + $0x34] sm:$0xf0] }
 0x42a   :  { %v3145_v27 = vpop.f32.mrf.mxu2 }
 0x42b   :  { %v3250_v31 = vrot.slane %v3249_v25, 2  ;;  %v6023_v27 = vld [vmem:[#allocation22 + $0xd0] sm:$0xf] }
 0x42c   :  { %v3158_v28 = vpop.f32.mrf.mxu3  ;;  %4366 = vmatpush.bf16.msrb.mxu2 %v6088_v61  ;;  %v5935_v61 = vld [vmem:[#allocation22 + $0x20] sm:$0xf] }
 0x42d   :  { %v3251_v29 = vadd.f32 %v3250_v31, %v3249_v25  ;;  %v6778_v25 = vld [vmem:[#allocation22 + $0x54] sm:$0xf0] }
 0x42f   :  { %v3252_v32 = vrot.slane %v3251_v29, 1  ;;  %v7813_v16 = vpop.eup %6946 }
 0x430   :  { %v3399_v45 = vmul.f32 %v7813_v16, %v7807_v23  ;;  %vm3405_vm0 = vweird.f32 %v7813_v16  ;;  %v3459_v23 = vmul.f32 %v7836_v19, %v7768_v1 }
 0x431   :  { %v3253_v9 = vadd.f32 %v3252_v32, %v3251_v29  ;;  %v5960_v29 = vor.u32 %v6778_v25, %v5959_v56  ;;  %v6794_v32 = vld [vmem:[#allocation22 + $0xd4] sm:$0xf0]  ;;  %vm7844_vm2 = vmor %vm3404_vm1, %vm3405_vm0 }
 0x432   :  { %v3400_v48 = vmul.f32 %v7813_v16, %v3399_v45  ;;  %v6024_v43 = vor.u32 %v6794_v32, %v6023_v27  ;;  %v6152_v45 = vor.u32 %v6826_v44, %v6151_v40  ;;  %v3474_v11 = vrot.slane %v3459_v23, 4  ;;  %v6822_v40 = vld [vmem:[#allocation22 + $0x1b4] sm:$0xf0]  ;;  %v6772_v44 = vld [vmem:[#allocation22 + $0x24] sm:$0xf0] }
 0x433   :  { %v7825_v57 = vmul.f32 %v3253_v9, %v7503_v17  ;;  %4340 = vmatpush.bf16.msrb.mxu1 %v5960_v29  ;;  %v5944_v27 = vor.u32 %v6774_v20, %v5943_v53 }
 0x434   :  { %v3401_v58 = vmul.f32 0.5, %v3400_v48  ;;  %4353 = vmatpush.bf16.msrb.mxu0 %v6024_v43  ;;  %v6808_v48 = vld [vmem:[#allocation22 + $0x144] sm:$0xf0]  ;;  %4379 = vmatpush.bf16.msrb.mxu3 %v6152_v45 }
 0x435   :  { %v3274_v33 = vsub.f32 %v7803_v34, %v7825_v57  ;;  %v6080_v1 = vor.u32 %v6808_v48, %v6079_v60  ;;  %v6788_v45 = vld [vmem:[#allocation22 + $0xa4] sm:$0xf0]  ;;  %v6064_v48 = vor.u32 %v6804_v54, %v6063_v49  ;;  %v6878_v49 = vld [vmem:[#allocation22 + $0x374] sm:$0xf0] }
 0x436   :  { %v3402_v28 = vsub.f32 1.5, %v3401_v58 }
 0x437   :  { %v3282_v21 = vmul.f32 %v3274_v33, %v3274_v33  ;;  %v6824_v33 = vld [vmem:[#allocation22 + $0x1c4] sm:$0xf0]  ;;  %4341 = vmatpush.bf16.msrb.mxu1 %v5952_v59  ;;  %4367 = vmatpush.bf16.msrb.mxu2 %v6080_v1  ;;  %v5927_v1 = vld [vmem:[#allocation22 + $0x10] sm:$0xf] }
 0x438   :  { %v3403_v18 = vmul.f32 %v7813_v16, %v3402_v28  ;;  %v6144_v8 = vor.u32 %v6824_v33, %v6143_v22  ;;  %4354 = vmatpush.bf16.msrb.mxu0 %v6016_v46  ;;  %v6007_v28 = vld [vmem:[#allocation22 + $0xb0] sm:$0xf]  ;;  %v6820_v59 = vld [vmem:[#allocation22 + $0x1a4] sm:$0xf0]  ;;  %v6770_v22 = vld [vmem:[#allocation22 + $0x14] sm:$0xf0] }
 0x439   :  { %v3320_v12 = vrot.slane %v3282_v21, 4 }
 0x43a   :  { %v3407_v55 = vsel %vm7844_vm2, %v7813_v16, %v3403_v18  ;;  %4380 = vmatpush.bf16.msrb.mxu3 %v6144_v8  ;;  %v5991_v8 = vld [vmem:[#allocation22 + $0x90] sm:$0xf] }
 0x43b   :  { %v3321_v6 = vadd.f32 %v3320_v12, %v3282_v21  ;;  %v3451_v3 = vmul.f32 %v3435_v38, %v3407_v55  ;;  %v6806_v38 = vld [vmem:[#allocation22 + $0x134] sm:$0xf0]  ;;  %v6135_v12 = vld [vmem:[#allocation22 + $0x1b0] sm:$0xf]  ;;  %4342 = vmatpush.bf16.msrb.mxu1 %v5944_v27  ;;  %v6127_v55 = vld [vmem:[#allocation22 + $0x1a0] sm:$0xf] }
 0x43c   :  { %v6768_v27 = vld [vmem:[#allocation22 + $0x4] sm:$0xf0] }
 0x43d   :  { %v3169_v31 = vpop.f32.mrf.mxu1  ;;  %v3322_v2 = vrot.slane %v3321_v6, 2  ;;  %v3460_v14 = vmul.f32 %v3451_v3, %v7794_v51  ;;  %v3496_v16 = vperm.slane %v3451_v3, 0  ;;  %v6128_v3 = vor.u32 %v6820_v59, %v6127_v55  ;;  %v6423_v55 = vld [vmem:[#allocation22 + $0x3f0] sm:$0xf]  ;;  %v6894_v59 = vld [vmem:[#allocation22 + $0x3f4] sm:$0xf0] }
 0x43e   :  { %v3170_v42 = vadd.f32 %v3169_v31, %v1507_v62  ;;  %v6790_v31 = vld [vmem:[#allocation22 + $0xb4] sm:$0xf0] }
 0x43f   :  { %v3182_v36 = vpop.f32.mrf.mxu0  ;;  %v3323_v58 = vadd.f32 %v3322_v2, %v3321_v6  ;;  %v3475_v29 = vrot.slane %v3460_v14, 3  ;;  %v7855_v32 = vmul.f32 %v3496_v16, %v7784_v39  ;;  %v6008_v35 = vor.u32 %v6790_v31, %v6007_v28  ;;  %v5999_v39 = vld [vmem:[#allocation22 + $0xa0] sm:$0xf]  ;;  %v6055_v16 = vld [vmem:[#allocation22 + $0x110] sm:$0xf] }
 0x440   :  { %v3183_v7 = vadd.f32 %v3182_v36, %v3170_v42  ;;  %v6071_v36 = vld [vmem:[#allocation22 + $0x130] sm:$0xf]  ;;  %v6136_v42 = vor.u32 %v6822_v40, %v6135_v12  ;;  %v5936_v6 = vor.u32 %v6772_v44, %v5935_v61  ;;  %v6000_v15 = vor.u32 %v6788_v45, %v5999_v39  ;;  %v5983_v28 = vld [vmem:[#allocation22 + $0x80] sm:$0xf]  ;;  %v6846_v44 = vld [vmem:[#allocation22 + $0x274] sm:$0xf0] }
 0x441   :  { %v3324_v51 = vrot.slane %v3323_v58, 1  ;;  %v6072_v13 = vor.u32 %v6806_v38, %v6071_v36  ;;  %v7860_v18 = vsel %vm3481_vm3, %v3474_v11, %v3475_v29  ;;  %4355 = vmatpush.bf16.msrb.mxu0 %v6008_v35  ;;  %v6786_v11 = vld [vmem:[#allocation22 + $0x94] sm:$0xf0]  ;;  %v6784_v29 = vld [vmem:[#allocation22 + $0x84] sm:$0xf0] }
 0x442   :  { %4381 = vmatpush.bf16.msrb.mxu3 %v6136_v42  ;;  %4343 = vmatpush.bf16.msrb.mxu1 %v5936_v6  ;;  %v5992_v14 = vor.u32 %v6786_v11, %v5991_v8  ;;  %v5984_v35 = vor.u32 %v6784_v29, %v5983_v28  ;;  %v6800_v38 = vld [vmem:[#allocation22 + $0x104] sm:$0xf0]  ;;  %v6111_v12 = vld [vmem:[#allocation22 + $0x180] sm:$0xf]  ;;  %v6231_v61 = vld [vmem:[#allocation22 + $0x270] sm:$0xf] }
 0x443   :  { %v3325_v9 = vadd.f32 %v3324_v51, %v3323_v58  ;;  %4368 = vmatpush.bf16.msrb.mxu2 %v6072_v13  ;;  %v6802_v58 = vld [vmem:[#allocation22 + $0x114] sm:$0xf0]  ;;  %v6047_v51 = vld [vmem:[#allocation22 + $0x100] sm:$0xf]  ;;  %v6816_v13 = vld [vmem:[#allocation22 + $0x184] sm:$0xf0] }
 0x444   :  { %v6056_v20 = vor.u32 %v6802_v58, %v6055_v16  ;;  %v6112_v42 = vor.u32 %v6816_v13, %v6111_v12  ;;  %v6295_v39 = vld [vmem:[#allocation22 + $0x2f0] sm:$0xf]  ;;  %v6862_v6 = vld [vmem:[#allocation22 + $0x2f4] sm:$0xf0]  ;;  %v6892_v16 = vld [vmem:[#allocation22 + $0x3e4] sm:$0xf0] }
 0x445   :  { %v3171_v56 = vpop.f32.mrf.mxu1  ;;  %v3338_v37 = vmul.f32 %v3325_v9, %v7503_v17  ;;  %4356 = vmatpush.bf16.msrb.mxu0 %v6000_v15  ;;  %v6048_v9 = vor.u32 %v6800_v38, %v6047_v51  ;;  %v6359_v45 = vld [vmem:[#allocation22 + $0x370] sm:$0xf]  ;;  %v6296_v54 = vor.u32 %v6862_v6, %v6295_v39  ;;  %v6335_v39 = vld [vmem:[#allocation22 + $0x340] sm:$0xf] }
 0x446   :  { %4382 = vmatpush.bf16.msrb.mxu3 %v6128_v3  ;;  %v6844_v3 = vld [vmem:[#allocation22 + $0x264] sm:$0xf0]  ;;  %v6407_v51 = vld [vmem:[#allocation22 + $0x3d0] sm:$0xf] }
 0x447   :  { %v3195_v0 = vpop.f32.mrf.mxu2  ;;  %v3184_v25 = vpop.f32.mrf.mxu0  ;;  %4369 = vmatpush.bf16.msrb.mxu2 %v6064_v48  ;;  %v6424_v48 = vor.u32 %v6894_v59, %v6423_v55  ;;  %v6888_v59 = vld [vmem:[#allocation22 + $0x3c4] sm:$0xf0] }
 0x448   :  { %v3196_v21 = vadd.f32 %v3195_v0, %v3183_v7  ;;  %v5928_v7 = vor.u32 %v6770_v22, %v5927_v1  ;;  %v6119_v0 = vld [vmem:[#allocation22 + $0x190] sm:$0xf]  ;;  %v5919_v25 = vld [vmem:[#allocation22] sm:$0xf]  ;;  %v6860_v22 = vld [vmem:[#allocation22 + $0x2e4] sm:$0xf0] }
 0x449   :  { %v3208_v62 = vpop.f32.mrf.mxu3  ;;  %4357 = vmatpush.bf16.msrb.mxu0 %v5992_v14  ;;  %v5920_v36 = vor.u32 %v6768_v27, %v5919_v25  ;;  %v6415_v14 = vld [vmem:[#allocation22 + $0x3e0] sm:$0xf]  ;;  %v6858_v25 = vld [vmem:[#allocation22 + $0x2d4] sm:$0xf0]  ;;  %v6343_v27 = vld [vmem:[#allocation22 + $0x350] sm:$0xf] }
 0x44a   :  { %v7857_v43 = vadd.f32 %v3208_v62, %v3196_v21  ;;  %v7865_v62 = vadd.f32 0.8, %v3338_v37  ;;  %4344 = vmatpush.bf16.msrb.mxu1 %v5928_v7  ;;  %v6818_v21 = vld [vmem:[#allocation22 + $0x194] sm:$0xf0]  ;;  %v6223_v37 = vld [vmem:[#allocation22 + $0x260] sm:$0xf] }
 0x44b   :  { %v6120_v56 = vor.u32 %v6818_v21, %v6119_v0  ;;  %4370 = vmatpush.bf16.msrb.mxu2 %v6056_v20  ;;  %v6224_v1 = vor.u32 %v6844_v3, %v6223_v37  ;;  %v6876_v7 = vld [vmem:[#allocation22 + $0x364] sm:$0xf0]  ;;  %v6416_v0 = vor.u32 %v6892_v16, %v6415_v14  ;;  %v6842_v20 = vld [vmem:[#allocation22 + $0x254] sm:$0xf0]  ;;  %v6391_v16 = vld [vmem:[#allocation22 + $0x3b0] sm:$0xf] }
 0x44c   :  { %v3254_v23 = vrot.slane %v7857_v43, 4  ;;  %6948 = vrsqrt.f32 %v7865_v62  ;;  %v6838_v3 = vld [vmem:[#allocation22 + $0x234] sm:$0xf0]  ;;  %vm3414_vm5 = vweird.f32 %v7865_v62 }
 0x44d   :  { %4383 = vmatpush.bf16.msrb.mxu3 %v6120_v56  ;;  %4358 = vmatpush.bf16.msrb.mxu0 %v5984_v35  ;;  %v6279_v56 = vld [vmem:[#allocation22 + $0x2d0] sm:$0xf]  ;;  %v6890_v35 = vld [vmem:[#allocation22 + $0x3d4] sm:$0xf0] }
 0x44e   :  { %v3255_v60 = vadd.f32 %v3254_v23, %v7857_v43  ;;  %4345 = vmatpush.bf16.msrb.mxu1 %v5920_v36  ;;  %v6232_v23 = vor.u32 %v6846_v44, %v6231_v61  ;;  %v6874_v36 = vld [vmem:[#allocation22 + $0x354] sm:$0xf0]  ;;  %v6408_v13 = vor.u32 %v6890_v35, %v6407_v51  ;;  %v6271_v61 = vld [vmem:[#allocation22 + $0x2c0] sm:$0xf]  ;;  %v6856_v44 = vld [vmem:[#allocation22 + $0x2c4] sm:$0xf0] }
 0x44f   :  { %v3197_v2 = vpop.f32.mrf.mxu2  ;;  %4371 = vmatpush.bf16.msrb.mxu2 %v6048_v9  ;;  %v6344_v29 = vor.u32 %v6874_v36, %v6343_v27  ;;  %v6840_v9 = vld [vmem:[#allocation22 + $0x244] sm:$0xf0]  ;;  %v6272_v6 = vor.u32 %v6856_v44, %v6271_v61  ;;  %v6383_v51 = vld [vmem:[#allocation22 + $0x3a0] sm:$0xf]  ;;  %v6834_v61 = vld [vmem:[#allocation22 + $0x214] sm:$0xf0] }
 0x450   :  { %v3256_v33 = vrot.slane %v3255_v60, 2  ;;  %v6287_v2 = vld [vmem:[#allocation22 + $0x2e0] sm:$0xf]  ;;  %v6852_v27 = vld [vmem:[#allocation22 + $0x2a4] sm:$0xf0] }
 0x451   :  { %v3210_v46 = vpop.f32.mrf.mxu3  ;;  %4384 = vmatpush.bf16.msrb.mxu3 %v6112_v42  ;;  %4403 = vmatpush.bf16.msra.mxu0 %v6296_v54  ;;  %v6288_v8 = vor.u32 %v6860_v22, %v6287_v2  ;;  %v6884_v35 = vld [vmem:[#allocation22 + $0x3a4] sm:$0xf0] }
 0x452   :  { %v3257_v53 = vadd.f32 %v3256_v33, %v3255_v60  ;;  %4390 = vmatpush.bf16.msra.mxu1 %v6232_v23  ;;  %v6360_v60 = vor.u32 %v6878_v49, %v6359_v45  ;;  %v6351_v33 = vld [vmem:[#allocation22 + $0x360] sm:$0xf]  ;;  %v7873_v38 = vpop.eup %6948  ;;  %v6872_v45 = vld [vmem:[#allocation22 + $0x344] sm:$0xf0] }
 0x453   :  { %v6352_v11 = vor.u32 %v6876_v7, %v6351_v33  ;;  %v6399_v49 = vld [vmem:[#allocation22 + $0x3c0] sm:$0xf]  ;;  %v3409_v54 = vmul.f32 %v7873_v38, %v7865_v62  ;;  %v6336_v55 = vor.u32 %v6872_v45, %v6335_v39  ;;  %v6327_v7 = vld [vmem:[#allocation22 + $0x330] sm:$0xf]  ;;  %v6866_v45 = vld [vmem:[#allocation22 + $0x314] sm:$0xf0]  ;;  %vm3415_vm4 = vweird.f32 %v7873_v38 }
 0x454   :  { %v3258_v31 = vrot.slane %v3257_v53, 1  ;;  %4416 = vmatpush.bf16.msra.mxu2 %v6360_v60  ;;  %v6400_v60 = vor.u32 %v6888_v59, %v6399_v49  ;;  %v6247_v39 = vld [vmem:[#allocation22 + $0x290] sm:$0xf]  ;;  %vm3416_vm6 = vmor %vm3414_vm5, %vm3415_vm4 }
 0x455   :  { %4429 = vmatpush.bf16.msra.mxu3 %v6424_v48  ;;  %4404 = vmatpush.bf16.msra.mxu0 %v6288_v8  ;;  %v6199_v48 = vld [vmem:[#allocation22 + $0x230] sm:$0xf]  ;;  %v6870_v8 = vld [vmem:[#allocation22 + $0x334] sm:$0xf0] }
 0x456   :  { %v3259_v40 = vadd.f32 %v3258_v31, %v3257_v53  ;;  %v6215_v53 = vld [vmem:[#allocation22 + $0x250] sm:$0xf]  ;;  %4391 = vmatpush.bf16.msra.mxu1 %v6224_v1  ;;  %v6280_v31 = vor.u32 %v6858_v25, %v6279_v56  ;;  %v6200_v2 = vor.u32 %v6838_v3, %v6199_v48  ;;  %v6854_v1 = vld [vmem:[#allocation22 + $0x2b4] sm:$0xf0]  ;;  %v6328_v14 = vor.u32 %v6870_v8, %v6327_v7  ;;  %v6255_v56 = vld [vmem:[#allocation22 + $0x2a0] sm:$0xf] }
 0x457   :  { %v6216_v21 = vor.u32 %v6842_v20, %v6215_v53  ;;  %v6191_v20 = vld [vmem:[#allocation22 + $0x220] sm:$0xf]  ;;  %v6375_v49 = vld [vmem:[#allocation22 + $0x390] sm:$0xf]  ;;  %v6848_v3 = vld [vmem:[#allocation22 + $0x284] sm:$0xf0] }
 0x458   :  { %v7868_v15 = vmul.f32 %v3259_v40, %v7503_v17  ;;  %4417 = vmatpush.bf16.msra.mxu2 %v6352_v11  ;;  %v6207_v40 = vld [vmem:[#allocation22 + $0x240] sm:$0xf]  ;;  %v3410_v11 = vmul.f32 %v7873_v38, %v3409_v54  ;;  %v6882_v54 = vld [vmem:[#allocation22 + $0x394] sm:$0xf0]  ;;  %v6880_v7 = vld [vmem:[#allocation22 + $0x384] sm:$0xf0] }
 0x459   :  { %4430 = vmatpush.bf16.msra.mxu3 %v6416_v0  ;;  %v6208_v42 = vor.u32 %v6840_v9, %v6207_v40  ;;  %4405 = vmatpush.bf16.msra.mxu0 %v6280_v31  ;;  %v6868_v31 = vld [vmem:[#allocation22 + $0x324] sm:$0xf0]  ;;  %v6384_v40 = vor.u32 %v6884_v35, %v6383_v51  ;;  %v6376_v59 = vor.u32 %v6882_v54, %v6375_v49  ;;  %v6239_v48 = vld [vmem:[#allocation22 + $0x280] sm:$0xf]  ;;  %v3491_v35 = vperm.slane %v7744_v30, 0 }
 0x45a   :  { %v3275_v46 = vsub.f32 %v7857_v43, %v7868_v15  ;;  %4392 = vmatpush.bf16.msra.mxu1 %v6216_v21  ;;  %v6836_v21 = vld [vmem:[#allocation22 + $0x224] sm:$0xf0]  ;;  %v6240_v8 = vor.u32 %v6848_v3, %v6239_v48  ;;  %v5977_v48 = vld [vmem:[#allocation22 + $0x78] sm:$0xf0]  ;;  %v6797_v3 = vld [vmem:[#allocation22 + $0xf4] sm:$0xf] }
 0x45b   :  { %v6192_v25 = vor.u32 %v6836_v21, %v6191_v20  ;;  %v3436_v20 = vperm.slane %v7735_v50, 6 }
 0x45c   :  { %v3283_v58 = vmul.f32 %v3275_v46, %v3275_v46  ;;  %4418 = vmatpush.bf16.msra.mxu2 %v6344_v29  ;;  %v6263_v46 = vld [vmem:[#allocation22 + $0x2b0] sm:$0xf]  ;;  %v6256_v29 = vor.u32 %v6852_v27, %v6255_v56 }
 0x45d   :  { %4431 = vmatpush.bf16.msra.mxu3 %v6408_v13  ;;  %4406 = vmatpush.bf16.msra.mxu0 %v6272_v6  ;;  %v6264_v33 = vor.u32 %v6854_v1, %v6263_v46  ;;  %v6311_v6 = vld [vmem:[#allocation22 + $0x310] sm:$0xf]  ;;  %v6864_v46 = vld [vmem:[#allocation22 + $0x304] sm:$0xf0] }
 0x45e   :  { %v3326_v28 = vrot.slane %v3283_v58, 4  ;;  %4393 = vmatpush.bf16.msra.mxu1 %v6208_v42  ;;  %v6183_v42 = vld [vmem:[#allocation22 + $0x210] sm:$0xf] }
 0x45f   :  { %v6184_v44 = vor.u32 %v6834_v61, %v6183_v42 }
 0x460   :  { %v3327_v12 = vadd.f32 %v3326_v28, %v3283_v58  ;;  %4419 = vmatpush.bf16.msra.mxu2 %v6336_v55  ;;  %v6886_v58 = vld [vmem:[#allocation22 + $0x3b4] sm:$0xf0]  ;;  %v6319_v28 = vld [vmem:[#allocation22 + $0x320] sm:$0xf]  ;;  %v6312_v55 = vor.u32 %v6866_v45, %v6311_v6 }
 0x461   :  { %4432 = vmatpush.bf16.msra.mxu3 %v6400_v60  ;;  %v6392_v53 = vor.u32 %v6886_v58, %v6391_v16  ;;  %4407 = vmatpush.bf16.msra.mxu0 %v6264_v33  ;;  %v6320_v13 = vor.u32 %v6868_v31, %v6319_v28  ;;  %v6832_v60 = vld [vmem:[#allocation22 + $0x204] sm:$0xf0]  ;;  %v6367_v33 = vld [vmem:[#allocation22 + $0x380] sm:$0xf]  ;;  %v3437_v28 = vperm.slane %v7735_v50, 7  ;;  %v3494_v50 = vperm.slane %v7779_v24, 0 }
 0x462   :  { %v3328_v23 = vrot.slane %v3327_v12, 2  ;;  %4394 = vmatpush.bf16.msra.mxu1 %v6200_v2  ;;  %v6303_v2 = vld [vmem:[#allocation22 + $0x300] sm:$0xf] }
 0x463   :  { %v3502_v24 = vmul.f32 %v3494_v50, %v7737_v52  ;;  %v6781_v52 = vld [vmem:[#allocation22 + $0x74] sm:$0xf] }
 0x464   :  { %v3329_v37 = vadd.f32 %v3328_v23, %v3327_v12  ;;  %v3411_v12 = vmul.f32 0.5, %v3410_v11  ;;  %4420 = vmatpush.bf16.msra.mxu2 %v6328_v14  ;;  %v6850_v23 = vld [vmem:[#allocation22 + $0x294] sm:$0xf0]  ;;  %v6304_v11 = vor.u32 %v6864_v46, %v6303_v2  ;;  %v6368_v14 = vor.u32 %v6880_v7, %v6367_v33  ;;  %v6813_v2 = vld [vmem:[#allocation22 + $0x174] sm:$0xf] }
 0x465   :  { %4433 = vmatpush.bf16.msra.mxu3 %v6392_v53  ;;  %4408 = vmatpush.bf16.msra.mxu0 %v6256_v29  ;;  %v6105_v33 = vld [vmem:[#allocation22 + $0x178] sm:$0xf0] }
 0x466   :  { %v3330_v22 = vrot.slane %v3329_v37, 1  ;;  %4395 = vmatpush.bf16.msra.mxu1 %v6192_v25  ;;  %v3412_v1 = vsub.f32 1.5, %v3411_v12 }
 0x468   :  { %v3331_v0 = vadd.f32 %v3330_v22, %v3329_v37  ;;  %4421 = vmatpush.bf16.msra.mxu2 %v6320_v13  ;;  %v6175_v37 = vld [vmem:[#allocation22 + $0x200] sm:$0xf]  ;;  %v3413_v58 = vmul.f32 %v7873_v38, %v3412_v1  ;;  %v3492_v13 = vperm.slane %v7746_v4, 0 }
 0x469   :  { %4434 = vmatpush.bf16.msra.mxu3 %v6384_v40  ;;  %v6176_v22 = vor.u32 %v6832_v60, %v6175_v37  ;;  %v3493_v40 = vperm.slane %v7774_v10, 0 }
 0x46a   :  { %v3339_v36 = vmul.f32 %v3331_v0, %v7503_v17  ;;  %v6248_v17 = vor.u32 %v6850_v23, %v6247_v39  ;;  %4396 = vmatpush.bf16.msra.mxu1 %v6184_v44  ;;  %v3417_v21 = vsel %vm3416_vm6, %v7873_v38, %v3413_v58  ;;  %v3499_v39 = vmul.f32 %v3491_v35, %v7688_v47  ;;  %v6829_v58 = vld [vmem:[#allocation22 + $0x1f4] sm:$0xf]  ;;  %v6033_v35 = vld [vmem:[#allocation22 + $0xe8] sm:$0xf0] }
 0x46b   :  { %v3452_v27 = vmul.f32 %v3436_v20, %v3417_v21  ;;  %v3500_v23 = vmul.f32 %v3492_v13, %v7698_v5  ;;  %v3501_v4 = vmul.f32 %v3493_v40, %v7715_v41  ;;  %v6827_v13 = vld [vmem:[#allocation22 + $0x1e4] sm:$0xf]  ;;  %v6161_v40 = vld [vmem:[#allocation22 + $0x1e8] sm:$0xf0] }
 0x46c   :  { %v3347_v9 = vadd.f32 0.8, %v3339_v36  ;;  %4409 = vmatpush.bf16.msra.mxu0 %v6248_v17  ;;  %4422 = vmatpush.bf16.msra.mxu2 %v6312_v55 }
 0x46d   :  { %4435 = vmatpush.bf16.msra.mxu3 %v6376_v59  ;;  %v3461_v62 = vmul.f32 %v3452_v27, %v7825_v57  ;;  %v3497_v42 = vperm.slane %v3452_v27, 0  ;;  %v3454_v57 = vld [vmem:[#allocation21] sm:$0xff] }
 0x46e   :  { %6950 = vrsqrt.f32 %v3347_v9  ;;  %4397 = vmatpush.bf16.msra.mxu1 %v6176_v22  ;;  %vm3424_vm7 = vweird.f32 %v3347_v9 }
 0x46f   :  { %v3476_v12 = vrot.slane %v3461_v62, 2  ;;  %v6795_v62 = vld [vmem:[#allocation22 + $0xe4] sm:$0xf] }
 0x470   :  { %4410 = vmatpush.bf16.msra.mxu0 %v6240_v8  ;;  %4423 = vmatpush.bf16.msra.mxu2 %v6304_v11 }
 0x471   :  { %4436 = vmatpush.bf16.msra.mxu3 %v6368_v14 }
 0x474   :  { %v6951_v16 = vpop.eup %6950 }
 0x475   :  { %v3419_v0 = vmul.f32 %v6951_v16, %v3347_v9  ;;  %vm3425_vm11 = vweird.f32 %v6951_v16  ;;  %v3495_v9 = vperm.slane %v7836_v19, 0  ;;  %v3505_v19 = vmul.f32 %v3497_v42, %v7803_v34  ;;  %v6041_v34 = vld [vmem:[#allocation22 + $0xf8] sm:$0xf0] }
 0x476   :  { %vm3426_vm8 = vmor %vm3424_vm7, %vm3425_vm11  ;;  %v6044_v21 = vor.u32 %v6797_v3, %v6041_v34  ;;  %v6036_v42 = vor.u32 %v6795_v62, %v6033_v35  ;;  %v6787_v62 = vld [vmem:[#allocation22 + $0xa4] sm:$0xf]  ;;  %v6001_v35 = vld [vmem:[#allocation22 + $0xa8] sm:$0xf0] }
 0x477   :  { %v3420_v53 = vmul.f32 %v6951_v16, %v3419_v0  ;;  %v3503_v6 = vmul.f32 %v3495_v9, %v7762_v63  ;;  %v6169_v0 = vld [vmem:[#allocation22 + $0x1f8] sm:$0xf0]  ;;  %v6777_v9 = vld [vmem:[#allocation22 + $0x54] sm:$0xf] }
 0x479   :  { %v3421_v56 = vmul.f32 0.5, %v3420_v53 }
 0x47b   :  { %v3422_v25 = vsub.f32 1.5, %v3421_v56 }
 0x47d   :  { %v3423_v31 = vmul.f32 %v6951_v16, %v3422_v25 }
 0x47f   :  { %v3427_v36 = vsel %vm3426_vm8, %v6951_v16, %v3423_v31  ;;  %v5980_v16 = vor.u32 %v6781_v52, %v5977_v48  ;;  %v6779_v31 = vld [vmem:[#allocation22 + $0x64] sm:$0xf]  ;;  %v6145_v52 = vld [vmem:[#allocation22 + $0x1c8] sm:$0xf0] }
 0x480   :  { %v3453_v29 = vmul.f32 %v3437_v28, %v3427_v36  ;;  %v6108_v28 = vor.u32 %v6813_v2, %v6105_v33  ;;  %v5969_v36 = vld [vmem:[#allocation22 + $0x68] sm:$0xf0]  ;;  %v6789_v33 = vld [vmem:[#allocation22 + $0xb4] sm:$0xf] }
 0x481   :  { %v5972_v50 = vor.u32 %v6779_v31, %v5969_v36  ;;  %v6771_v31 = vld [vmem:[#allocation22 + $0x24] sm:$0xf]  ;;  %v5937_v36 = vld [vmem:[#allocation22 + $0x28] sm:$0xf0] }
 0x482   :  { %v3462_v51 = vmul.f32 %v3453_v29, %v7868_v15  ;;  %v3498_v44 = vperm.slane %v3453_v29, 0 }
 0x484   :  { %v3477_v38 = vrot.slane %v3462_v51, 1  ;;  %v3506_v17 = vmul.f32 %v3498_v44, %v7857_v43  ;;  %v6172_v51 = vor.u32 %v6829_v58, %v6169_v0  ;;  %v6793_v44 = vld [vmem:[#allocation22 + $0xd4] sm:$0xf]  ;;  %v6073_v58 = vld [vmem:[#allocation22 + $0x138] sm:$0xf0] }
 0x486   :  { %v3484_v61 = vsel %vm3483_vm9, %v3476_v12, %v3477_v38  ;;  %v6811_v12 = vld [vmem:[#allocation22 + $0x164] sm:$0xf]  ;;  %v6097_v38 = vld [vmem:[#allocation22 + $0x168] sm:$0xf0] }
 0x487   :  { %v3486_v15 = vsel %vm3485_vm13, %v7860_v18, %v3484_v61  ;;  %v5961_v61 = vld [vmem:[#allocation22 + $0x58] sm:$0xf0] }
 0x488   :  { %v3488_v30 = vsel %vm3487_vm14, %v7788_v26, %v3486_v15  ;;  %v6025_v15 = vld [vmem:[#allocation22 + $0xd8] sm:$0xf0] }
 0x489   :  { %v3490_v10 = vsub.f32 %v3454_v57, %v3488_v30  ;;  %v6100_v57 = vor.u32 %v6811_v12, %v6097_v38  ;;  %v6164_v30 = vor.u32 %v6827_v13, %v6161_v40  ;;  %v6803_v12 = vld [vmem:[#allocation22 + $0x124] sm:$0xf]  ;;  %v6065_v38 = vld [vmem:[#allocation22 + $0x128] sm:$0xf0] }
 0x48a   :  { %v6819_v13 = vld [vmem:[#allocation22 + $0x1a4] sm:$0xf]  ;;  %v6129_v40 = vld [vmem:[#allocation22 + $0x1a8] sm:$0xf0] }
 0x48b   :  { %v3515_v45 = vperm.slane %v3490_v10, 7  ;;  %v3508_v49 = vperm.slane %v3490_v10, 0  ;;  %v3509_v18 = vperm.slane %v3490_v10, 1  ;;  %v3510_v54 = vperm.slane %v3490_v10, 2 }
 0x48c   :  { %v3511_v26 = vperm.slane %v3490_v10, 3  ;;  %v3512_v55 = vperm.slane %v3490_v10, 4  ;;  %v3513_v47 = vperm.slane %v3490_v10, 5  ;;  %v3514_v59 = vperm.slane %v3490_v10, 6  ;;  %v6153_v10 = vld [vmem:[#allocation22 + $0x1d8] sm:$0xf0] }
 0x48d   :  { %v7901_v5 = vadd.f32 %v3515_v45, %v3506_v17  ;;  %v3524_v41 = vadd.f32 %v3508_v49, %v3499_v39  ;;  %v3525_v37 = vadd.f32 %v3509_v18, %v3500_v23  ;;  %v3526_v60 = vadd.f32 %v3510_v54, %v3501_v4  ;;  %v6809_v39 = vld [vmem:[#allocation22 + $0x154] sm:$0xf]  ;;  %v6089_v23 = vld [vmem:[#allocation22 + $0x158] sm:$0xf0]  ;;  %v6791_v17 = vld [vmem:[#allocation22 + $0xc4] sm:$0xf] }
 0x48e   :  { %v3527_v63 = vadd.f32 %v3511_v26, %v3502_v24  ;;  %v7903_v43 = vadd.f32 %v3512_v55, %v3503_v6  ;;  %v7906_v46 = vadd.f32 %v3513_v47, %v7855_v32  ;;  %v7908_v1 = vadd.f32 %v3514_v59, %v3505_v19  ;;  %v6825_v4 = vld [vmem:[#allocation22 + $0x1d4] sm:$0xf]  ;;  %v6775_v24 = vld [vmem:[#allocation22 + $0x44] sm:$0xf]  ;;  %v5953_v6 = vld [vmem:[#allocation22 + $0x48] sm:$0xf0] }
 0x48f   :  { %vm3532_vm10 = vcmp.gt.f32.partialorder %v3524_v41, 0.0  ;;  %v3540_v22 = vmul.f32 0.2, %v3524_v41  ;;  %vm3533_vm12 = vcmp.gt.f32.partialorder %v3525_v37, 0.0  ;;  %v3541_v7 = vmul.f32 0.2, %v3525_v37 }
 0x490   :  { %vm3534_vm15 = vcmp.gt.f32.partialorder %v3526_v60, 0.0  ;;  %v3542_v8 = vmul.f32 0.2, %v3526_v60  ;;  %vm3535_vm0 = vcmp.gt.f32.partialorder %v3527_v63, 0.0  ;;  %v3543_v14 = vmul.f32 0.2, %v3527_v63 }
 0x491   :  { %v3548_v11 = vsel %vm3532_vm10, %v3524_v41, %v3540_v22  ;;  %v3549_v20 = vsel %vm3533_vm12, %v3525_v37, %v3541_v7  ;;  %v5964_v19 = vor.u32 %v6777_v9, %v5961_v61  ;;  %v6017_v45 = vld [vmem:[#allocation22 + $0xc8] sm:$0xf0]  ;;  %v6807_v49 = vld [vmem:[#allocation22 + $0x144] sm:$0xf]  ;;  %v6028_v18 = vor.u32 %v6793_v44, %v6025_v15  ;;  %v5945_v22 = vld [vmem:[#allocation22 + $0x38] sm:$0xf0] }
 0x492   :  { %v7910_v53 = vpack.c.bf16 %v3548_v11, %v3548_v11  ;;  %v3550_v32 = vsel %vm3534_vm15, %v3526_v60, %v3542_v8  ;;  %v7912_v56 = vpack.c.bf16 %v3549_v20, %v3549_v20  ;;  %v3551_v27 = vsel %vm3535_vm0, %v3527_v63, %v3543_v14  ;;  %v6081_v26 = vld [vmem:[#allocation22 + $0x148] sm:$0xf0]  ;;  %v6823_v55 = vld [vmem:[#allocation22 + $0x1c4] sm:$0xf]  ;;  %v6773_v63 = vld [vmem:[#allocation22 + $0x34] sm:$0xf] }
 0x493   :  { %v7914_v25 = vpack.c.bf16 %v3550_v32, %v3550_v32  ;;  %v7917_v29 = vpack.c.bf16 %v3551_v27, %v3551_v27  ;;  %v6092_v54 = vor.u32 %v6809_v39, %v6089_v23  ;;  %v3544_v47 = vmul.f32 0.2, %v7903_v43  ;;  %v6009_v7 = vld [vmem:[#allocation22 + $0xb8] sm:$0xf0]  ;;  %v6785_v44 = vld [vmem:[#allocation22 + $0x94] sm:$0xf] }
 0x494   :  { %4346 = vmatmul.bf16.vlgmr.msrb.gmra.mxu1 %v7910_v53  ;;  %4359 = vmatmul.bf16.vlgmr.msrb.gmra.mxu0 %v7912_v56  ;;  %v6156_v59 = vor.u32 %v6825_v4, %v6153_v10  ;;  %vm3536_vm1 = vcmp.gt.f32.partialorder %v7903_v43, 0.0  ;;  %v3545_v41 = vmul.f32 0.2, %v7906_v46  ;;  %v3546_v37 = vmul.f32 0.2, %v7908_v1 }
 0x495   :  { %4372 = vmatmul.bf16.vlgmr.msrb.gmra.mxu2 %v7914_v25  ;;  %4385 = vmatmul.bf16.vlgmr.msrb.gmra.mxu3 %v7917_v29  ;;  %v3547_v60 = vmul.f32 0.2, %v7901_v5  ;;  %vm3537_vm2 = vcmp.gt.f32.partialorder %v7906_v46, 0.0  ;;  %vm3538_vm3 = vcmp.gt.f32.partialorder %v7908_v1, 0.0  ;;  %v5956_v48 = vor.u32 %v6775_v24, %v5953_v6  ;;  %v6137_v20 = vld [vmem:[#allocation22 + $0x1b8] sm:$0xf0] }
 0x496   :  { %4442 = vmatpush.bf16.msrb.mxu1 %v5980_v16  ;;  %4455 = vmatpush.bf16.msrb.mxu0 %v6044_v21  ;;  %vm3539_vm4 = vcmp.gt.f32.partialorder %v7901_v5, 0.0  ;;  %v6020_v3 = vor.u32 %v6791_v17, %v6017_v45  ;;  %v6084_v34 = vor.u32 %v6807_v49, %v6081_v26  ;;  %v3552_v2 = vsel %vm3536_vm1, %v7903_v43, %v3544_v47  ;;  %v6805_v16 = vld [vmem:[#allocation22 + $0x134] sm:$0xf]  ;;  %v5929_v61 = vld [vmem:[#allocation22 + $0x18] sm:$0xf0] }
 0x497   :  { %4468 = vmatpush.bf16.msrb.mxu2 %v6108_v28  ;;  %4481 = vmatpush.bf16.msrb.mxu3 %v6172_v51  ;;  %v6148_v8 = vor.u32 %v6823_v55, %v6145_v52  ;;  %v3553_v11 = vsel %vm3537_vm2, %v7906_v46, %v3545_v41  ;;  %v3554_v14 = vsel %vm3538_vm3, %v7908_v1, %v3546_v37  ;;  %v6821_v43 = vld [vmem:[#allocation22 + $0x1b4] sm:$0xf]  ;;  %v6057_v23 = vld [vmem:[#allocation22 + $0x118] sm:$0xf0]  ;;  %v6767_v6 = vld [vmem:[#allocation22 + $0x4] sm:$0xf] }
 0x498   :  { %v3555_v0 = vsel %vm3539_vm4, %v7901_v5, %v3547_v60  ;;  %v7940_v32 = vpack.c.bf16 %v3552_v2, %v3552_v2  ;;  %v5948_v21 = vor.u32 %v6773_v63, %v5945_v22  ;;  %v6012_v27 = vor.u32 %v6789_v33, %v6009_v7  ;;  %v6801_v39 = vld [vmem:[#allocation22 + $0x114] sm:$0xf]  ;;  %v6121_v10 = vld [vmem:[#allocation22 + $0x198] sm:$0xf0]  ;;  %v6783_v49 = vld [vmem:[#allocation22 + $0x84] sm:$0xf] }
 0x499   :  { %v7942_v46 = vpack.c.bf16 %v3553_v11, %v3553_v11  ;;  %v7944_v28 = vpack.c.bf16 %v3554_v14, %v3554_v14  ;;  %v6076_v1 = vor.u32 %v6805_v16, %v6073_v58  ;;  %v7947_v5 = vpack.c.bf16 %v3555_v0, %v3555_v0  ;;  %v6817_v4 = vld [vmem:[#allocation22 + $0x194] sm:$0xf]  ;;  %v6049_v55 = vld [vmem:[#allocation22 + $0x108] sm:$0xf0]  ;;  %v6815_v47 = vld [vmem:[#allocation22 + $0x184] sm:$0xf] }
 0x49a   :  { %4443 = vmatpush.bf16.msrb.mxu1 %v5972_v50  ;;  %4456 = vmatpush.bf16.msrb.mxu0 %v6036_v42  ;;  %v6140_v51 = vor.u32 %v6821_v43, %v6137_v20  ;;  %v5940_v50 = vor.u32 %v6771_v31, %v5937_v36  ;;  %v6004_v9 = vor.u32 %v6787_v62, %v6001_v35  ;;  %v6845_v41 = vld [vmem:[#allocation22 + $0x274] sm:$0xf]  ;;  %v6233_v37 = vld [vmem:[#allocation22 + $0x278] sm:$0xf0]  ;;  %v6843_v16 = vld [vmem:[#allocation22 + $0x264] sm:$0xf] }
 0x49b   :  { %4469 = vmatpush.bf16.msrb.mxu2 %v6100_v57  ;;  %4482 = vmatpush.bf16.msrb.mxu3 %v6164_v30  ;;  %v6068_v42 = vor.u32 %v6803_v12, %v6065_v38  ;;  %v6769_v57 = vld [vmem:[#allocation22 + $0x14] sm:$0xf]  ;;  %v6132_v15 = vor.u32 %v6819_v13, %v6129_v40  ;;  %v5993_v30 = vld [vmem:[#allocation22 + $0x98] sm:$0xf0]  ;;  %v6060_v45 = vor.u32 %v6801_v39, %v6057_v23  ;;  %v6225_v58 = vld [vmem:[#allocation22 + $0x268] sm:$0xf0] }
 0x49c   :  { %v5932_v24 = vor.u32 %v6769_v57, %v5929_v61  ;;  %v5996_v17 = vor.u32 %v6785_v44, %v5993_v30  ;;  %v6124_v26 = vor.u32 %v6817_v4, %v6121_v10  ;;  %v6861_v60 = vld [vmem:[#allocation22 + $0x2f4] sm:$0xf]  ;;  %v6425_v33 = vld [vmem:[#allocation22 + $0x3f8] sm:$0xf0]  ;;  %v6859_v0 = vld [vmem:[#allocation22 + $0x2e4] sm:$0xf]  ;;  %v6228_v36 = vor.u32 %v6843_v16, %v6225_v58 }
 0x49d   :  { %v6877_v63 = vld [vmem:[#allocation22 + $0x374] sm:$0xf]  ;;  %v6289_v20 = vld [vmem:[#allocation22 + $0x2e8] sm:$0xf0]  ;;  %v6217_v12 = vld [vmem:[#allocation22 + $0x258] sm:$0xf0] }
 0x49e   :  { %4444 = vmatpush.bf16.msrb.mxu1 %v5964_v19  ;;  %4457 = vmatpush.bf16.msrb.mxu0 %v6028_v18  ;;  %v5921_v19 = vld [vmem:[#allocation22 + $0x8] sm:$0xf0]  ;;  %v6893_v22 = vld [vmem:[#allocation22 + $0x3f4] sm:$0xf]  ;;  %v6292_v62 = vor.u32 %v6859_v0, %v6289_v20  ;;  %v6281_v40 = vld [vmem:[#allocation22 + $0x2d8] sm:$0xf0] }
 0x49f   :  { %4470 = vmatpush.bf16.msrb.mxu2 %v6092_v54  ;;  %4483 = vmatpush.bf16.msrb.mxu3 %v6156_v59  ;;  %v5985_v18 = vld [vmem:[#allocation22 + $0x88] sm:$0xf0]  ;;  %v6799_v54 = vld [vmem:[#allocation22 + $0x104] sm:$0xf]  ;;  %v5924_v52 = vor.u32 %v6767_v6, %v5921_v19  ;;  %v6428_v43 = vor.u32 %v6893_v22, %v6425_v33  ;;  %v6841_v35 = vld [vmem:[#allocation22 + $0x254] sm:$0xf] }
 0x4a0   :  { %v6113_v59 = vld [vmem:[#allocation22 + $0x188] sm:$0xf0]  ;;  %v6052_v2 = vor.u32 %v6799_v54, %v6049_v55  ;;  %v6857_v38 = vld [vmem:[#allocation22 + $0x2d4] sm:$0xf]  ;;  %v6409_v57 = vld [vmem:[#allocation22 + $0x3d8] sm:$0xf0]  ;;  %v6220_v61 = vor.u32 %v6841_v35, %v6217_v12 }
 0x4a1   :  { %v6116_v7 = vor.u32 %v6815_v47, %v6113_v59  ;;  %v6417_v31 = vld [vmem:[#allocation22 + $0x3e8] sm:$0xf0]  ;;  %v6284_v44 = vor.u32 %v6857_v38, %v6281_v40  ;;  %v6839_v30 = vld [vmem:[#allocation22 + $0x244] sm:$0xf]  ;;  %v6265_v54 = vld [vmem:[#allocation22 + $0x2b8] sm:$0xf0] }
 0x4a2   :  { %4445 = vmatpush.bf16.msrb.mxu1 %v5956_v48  ;;  %4458 = vmatpush.bf16.msrb.mxu0 %v6020_v3  ;;  %v6297_v48 = vld [vmem:[#allocation22 + $0x2f8] sm:$0xf0]  ;;  %v6855_v39 = vld [vmem:[#allocation22 + $0x2c4] sm:$0xf]  ;;  %v6273_v4 = vld [vmem:[#allocation22 + $0x2c8] sm:$0xf0] }
 0x4a3   :  { %4471 = vmatpush.bf16.msrb.mxu2 %v6084_v34  ;;  %4484 = vmatpush.bf16.msrb.mxu3 %v6148_v8  ;;  %v6361_v3 = vld [vmem:[#allocation22 + $0x378] sm:$0xf0]  ;;  %v5988_v34 = vor.u32 %v6783_v49, %v5985_v18  ;;  %v6236_v8 = vor.u32 %v6845_v41, %v6233_v37  ;;  %v6300_v11 = vor.u32 %v6861_v60, %v6297_v48  ;;  %v6871_v10 = vld [vmem:[#allocation22 + $0x344] sm:$0xf]  ;;  %v6853_v49 = vld [vmem:[#allocation22 + $0x2b4] sm:$0xf] }
 0x4a4   :  { %4398 = vmatmul.bf16.vlgmr.msra.gmra.mxu1 %v7940_v32  ;;  %4411 = vmatmul.bf16.vlgmr.msra.gmra.mxu0 %v7942_v46  ;;  %v6364_v14 = vor.u32 %v6877_v63, %v6361_v3  ;;  %v6329_v55 = vld [vmem:[#allocation22 + $0x338] sm:$0xf0]  ;;  %v6885_v47 = vld [vmem:[#allocation22 + $0x3b4] sm:$0xf]  ;;  %v6268_v37 = vor.u32 %v6853_v49, %v6265_v54  ;;  %v6193_v48 = vld [vmem:[#allocation22 + $0x228] sm:$0xf0] }
 0x4a5   :  { %4424 = vmatmul.bf16.vlgmr.msra.gmra.mxu2 %v7944_v28  ;;  %4437 = vmatmul.bf16.vlgmr.msra.gmra.mxu3 %v7947_v5  ;;  %v6393_v59 = vld [vmem:[#allocation22 + $0x3b8] sm:$0xf0]  ;;  %v6851_v63 = vld [vmem:[#allocation22 + $0x2a4] sm:$0xf]  ;;  %v6321_v22 = vld [vmem:[#allocation22 + $0x328] sm:$0xf0] }
 0x4a6   :  { %4446 = vmatpush.bf16.msrb.mxu1 %v5948_v21  ;;  %4459 = vmatpush.bf16.msrb.mxu0 %v6012_v27  ;;  %v6875_v21 = vld [vmem:[#allocation22 + $0x364] sm:$0xf]  ;;  %v6353_v27 = vld [vmem:[#allocation22 + $0x368] sm:$0xf0]  ;;  %v6396_v3 = vor.u32 %v6885_v47, %v6393_v59  ;;  %v6833_v16 = vld [vmem:[#allocation22 + $0x214] sm:$0xf] }
 0x4a7   :  { %4472 = vmatpush.bf16.msrb.mxu2 %v6076_v1  ;;  %4485 = vmatpush.bf16.msrb.mxu3 %v6140_v51  ;;  %v6891_v1 = vld [vmem:[#allocation22 + $0x3e4] sm:$0xf]  ;;  %v6356_v51 = vor.u32 %v6875_v21, %v6353_v27  ;;  %v6185_v58 = vld [vmem:[#allocation22 + $0x218] sm:$0xf0]  ;;  %v6849_v0 = vld [vmem:[#allocation22 + $0x294] sm:$0xf] }
 0x4a8   :  { %v6420_v13 = vor.u32 %v6891_v1, %v6417_v31  ;;  %v6883_v33 = vld [vmem:[#allocation22 + $0x3a4] sm:$0xf]  ;;  %v6249_v20 = vld [vmem:[#allocation22 + $0x298] sm:$0xf0]  ;;  %v6865_v21 = vld [vmem:[#allocation22 + $0x314] sm:$0xf] }
 0x4a9   :  { %v6313_v27 = vld [vmem:[#allocation22 + $0x318] sm:$0xf0]  ;;  %v6881_v1 = vld [vmem:[#allocation22 + $0x394] sm:$0xf]  ;;  %v6831_v35 = vld [vmem:[#allocation22 + $0x204] sm:$0xf] }
 0x4aa   :  { %4447 = vmatpush.bf16.msrb.mxu1 %v5940_v50  ;;  %4460 = vmatpush.bf16.msrb.mxu0 %v6004_v9  ;;  %v6873_v50 = vld [vmem:[#allocation22 + $0x354] sm:$0xf]  ;;  %v6345_v9 = vld [vmem:[#allocation22 + $0x358] sm:$0xf0]  ;;  %v6177_v12 = vld [vmem:[#allocation22 + $0x208] sm:$0xf0] }
 0x4ab   :  { %4473 = vmatpush.bf16.msrb.mxu2 %v6068_v42  ;;  %4486 = vmatpush.bf16.msrb.mxu3 %v6132_v15  ;;  %v6889_v42 = vld [vmem:[#allocation22 + $0x3d4] sm:$0xf]  ;;  %v6348_v15 = vor.u32 %v6873_v50, %v6345_v9  ;;  %v6377_v31 = vld [vmem:[#allocation22 + $0x398] sm:$0xf0]  ;;  %v6847_v38 = vld [vmem:[#allocation22 + $0x284] sm:$0xf] }
 0x4ac   :  { %v6412_v23 = vor.u32 %v6889_v42, %v6409_v57  ;;  %v6241_v40 = vld [vmem:[#allocation22 + $0x288] sm:$0xf0]  ;;  %v6863_v50 = vld [vmem:[#allocation22 + $0x304] sm:$0xf] }
 0x4ad   :  { %v6305_v9 = vld [vmem:[#allocation22 + $0x308] sm:$0xf0]  ;;  %v6879_v42 = vld [vmem:[#allocation22 + $0x384] sm:$0xf] }
 0x4ae   :  { %4448 = vmatpush.bf16.msrb.mxu1 %v5932_v24  ;;  %4461 = vmatpush.bf16.msrb.mxu0 %v5996_v17  ;;  %v6887_v24 = vld [vmem:[#allocation22 + $0x3c4] sm:$0xf]  ;;  %v6837_v17 = vld [vmem:[#allocation22 + $0x234] sm:$0xf]  ;;  %v6369_v57 = vld [vmem:[#allocation22 + $0x388] sm:$0xf0] }
 0x4af   :  { %4474 = vmatpush.bf16.msrb.mxu2 %v6060_v45  ;;  %4487 = vmatpush.bf16.msrb.mxu3 %v6124_v26  ;;  %v6201_v45 = vld [vmem:[#allocation22 + $0x238] sm:$0xf0]  ;;  %v6869_v26 = vld [vmem:[#allocation22 + $0x334] sm:$0xf] }
 0x4b0   :  { %v6204_v41 = vor.u32 %v6837_v17, %v6201_v45  ;;  %v6332_v60 = vor.u32 %v6869_v26, %v6329_v55 }
 0x4b2   :  { %4449 = vmatpush.bf16.msrb.mxu1 %v5924_v52  ;;  %4462 = vmatpush.bf16.msrb.mxu0 %v5988_v34  ;;  %v6835_v52 = vld [vmem:[#allocation22 + $0x224] sm:$0xf]  ;;  %v6257_v34 = vld [vmem:[#allocation22 + $0x2a8] sm:$0xf0] }
 0x4b3   :  { %4475 = vmatpush.bf16.msrb.mxu2 %v6052_v2  ;;  %4488 = vmatpush.bf16.msrb.mxu3 %v6116_v7  ;;  %v6867_v2 = vld [vmem:[#allocation22 + $0x324] sm:$0xf]  ;;  %v6385_v7 = vld [vmem:[#allocation22 + $0x3a8] sm:$0xf0] }
 0x4b5   :  { %4450 = vmatmul.bf16.vlgmr.msrb.gmra.mxu1 %v7910_v53  ;;  %4463 = vmatmul.bf16.vlgmr.msrb.gmra.mxu0 %v7912_v56  ;;  %v6209_v53 = vld [vmem:[#allocation22 + $0x248] sm:$0xf0] }
 0x4b6   :  { %4494 = vmatpush.bf16.msra.mxu1 %v6236_v8  ;;  %4507 = vmatpush.bf16.msra.mxu0 %v6300_v11  ;;  %v6337_v56 = vld [vmem:[#allocation22 + $0x348] sm:$0xf0]  ;;  %v6212_v6 = vor.u32 %v6839_v30, %v6209_v53  ;;  %v6196_v8 = vor.u32 %v6835_v52, %v6193_v48  ;;  %v6260_v11 = vor.u32 %v6851_v63, %v6257_v34 }
 0x4b7   :  { %4520 = vmatpush.bf16.msra.mxu2 %v6364_v14  ;;  %4533 = vmatpush.bf16.msra.mxu3 %v6428_v43  ;;  %v6340_v19 = vor.u32 %v6871_v10, %v6337_v56  ;;  %v6324_v14 = vor.u32 %v6867_v2, %v6321_v22  ;;  %v6388_v43 = vor.u32 %v6883_v33, %v6385_v7  ;;  %v3692_v53 = vld [vmem:[%s7987_s18] sm:$0x3] }
 0x4b8   :  { %4476 = vmatmul.bf16.vlgmr.msrb.gmra.mxu2 %v7914_v25  ;;  %4489 = vmatmul.bf16.vlgmr.msrb.gmra.mxu3 %v7917_v29  ;;  %v6401_v25 = vld [vmem:[#allocation22 + $0x3c8] sm:$0xf0]  ;;  %v6276_v29 = vor.u32 %v6855_v39, %v6273_v4  ;;  %v6372_v30 = vor.u32 %v6879_v42, %v6369_v57  ;;  %v3694_v4 = vperm.slane %v3692_v53, 0  ;;  %v3695_v22 = vperm.slane %v3692_v53, 1 }
 0x4b9   :  { %v6404_v18 = vor.u32 %v6887_v24, %v6401_v25 }
 0x4ba   :  { %4495 = vmatpush.bf16.msra.mxu1 %v6228_v36  ;;  %4508 = vmatpush.bf16.msra.mxu0 %v6292_v62  ;;  %v6188_v36 = vor.u32 %v6833_v16, %v6185_v58  ;;  %v6252_v62 = vor.u32 %v6849_v0, %v6249_v20 }
 0x4bb   :  { %4521 = vmatpush.bf16.msra.mxu2 %v6356_v51  ;;  %4534 = vmatpush.bf16.msra.mxu3 %v6420_v13  ;;  %v6316_v51 = vor.u32 %v6865_v21, %v6313_v27  ;;  %v6380_v13 = vor.u32 %v6881_v1, %v6377_v31 }
 0x4be   :  { %4496 = vmatpush.bf16.msra.mxu1 %v6220_v61  ;;  %4509 = vmatpush.bf16.msra.mxu0 %v6284_v44  ;;  %v6180_v61 = vor.u32 %v6831_v35, %v6177_v12  ;;  %v6244_v44 = vor.u32 %v6847_v38, %v6241_v40 }
 0x4bf   :  { %4522 = vmatpush.bf16.msra.mxu2 %v6348_v15  ;;  %4535 = vmatpush.bf16.msra.mxu3 %v6412_v23  ;;  %v6308_v15 = vor.u32 %v6863_v50, %v6305_v9 }
 0x4c2   :  { %4497 = vmatpush.bf16.msra.mxu1 %v6212_v6  ;;  %4510 = vmatpush.bf16.msra.mxu0 %v6276_v29 }
 0x4c3   :  { %4523 = vmatpush.bf16.msra.mxu2 %v6340_v19  ;;  %4536 = vmatpush.bf16.msra.mxu3 %v6404_v18 }
 0x4c6   :  { %4498 = vmatpush.bf16.msra.mxu1 %v6204_v41  ;;  %4511 = vmatpush.bf16.msra.mxu0 %v6268_v37 }
 0x4c7   :  { %4524 = vmatpush.bf16.msra.mxu2 %v6332_v60  ;;  %4537 = vmatpush.bf16.msra.mxu3 %v6396_v3 }
 0x4ca   :  { %4499 = vmatpush.bf16.msra.mxu1 %v6196_v8  ;;  %4512 = vmatpush.bf16.msra.mxu0 %v6260_v11 }
 0x4cb   :  { %4525 = vmatpush.bf16.msra.mxu2 %v6324_v14  ;;  %4538 = vmatpush.bf16.msra.mxu3 %v6388_v43 }
 0x4ce   :  { %4500 = vmatpush.bf16.msra.mxu1 %v6188_v36  ;;  %4513 = vmatpush.bf16.msra.mxu0 %v6252_v62 }
 0x4cf   :  { %4526 = vmatpush.bf16.msra.mxu2 %v6316_v51  ;;  %4539 = vmatpush.bf16.msra.mxu3 %v6380_v13 }
 0x4d2   :  { %4501 = vmatpush.bf16.msra.mxu1 %v6180_v61  ;;  %4514 = vmatpush.bf16.msra.mxu0 %v6244_v44 }
 0x4d3   :  { %4527 = vmatpush.bf16.msra.mxu2 %v6308_v15  ;;  %4540 = vmatpush.bf16.msra.mxu3 %v6372_v30 }
 0x4d5   :  { %4502 = vmatmul.bf16.vlgmr.msra.gmra.mxu1 %v7940_v32  ;;  %4515 = vmatmul.bf16.vlgmr.msra.gmra.mxu0 %v7942_v46 }
 0x4d6   :  { %4528 = vmatmul.bf16.vlgmr.msra.gmra.mxu2 %v7944_v28  ;;  %4541 = vmatmul.bf16.vlgmr.msra.gmra.mxu3 %v7947_v5 }
 0x511   :  { %v4347_v39 = vpop.f32.mrf.mxu1  ;;  %v4360_v23 = vpop.f32.mrf.mxu0 }
 0x512   :  { %v4348_v10 = vadd.f32 %v4347_v39, %v3694_v4 }
 0x514   :  { %v4361_v29 = vadd.f32 %v4360_v23, %v4348_v10 }
 0x518   :  { %v4373_v56 = vpop.f32.mrf.mxu2  ;;  %v4386_v24 = vpop.f32.mrf.mxu3 }
 0x519   :  { %v4349_v25 = vpop.f32.mrf.mxu1  ;;  %v4362_v6 = vpop.f32.mrf.mxu0  ;;  %v4374_v32 = vadd.f32 %v4373_v56, %v4361_v29 }
 0x51b   :  { %v4387_v46 = vadd.f32 %v4386_v24, %v4374_v32 }
 0x520   :  { %v4375_v19 = vpop.f32.mrf.mxu2  ;;  %v4388_v17 = vpop.f32.mrf.mxu3 }
 0x521   :  { %v4399_v28 = vpop.f32.mrf.mxu1  ;;  %v4412_v45 = vpop.f32.mrf.mxu0 }
 0x522   :  { %v4400_v5 = vadd.f32 %v4399_v28, %v4387_v46 }
 0x524   :  { %v4413_v49 = vadd.f32 %v4412_v45, %v4400_v5 }
 0x528   :  { %v4425_v18 = vpop.f32.mrf.mxu2  ;;  %v4438_v26 = vpop.f32.mrf.mxu3 }
 0x529   :  { %v4426_v54 = vadd.f32 %v4425_v18, %v4413_v49  ;;  %v4401_v55 = vpop.f32.mrf.mxu1  ;;  %v4414_v47 = vpop.f32.mrf.mxu0 }
 0x52b   :  { %v4439_v59 = vadd.f32 %v4438_v26, %v4426_v54 }
 0x52d   :  { %6952 = vtanh.f32 %v4439_v59 }
 0x530   :  { %v4427_v41 = vpop.f32.mrf.mxu2  ;;  %v4440_v37 = vpop.f32.mrf.mxu3 }
 0x532   :  { %v4451_v52 = vpop.f32.mrf.mxu1  ;;  %v4464_v48 = vpop.f32.mrf.mxu0 }
 0x533   :  { %v6953_v60 = vpop.eup %6952  ;;  %v4452_v8 = vadd.f32 %v4451_v52, %v3695_v22 }
 0x534   :  { %4548 = vst [vmem:[%s7988_s19] sm:$0xff] %v6953_v60 }
 0x535   :  { %v4465_v11 = vadd.f32 %v4464_v48, %v4452_v8 }
 0x53a   :  { %v4453_v34 = vpop.f32.mrf.mxu1  ;;  %v4466_v2 = vpop.f32.mrf.mxu0 }
 0x53b   :  { %v4477_v63 = vpop.f32.mrf.mxu2  ;;  %v4490_v3 = vpop.f32.mrf.mxu3 }
 0x53c   :  { %v4478_v14 = vadd.f32 %v4477_v63, %v4465_v11 }
 0x53e   :  { %v4491_v16 = vadd.f32 %v4490_v3, %v4478_v14 }
 0x543   :  { %v4479_v33 = vpop.f32.mrf.mxu2  ;;  %v4492_v7 = vpop.f32.mrf.mxu3 }
 0x552   :  { %v4503_v58 = vpop.f32.mrf.mxu1  ;;  %v4516_v0 = vpop.f32.mrf.mxu0 }
 0x553   :  { %v4504_v43 = vadd.f32 %v4503_v58, %v4491_v16 }
 0x555   :  { %v4517_v20 = vadd.f32 %v4516_v0, %v4504_v43 }
 0x559   :  { %v4529_v21 = vpop.f32.mrf.mxu2  ;;  %v4542_v1 = vpop.f32.mrf.mxu3 }
 0x55a   :  { %v4530_v27 = vadd.f32 %v4529_v21, %v4517_v20  ;;  %v4505_v31 = vpop.f32.mrf.mxu1  ;;  %v4518_v36 = vpop.f32.mrf.mxu0 }
 0x55c   :  { %v4543_v62 = vadd.f32 %v4542_v1, %v4530_v27 }
 0x55e   :  { %6954 = vtanh.f32 %v4543_v62 }
 0x561   :  { %v4531_v51 = vpop.f32.mrf.mxu2  ;;  %v4544_v35 = vpop.f32.mrf.mxu3 }
 0x564   :  { %v6955_v12 = vpop.eup %6954 }
 0x565   :  { %4549 = vst [vmem:[%s7988_s19 + $0x8] sm:$0xff] %v6955_v12 }
 0x566   :  { %4554 = vsyncpa [#allocation3], 1 }
 0x567   :  { %4555 = vsyncpa [#allocation5], 1 }
 0x568   :  { %4556 = vsyncpa [#allocation8], 1 }
 0x569   :  { %4557 = vsyncpa [#allocation11], 1 }
 0x56a   :  { %4558 = vsyncpa [#allocation14], 1 }
 0x56b   :  { %4559 = vsyncpa [#allocation17], 1 }
 0x56c   :  { %4560 = vsyncpa [#allocation20], 1 }
 0x56d   :  { %4561 = vsyncpa [#allocation23], 1 }

</bundles_post_ra>
